<compile_context>
chip_gen: v6e
topology: v6e:2x2x1
jax: 0.10.0
libtpu: 0.0.40
codegen_flags: <defaults>
</compile_context>

<pallas_src>
import functools
import math

import jax
import jax.numpy as jnp
from jax.experimental import pallas as pl
from jax.experimental.pallas import tpu as pltpu


# ------------------------------ model config --------------------------------

HIDDEN = 32
HEADS = 4
FF = 64
LAYERS = 2
VOCAB = 100
SEG_TYPES = 3
MAX_SEQ = 64
LABELS = 3


# ------------------------------ fused kernel --------------------------------

def _layernorm(x, g, b, eps=1e-6):
    # UER-py LayerNorm uses eps=1e-6.
    mu = jnp.mean(x, axis=-1, keepdims=True)
    var = jnp.mean(jnp.square(x - mu), axis=-1, keepdims=True)
    return (x - mu) * jax.lax.rsqrt(var + eps) * g + b


def _gelu_tanh(x):
    # tanh-approximation GELU: transcendental goes to the (otherwise idle)
    # EUP slot instead of a multi-op VPU erf polynomial.
    c = math.sqrt(2.0 / math.pi)
    return 0.5 * x * (1.0 + jnp.tanh(c * (x + 0.044715 * x * x * x)))


def _fused_classifier_kernel(
    emb_ref, keep_ref, onehot_ref, eg_ref, eb_ref,
    wqkv_ref, bqkv_ref, wo_ref, bo_ref, ln1g_ref, ln1b_ref,
    w1_ref, b1_ref, w2_ref, b2_ref, ln2g_ref, ln2b_ref,
    o1w_ref, o1b_ref, o2w_ref, o2b_ref,
    out_ref,
    *, batch, seq,
):
    dh = HIDDEN // HEADS
    scale = 1.0 / math.sqrt(dh)
    m = batch * seq

    # Embedding LayerNorm (no zero-residual tensor DMA'd from HBM).
    x = _layernorm(emb_ref[...], eg_ref[...], eb_ref[...])          # [M, H]

    # Additive key mask per batch, built once and pre-broadcast to the score
    # shape; hoisted out of the layer/head loops (broadcasts are not CSE'd).
    keep = keep_ref[...]                                            # [B, S]
    bias_rows = jnp.where(keep > 0.0, 0.0, -10000.0)                # [B, S]
    key_bias = [
        jnp.broadcast_to(bias_rows[b:b + 1, :], (seq, seq))         # [S, S]
        for b in range(batch)
    ]

    for l in range(LAYERS):
        # Fused QKV projection: one [M,H] x [H,3H] MXU pass.
        qkv = jnp.dot(x, wqkv_ref[l],
                      preferred_element_type=jnp.float32) + bqkv_ref[l]
        q = qkv[:, 0 * HIDDEN:1 * HIDDEN]
        k = qkv[:, 1 * HIDDEN:2 * HIDDEN]
        v = qkv[:, 2 * HIDDEN:3 * HIDDEN]

        # Per-(batch, head) attention entirely in registers; head contexts are
        # concatenated along lanes, batches along sublanes -> one [M, H] value
        # fed straight into the W_o matmul (no VMEM scratch, no masked stores).
        ctx_rows = []
        for b in range(batch):
            r0, r1 = b * seq, (b + 1) * seq
            qb, kb, vb = q[r0:r1], k[r0:r1], v[r0:r1]
            head_ctx = []
            for h in range(HEADS):
                c0, c1 = h * dh, (h + 1) * dh
                # Contract last dims of q and k directly (no explicit k.T).
                s = jax.lax.dot_general(
                    qb[:, c0:c1], kb[:, c0:c1],
                    dimension_numbers=(((1,), (1,)), ((), ())),
                    preferred_element_type=jnp.float32) * scale + key_bias[b]
                s = s - jnp.max(s, axis=-1, keepdims=True)
                p = jnp.exp(s)
                p = p / jnp.sum(p, axis=-1, keepdims=True)          # exact div
                head_ctx.append(jnp.dot(p, vb[:, c0:c1],
                                        preferred_element_type=jnp.float32))
            ctx_rows.append(jnp.concatenate(head_ctx, axis=-1))     # [S, H]
        ctx = jnp.concatenate(ctx_rows, axis=0)                     # [M, H]

        attn_out = jnp.dot(ctx, wo_ref[l],
                           preferred_element_type=jnp.float32) + bo_ref[l]
        x = _layernorm(attn_out + x, ln1g_ref[l], ln1b_ref[l])

        ff = jnp.dot(x, w1_ref[l],
                     preferred_element_type=jnp.float32) + b1_ref[l]
        ff = _gelu_tanh(ff)
        ff = jnp.dot(ff, w2_ref[l],
                     preferred_element_type=jnp.float32) + b2_ref[l]
        x = _layernorm(ff + x, ln2g_ref[l], ln2b_ref[l])

    # Classification head: pick the CLS row of each sequence with a tiny
    # selection matmul (avoids strided slicing / relayouts in-kernel).
    col = jax.lax.broadcasted_iota(jnp.int32, (batch, m), 1)
    want = jax.lax.broadcasted_iota(jnp.int32, (batch, m), 0) * seq
    sel = (col == want).astype(jnp.float32)                          # [B, M]
    cls = jnp.dot(sel, x, preferred_element_type=jnp.float32)        # [B, H]

    pooled = jnp.tanh(
        jnp.dot(cls, o1w_ref[...],
                preferred_element_type=jnp.float32) + o1b_ref[...])
    logits = jnp.dot(pooled, o2w_ref[...],
                     preferred_element_type=jnp.float32) + o2b_ref[...]

    # LogSoftmax + NLL with one-hot targets -> per-example loss rides as an
    # extra lane of the logits slab (single output, no (1,1) writeback).
    z = logits - jnp.max(logits, axis=-1, keepdims=True)
    logp = z - jnp.log(jnp.sum(jnp.exp(z), axis=-1, keepdims=True))
    nll = -jnp.sum(logp * onehot_ref[...], axis=-1, keepdims=True)   # [B, 1]
    out_ref[...] = jnp.concatenate([logits, nll], axis=-1)           # [B, L+1]


def _fused_call(emb_sum, keep, onehot, params, batch, seq):
    inputs = (
        emb_sum, keep, onehot,
        params["emb_ln_g"], params["emb_ln_b"],
        params["wqkv"], params["bqkv"], params["wo"], params["bo"],
        params["ln1_g"], params["ln1_b"],
        params["w1"], params["b1"], params["w2"], params["b2"],
        params["ln2_g"], params["ln2_b"],
        params["out1_w"], params["out1_b"],
        params["out2_w"], params["out2_b"],
    )

    def full_block(a):
        # whole-array block (fits VMEM trivially at these sizes)
        return pl.BlockSpec(a.shape, lambda i, n=a.ndim: (0,) * n)

    kernel = functools.partial(_fused_classifier_kernel, batch=batch, seq=seq)
    return pl.pallas_call(
        kernel,
        out_shape=jax.ShapeDtypeStruct((batch, LABELS + 1), jnp.float32),
        grid=(1,),
        in_specs=[full_block(a) for a in inputs],
        out_specs=pl.BlockSpec((batch, LABELS + 1), lambda i: (0, 0)),
        compiler_params=pltpu.CompilerParams(
            dimension_semantics=("arbitrary",)),
    )(*inputs)


# ------------------------------ parameters ----------------------------------

def init_params(key):
    def nrm(k, shape, scale=0.02):
        return scale * jax.random.normal(k, shape, dtype=jnp.float32)

    keys = iter(jax.random.split(key, 64))
    p = {
        "word_emb": nrm(next(keys), (VOCAB, HIDDEN)),
        "pos_emb": nrm(next(keys), (MAX_SEQ, HIDDEN)),
        "seg_emb": nrm(next(keys), (SEG_TYPES, HIDDEN)),
        "emb_ln_g": jnp.ones((1, HIDDEN), jnp.float32),
        "emb_ln_b": jnp.zeros((1, HIDDEN), jnp.float32),
        # Per-layer weights stacked along a leading L axis; Q|K|V fused to
        # a single [H, 3H] projection per layer.
        "wqkv": jnp.stack([
            jnp.concatenate([nrm(next(keys), (HIDDEN, HIDDEN))
                             for _ in range(3)], axis=1)
            for _ in range(LAYERS)]),                              # [L, H, 3H]
        "bqkv": jnp.zeros((LAYERS, 1, 3 * HIDDEN), jnp.float32),
        "wo": jnp.stack([nrm(next(keys), (HIDDEN, HIDDEN))
                         for _ in range(LAYERS)]),
        "bo": jnp.zeros((LAYERS, 1, HIDDEN), jnp.float32),
        "ln1_g": jnp.ones((LAYERS, 1, HIDDEN), jnp.float32),
        "ln1_b": jnp.zeros((LAYERS, 1, HIDDEN), jnp.float32),
        "w1": jnp.stack([nrm(next(keys), (HIDDEN, FF))
                         for _ in range(LAYERS)]),
        "b1": jnp.zeros((LAYERS, 1, FF), jnp.float32),
        "w2": jnp.stack([nrm(next(keys), (FF, HIDDEN))
                         for _ in range(LAYERS)]),
        "b2": jnp.zeros((LAYERS, 1, HIDDEN), jnp.float32),
        "ln2_g": jnp.ones((LAYERS, 1, HIDDEN), jnp.float32),
        "ln2_b": jnp.zeros((LAYERS, 1, HIDDEN), jnp.float32),
        "out1_w": nrm(next(keys), (HIDDEN, HIDDEN)),
        "out1_b": jnp.zeros((1, HIDDEN), jnp.float32),
        "out2_w": nrm(next(keys), (HIDDEN, LABELS)),
        "out2_b": jnp.zeros((1, LABELS), jnp.float32),
    }
    return p


# -------------------------------- forward -----------------------------------

def classifier_forward(params, src, tgt, seg):
    batch, seq = src.shape

    # Embedding-table gathers stay in XLA (glue); their sum feeds the kernel.
    word = params["word_emb"][src]                                  # [B,S,H]
    pos = params["pos_emb"][:seq][None, :, :]                       # [1,S,H]
    segm = params["seg_emb"][seg]                                   # [B,S,H]
    emb_sum = (word + pos + segm).reshape(batch * seq, HIDDEN)

    keep = (seg > 0).astype(jnp.float32)                            # [B,S]
    onehot = jax.nn.one_hot(tgt, LABELS, dtype=jnp.float32)         # [B,labels]

    out = _fused_call(emb_sum, keep, onehot, params, batch, seq)
    logits = out[:, :LABELS]
    loss = jnp.mean(out[:, LABELS])                                 # NLL mean
    return loss, logits


# ---------------------------------- main -------------------------------------

if __name__ == "__main__":
    key = jax.random.PRNGKey(0)
    pkey, skey, tkey = jax.random.split(key, 3)

    params = init_params(pkey)

    B, S = 2, 8
    src = jax.random.randint(skey, (B, S), 0, VOCAB, dtype=jnp.int32)
    # seg: 1 for real tokens, 0 for padding (second sequence padded).
    seg = jnp.array([[1] * S, [1] * 5 + [0] * 3], dtype=jnp.int32)
    tgt = jax.random.randint(tkey, (B,), 0, LABELS, dtype=jnp.int32)

    fwd = jax.jit(classifier_forward)
    loss, logits = fwd(params, src, tgt, seg)
    jax.block_until_ready((loss, logits))

    assert logits.shape == (B, LABELS)
    assert bool(jnp.isfinite(loss))
    print("KERNEL_OK")
</pallas_src>

<mosaic_0001>
module attributes {stable_mosaic.version = 11 : i64} {
  func.func @_fused_classifier_kernel(%arg0: i32, %arg1: memref<16x32xf32, #tpu.memory_space<vmem>>, %arg2: memref<2x8xf32, #tpu.memory_space<vmem>>, %arg3: memref<2x3xf32, #tpu.memory_space<vmem>>, %arg4: memref<1x32xf32, #tpu.memory_space<vmem>>, %arg5: memref<1x32xf32, #tpu.memory_space<vmem>>, %arg6: memref<2x32x96xf32, #tpu.memory_space<vmem>>, %arg7: memref<2x1x96xf32, #tpu.memory_space<vmem>>, %arg8: memref<2x32x32xf32, #tpu.memory_space<vmem>>, %arg9: memref<2x1x32xf32, #tpu.memory_space<vmem>>, %arg10: memref<2x1x32xf32, #tpu.memory_space<vmem>>, %arg11: memref<2x1x32xf32, #tpu.memory_space<vmem>>, %arg12: memref<2x32x64xf32, #tpu.memory_space<vmem>>, %arg13: memref<2x1x64xf32, #tpu.memory_space<vmem>>, %arg14: memref<2x64x32xf32, #tpu.memory_space<vmem>>, %arg15: memref<2x1x32xf32, #tpu.memory_space<vmem>>, %arg16: memref<2x1x32xf32, #tpu.memory_space<vmem>>, %arg17: memref<2x1x32xf32, #tpu.memory_space<vmem>>, %arg18: memref<32x32xf32, #tpu.memory_space<vmem>>, %arg19: memref<1x32xf32, #tpu.memory_space<vmem>>, %arg20: memref<32x3xf32, #tpu.memory_space<vmem>>, %arg21: memref<1x3xf32, #tpu.memory_space<vmem>>, %arg22: memref<2x4xf32, #tpu.memory_space<vmem>>) attributes {dimension_semantics = [#tpu.dimension_semantics<arbitrary>], iteration_bounds = array<i64: 1>, scalar_prefetch = 0 : i64, scratch_operands = 0 : i64, tpu.core_type = #tpu.core_type<tc>, window_params = [{pipeline_mode = #tpu.pipeline_mode<synchronous>, transform_indices = @transform_0, window_bounds = array<i64: 16, 32>}, {pipeline_mode = #tpu.pipeline_mode<synchronous>, transform_indices = @transform_1, window_bounds = array<i64: 2, 8>}, {pipeline_mode = #tpu.pipeline_mode<synchronous>, transform_indices = @transform_2, window_bounds = array<i64: 2, 3>}, {pipeline_mode = #tpu.pipeline_mode<synchronous>, transform_indices = @transform_3, window_bounds = array<i64: 1, 32>}, {pipeline_mode = #tpu.pipeline_mode<synchronous>, transform_indices = @transform_4, window_bounds = array<i64: 1, 32>}, {pipeline_mode = #tpu.pipeline_mode<synchronous>, transform_indices = @transform_5, window_bounds = array<i64: 2, 32, 96>}, {pipeline_mode = #tpu.pipeline_mode<synchronous>, transform_indices = @transform_6, window_bounds = array<i64: 2, 1, 96>}, {pipeline_mode = #tpu.pipeline_mode<synchronous>, transform_indices = @transform_7, window_bounds = array<i64: 2, 32, 32>}, {pipeline_mode = #tpu.pipeline_mode<synchronous>, transform_indices = @transform_8, window_bounds = array<i64: 2, 1, 32>}, {pipeline_mode = #tpu.pipeline_mode<synchronous>, transform_indices = @transform_9, window_bounds = array<i64: 2, 1, 32>}, {pipeline_mode = #tpu.pipeline_mode<synchronous>, transform_indices = @transform_10, window_bounds = array<i64: 2, 1, 32>}, {pipeline_mode = #tpu.pipeline_mode<synchronous>, transform_indices = @transform_11, window_bounds = array<i64: 2, 32, 64>}, {pipeline_mode = #tpu.pipeline_mode<synchronous>, transform_indices = @transform_12, window_bounds = array<i64: 2, 1, 64>}, {pipeline_mode = #tpu.pipeline_mode<synchronous>, transform_indices = @transform_13, window_bounds = array<i64: 2, 64, 32>}, {pipeline_mode = #tpu.pipeline_mode<synchronous>, transform_indices = @transform_14, window_bounds = array<i64: 2, 1, 32>}, {pipeline_mode = #tpu.pipeline_mode<synchronous>, transform_indices = @transform_15, window_bounds = array<i64: 2, 1, 32>}, {pipeline_mode = #tpu.pipeline_mode<synchronous>, transform_indices = @transform_16, window_bounds = array<i64: 2, 1, 32>}, {pipeline_mode = #tpu.pipeline_mode<synchronous>, transform_indices = @transform_17, window_bounds = array<i64: 32, 32>}, {pipeline_mode = #tpu.pipeline_mode<synchronous>, transform_indices = @transform_18, window_bounds = array<i64: 1, 32>}, {pipeline_mode = #tpu.pipeline_mode<synchronous>, transform_indices = @transform_19, window_bounds = array<i64: 32, 3>}, {pipeline_mode = #tpu.pipeline_mode<synchronous>, transform_indices = @transform_20, window_bounds = array<i64: 1, 3>}, {pipeline_mode = #tpu.pipeline_mode<synchronous>, transform_indices = @transform_21, window_bounds = array<i64: 2, 4>}]} {
    %c0 = arith.constant 0 : index
    %c0_0 = arith.constant 0 : index
    %0 = vector.load %arg1[%c0, %c0_0] : memref<16x32xf32, #tpu.memory_space<vmem>>, vector<16x32xf32>
    %c0_1 = arith.constant 0 : index
    %c0_2 = arith.constant 0 : index
    %1 = vector.load %arg4[%c0_1, %c0_2] : memref<1x32xf32, #tpu.memory_space<vmem>>, vector<1x32xf32>
    %c0_3 = arith.constant 0 : index
    %c0_4 = arith.constant 0 : index
    %2 = vector.load %arg5[%c0_3, %c0_4] : memref<1x32xf32, #tpu.memory_space<vmem>>, vector<1x32xf32>
    %cst = arith.constant dense<0.000000e+00> : vector<16xf32>
    %3 = vector.multi_reduction <add>, %0, %cst [1] : vector<16x32xf32> to vector<16xf32>
    %4 = vector.shape_cast %3 : vector<16xf32> to vector<16x1xf32>
    %cst_5 = arith.constant 3.200000e+01 : f32
    %5 = vector.broadcast %cst_5 : f32 to vector<16x1xf32>
    %6 = arith.divf %4, %5 : vector<16x1xf32>
    %7 = vector.broadcast %6 : vector<16x1xf32> to vector<16x32xf32>
    %8 = arith.subf %0, %7 : vector<16x32xf32>
    %9 = arith.mulf %8, %8 : vector<16x32xf32>
    %cst_6 = arith.constant dense<0.000000e+00> : vector<16xf32>
    %10 = vector.multi_reduction <add>, %9, %cst_6 [1] : vector<16x32xf32> to vector<16xf32>
    %11 = vector.shape_cast %10 : vector<16xf32> to vector<16x1xf32>
    %cst_7 = arith.constant 3.200000e+01 : f32
    %12 = vector.broadcast %cst_7 : f32 to vector<16x1xf32>
    %13 = arith.divf %11, %12 : vector<16x1xf32>
    %14 = vector.broadcast %6 : vector<16x1xf32> to vector<16x32xf32>
    %15 = arith.subf %0, %14 : vector<16x32xf32>
    %cst_8 = arith.constant 9.99999997E-7 : f32
    %16 = vector.broadcast %cst_8 : f32 to vector<16x1xf32>
    %17 = arith.addf %13, %16 : vector<16x1xf32>
    %18 = math.rsqrt %17 : vector<16x1xf32>
    %19 = vector.broadcast %18 : vector<16x1xf32> to vector<16x32xf32>
    %20 = arith.mulf %15, %19 : vector<16x32xf32>
    %21 = vector.broadcast %1 : vector<1x32xf32> to vector<16x32xf32>
    %22 = arith.mulf %20, %21 : vector<16x32xf32>
    %23 = vector.broadcast %2 : vector<1x32xf32> to vector<16x32xf32>
    %24 = arith.addf %22, %23 : vector<16x32xf32>
    %c0_9 = arith.constant 0 : index
    %c0_10 = arith.constant 0 : index
    %25 = vector.load %arg2[%c0_9, %c0_10] : memref<2x8xf32, #tpu.memory_space<vmem>>, vector<2x8xf32>
    %cst_11 = arith.constant 0.000000e+00 : f32
    %26 = vector.broadcast %cst_11 : f32 to vector<2x8xf32>
    %27 = arith.cmpf ogt, %25, %26 : vector<2x8xf32>
    %cst_12 = arith.constant 0.000000e+00 : f32
    %cst_13 = arith.constant -1.000000e+04 : f32
    %28 = vector.broadcast %cst_12 : f32 to vector<2x8xf32>
    %29 = vector.broadcast %cst_13 : f32 to vector<2x8xf32>
    %30 = arith.select %27, %28, %29 : vector<2x8xi1>, vector<2x8xf32>
    %31 = vector.extract_strided_slice %30 {offsets = [0, 0], sizes = [1, 8], strides = [1, 1]} : vector<2x8xf32> to vector<1x8xf32>
    %32 = vector.shape_cast %31 : vector<1x8xf32> to vector<1x8xf32>
    %33 = vector.broadcast %32 : vector<1x8xf32> to vector<8x8xf32>
    %34 = vector.extract_strided_slice %30 {offsets = [1, 0], sizes = [1, 8], strides = [1, 1]} : vector<2x8xf32> to vector<1x8xf32>
    %35 = vector.shape_cast %34 : vector<1x8xf32> to vector<1x8xf32>
    %36 = vector.broadcast %35 : vector<1x8xf32> to vector<8x8xf32>
    %c0_14 = arith.constant 0 : index
    %c0_15 = arith.constant 0 : index
    %c0_16 = arith.constant 0 : index
    %37 = vector.load %arg6[%c0_14, %c0_15, %c0_16] : memref<2x32x96xf32, #tpu.memory_space<vmem>>, vector<1x32x96xf32>
    %38 = vector.shape_cast %37 : vector<1x32x96xf32> to vector<32x96xf32>
    %cst_17 = arith.constant dense<0.000000e+00> : vector<16x96xf32>
    %39 = tpu.matmul %24, %38, %cst_17 {dimension_numbers = #tpu.dot_dimension_numbers<[1], [0], [0], [1], [0, 0, 1, 1], [], []>} : vector<16x32xf32>, vector<32x96xf32>, vector<16x96xf32> -> vector<16x96xf32>
    %c0_18 = arith.constant 0 : index
    %c0_19 = arith.constant 0 : index
    %c0_20 = arith.constant 0 : index
    %40 = vector.load %arg7[%c0_18, %c0_19, %c0_20] : memref<2x1x96xf32, #tpu.memory_space<vmem>>, vector<1x1x96xf32>
    %41 = vector.shape_cast %40 : vector<1x1x96xf32> to vector<1x96xf32>
    %42 = vector.broadcast %41 : vector<1x96xf32> to vector<16x96xf32>
    %43 = arith.addf %39, %42 : vector<16x96xf32>
    %44 = vector.extract_strided_slice %43 {offsets = [0, 0], sizes = [16, 32], strides = [1, 1]} : vector<16x96xf32> to vector<16x32xf32>
    %45 = vector.extract_strided_slice %43 {offsets = [0, 32], sizes = [16, 32], strides = [1, 1]} : vector<16x96xf32> to vector<16x32xf32>
    %46 = vector.extract_strided_slice %43 {offsets = [0, 64], sizes = [16, 32], strides = [1, 1]} : vector<16x96xf32> to vector<16x32xf32>
    %47 = vector.extract_strided_slice %44 {offsets = [0, 0], sizes = [8, 32], strides = [1, 1]} : vector<16x32xf32> to vector<8x32xf32>
    %48 = vector.extract_strided_slice %45 {offsets = [0, 0], sizes = [8, 32], strides = [1, 1]} : vector<16x32xf32> to vector<8x32xf32>
    %49 = vector.extract_strided_slice %46 {offsets = [0, 0], sizes = [8, 32], strides = [1, 1]} : vector<16x32xf32> to vector<8x32xf32>
    %50 = vector.extract_strided_slice %47 {offsets = [0, 0], sizes = [8, 8], strides = [1, 1]} : vector<8x32xf32> to vector<8x8xf32>
    %51 = vector.extract_strided_slice %48 {offsets = [0, 0], sizes = [8, 8], strides = [1, 1]} : vector<8x32xf32> to vector<8x8xf32>
    %cst_21 = arith.constant dense<0.000000e+00> : vector<8x8xf32>
    %52 = tpu.matmul %50, %51, %cst_21 {dimension_numbers = #tpu.dot_dimension_numbers<[1], [1], [0], [0], [0, 0, 1, 0], [], []>} : vector<8x8xf32>, vector<8x8xf32>, vector<8x8xf32> -> vector<8x8xf32>
    %cst_22 = arith.constant 0.353553385 : f32
    %53 = vector.broadcast %cst_22 : f32 to vector<8x8xf32>
    %54 = arith.mulf %52, %53 : vector<8x8xf32>
    %55 = arith.addf %54, %33 : vector<8x8xf32>
    %cst_23 = arith.constant dense<0xFF800000> : vector<8xf32>
    %56 = vector.multi_reduction <maximumf>, %55, %cst_23 [1] : vector<8x8xf32> to vector<8xf32>
    %57 = vector.shape_cast %56 : vector<8xf32> to vector<8x1xf32>
    %58 = vector.broadcast %57 : vector<8x1xf32> to vector<8x8xf32>
    %59 = arith.subf %55, %58 : vector<8x8xf32>
    %60 = math.exp %59 : vector<8x8xf32>
    %cst_24 = arith.constant dense<0.000000e+00> : vector<8xf32>
    %61 = vector.multi_reduction <add>, %60, %cst_24 [1] : vector<8x8xf32> to vector<8xf32>
    %62 = vector.shape_cast %61 : vector<8xf32> to vector<8x1xf32>
    %63 = vector.broadcast %62 : vector<8x1xf32> to vector<8x8xf32>
    %64 = arith.divf %60, %63 : vector<8x8xf32>
    %65 = vector.extract_strided_slice %49 {offsets = [0, 0], sizes = [8, 8], strides = [1, 1]} : vector<8x32xf32> to vector<8x8xf32>
    %cst_25 = arith.constant dense<0.000000e+00> : vector<8x8xf32>
    %66 = tpu.matmul %64, %65, %cst_25 {dimension_numbers = #tpu.dot_dimension_numbers<[1], [0], [0], [1], [0, 0, 1, 1], [], []>} : vector<8x8xf32>, vector<8x8xf32>, vector<8x8xf32> -> vector<8x8xf32>
    %67 = vector.extract_strided_slice %47 {offsets = [0, 8], sizes = [8, 8], strides = [1, 1]} : vector<8x32xf32> to vector<8x8xf32>
    %68 = vector.extract_strided_slice %48 {offsets = [0, 8], sizes = [8, 8], strides = [1, 1]} : vector<8x32xf32> to vector<8x8xf32>
    %cst_26 = arith.constant dense<0.000000e+00> : vector<8x8xf32>
    %69 = tpu.matmul %67, %68, %cst_26 {dimension_numbers = #tpu.dot_dimension_numbers<[1], [1], [0], [0], [0, 0, 1, 0], [], []>} : vector<8x8xf32>, vector<8x8xf32>, vector<8x8xf32> -> vector<8x8xf32>
    %cst_27 = arith.constant 0.353553385 : f32
    %70 = vector.broadcast %cst_27 : f32 to vector<8x8xf32>
    %71 = arith.mulf %69, %70 : vector<8x8xf32>
    %72 = arith.addf %71, %33 : vector<8x8xf32>
    %cst_28 = arith.constant dense<0xFF800000> : vector<8xf32>
    %73 = vector.multi_reduction <maximumf>, %72, %cst_28 [1] : vector<8x8xf32> to vector<8xf32>
    %74 = vector.shape_cast %73 : vector<8xf32> to vector<8x1xf32>
    %75 = vector.broadcast %74 : vector<8x1xf32> to vector<8x8xf32>
    %76 = arith.subf %72, %75 : vector<8x8xf32>
    %77 = math.exp %76 : vector<8x8xf32>
    %cst_29 = arith.constant dense<0.000000e+00> : vector<8xf32>
    %78 = vector.multi_reduction <add>, %77, %cst_29 [1] : vector<8x8xf32> to vector<8xf32>
    %79 = vector.shape_cast %78 : vector<8xf32> to vector<8x1xf32>
    %80 = vector.broadcast %79 : vector<8x1xf32> to vector<8x8xf32>
    %81 = arith.divf %77, %80 : vector<8x8xf32>
    %82 = vector.extract_strided_slice %49 {offsets = [0, 8], sizes = [8, 8], strides = [1, 1]} : vector<8x32xf32> to vector<8x8xf32>
    %cst_30 = arith.constant dense<0.000000e+00> : vector<8x8xf32>
    %83 = tpu.matmul %81, %82, %cst_30 {dimension_numbers = #tpu.dot_dimension_numbers<[1], [0], [0], [1], [0, 0, 1, 1], [], []>} : vector<8x8xf32>, vector<8x8xf32>, vector<8x8xf32> -> vector<8x8xf32>
    %84 = vector.extract_strided_slice %47 {offsets = [0, 16], sizes = [8, 8], strides = [1, 1]} : vector<8x32xf32> to vector<8x8xf32>
    %85 = vector.extract_strided_slice %48 {offsets = [0, 16], sizes = [8, 8], strides = [1, 1]} : vector<8x32xf32> to vector<8x8xf32>
    %cst_31 = arith.constant dense<0.000000e+00> : vector<8x8xf32>
    %86 = tpu.matmul %84, %85, %cst_31 {dimension_numbers = #tpu.dot_dimension_numbers<[1], [1], [0], [0], [0, 0, 1, 0], [], []>} : vector<8x8xf32>, vector<8x8xf32>, vector<8x8xf32> -> vector<8x8xf32>
    %cst_32 = arith.constant 0.353553385 : f32
    %87 = vector.broadcast %cst_32 : f32 to vector<8x8xf32>
    %88 = arith.mulf %86, %87 : vector<8x8xf32>
    %89 = arith.addf %88, %33 : vector<8x8xf32>
    %cst_33 = arith.constant dense<0xFF800000> : vector<8xf32>
    %90 = vector.multi_reduction <maximumf>, %89, %cst_33 [1] : vector<8x8xf32> to vector<8xf32>
    %91 = vector.shape_cast %90 : vector<8xf32> to vector<8x1xf32>
    %92 = vector.broadcast %91 : vector<8x1xf32> to vector<8x8xf32>
    %93 = arith.subf %89, %92 : vector<8x8xf32>
    %94 = math.exp %93 : vector<8x8xf32>
    %cst_34 = arith.constant dense<0.000000e+00> : vector<8xf32>
    %95 = vector.multi_reduction <add>, %94, %cst_34 [1] : vector<8x8xf32> to vector<8xf32>
    %96 = vector.shape_cast %95 : vector<8xf32> to vector<8x1xf32>
    %97 = vector.broadcast %96 : vector<8x1xf32> to vector<8x8xf32>
    %98 = arith.divf %94, %97 : vector<8x8xf32>
    %99 = vector.extract_strided_slice %49 {offsets = [0, 16], sizes = [8, 8], strides = [1, 1]} : vector<8x32xf32> to vector<8x8xf32>
    %cst_35 = arith.constant dense<0.000000e+00> : vector<8x8xf32>
    %100 = tpu.matmul %98, %99, %cst_35 {dimension_numbers = #tpu.dot_dimension_numbers<[1], [0], [0], [1], [0, 0, 1, 1], [], []>} : vector<8x8xf32>, vector<8x8xf32>, vector<8x8xf32> -> vector<8x8xf32>
    %101 = vector.extract_strided_slice %47 {offsets = [0, 24], sizes = [8, 8], strides = [1, 1]} : vector<8x32xf32> to vector<8x8xf32>
    %102 = vector.extract_strided_slice %48 {offsets = [0, 24], sizes = [8, 8], strides = [1, 1]} : vector<8x32xf32> to vector<8x8xf32>
    %cst_36 = arith.constant dense<0.000000e+00> : vector<8x8xf32>
    %103 = tpu.matmul %101, %102, %cst_36 {dimension_numbers = #tpu.dot_dimension_numbers<[1], [1], [0], [0], [0, 0, 1, 0], [], []>} : vector<8x8xf32>, vector<8x8xf32>, vector<8x8xf32> -> vector<8x8xf32>
    %cst_37 = arith.constant 0.353553385 : f32
    %104 = vector.broadcast %cst_37 : f32 to vector<8x8xf32>
    %105 = arith.mulf %103, %104 : vector<8x8xf32>
    %106 = arith.addf %105, %33 : vector<8x8xf32>
    %cst_38 = arith.constant dense<0xFF800000> : vector<8xf32>
    %107 = vector.multi_reduction <maximumf>, %106, %cst_38 [1] : vector<8x8xf32> to vector<8xf32>
    %108 = vector.shape_cast %107 : vector<8xf32> to vector<8x1xf32>
    %109 = vector.broadcast %108 : vector<8x1xf32> to vector<8x8xf32>
    %110 = arith.subf %106, %109 : vector<8x8xf32>
    %111 = math.exp %110 : vector<8x8xf32>
    %cst_39 = arith.constant dense<0.000000e+00> : vector<8xf32>
    %112 = vector.multi_reduction <add>, %111, %cst_39 [1] : vector<8x8xf32> to vector<8xf32>
    %113 = vector.shape_cast %112 : vector<8xf32> to vector<8x1xf32>
    %114 = vector.broadcast %113 : vector<8x1xf32> to vector<8x8xf32>
    %115 = arith.divf %111, %114 : vector<8x8xf32>
    %116 = vector.extract_strided_slice %49 {offsets = [0, 24], sizes = [8, 8], strides = [1, 1]} : vector<8x32xf32> to vector<8x8xf32>
    %cst_40 = arith.constant dense<0.000000e+00> : vector<8x8xf32>
    %117 = tpu.matmul %115, %116, %cst_40 {dimension_numbers = #tpu.dot_dimension_numbers<[1], [0], [0], [1], [0, 0, 1, 1], [], []>} : vector<8x8xf32>, vector<8x8xf32>, vector<8x8xf32> -> vector<8x8xf32>
    %118 = tpu.concatenate %66, %83, %100, %117 in 1 : vector<8x8xf32>, vector<8x8xf32>, vector<8x8xf32>, vector<8x8xf32> -> vector<8x32xf32>
    %119 = vector.extract_strided_slice %44 {offsets = [8, 0], sizes = [8, 32], strides = [1, 1]} : vector<16x32xf32> to vector<8x32xf32>
    %120 = vector.extract_strided_slice %45 {offsets = [8, 0], sizes = [8, 32], strides = [1, 1]} : vector<16x32xf32> to vector<8x32xf32>
    %121 = vector.extract_strided_slice %46 {offsets = [8, 0], sizes = [8, 32], strides = [1, 1]} : vector<16x32xf32> to vector<8x32xf32>
    %122 = vector.extract_strided_slice %119 {offsets = [0, 0], sizes = [8, 8], strides = [1, 1]} : vector<8x32xf32> to vector<8x8xf32>
    %123 = vector.extract_strided_slice %120 {offsets = [0, 0], sizes = [8, 8], strides = [1, 1]} : vector<8x32xf32> to vector<8x8xf32>
    %cst_41 = arith.constant dense<0.000000e+00> : vector<8x8xf32>
    %124 = tpu.matmul %122, %123, %cst_41 {dimension_numbers = #tpu.dot_dimension_numbers<[1], [1], [0], [0], [0, 0, 1, 0], [], []>} : vector<8x8xf32>, vector<8x8xf32>, vector<8x8xf32> -> vector<8x8xf32>
    %cst_42 = arith.constant 0.353553385 : f32
    %125 = vector.broadcast %cst_42 : f32 to vector<8x8xf32>
    %126 = arith.mulf %124, %125 : vector<8x8xf32>
    %127 = arith.addf %126, %36 : vector<8x8xf32>
    %cst_43 = arith.constant dense<0xFF800000> : vector<8xf32>
    %128 = vector.multi_reduction <maximumf>, %127, %cst_43 [1] : vector<8x8xf32> to vector<8xf32>
    %129 = vector.shape_cast %128 : vector<8xf32> to vector<8x1xf32>
    %130 = vector.broadcast %129 : vector<8x1xf32> to vector<8x8xf32>
    %131 = arith.subf %127, %130 : vector<8x8xf32>
    %132 = math.exp %131 : vector<8x8xf32>
    %cst_44 = arith.constant dense<0.000000e+00> : vector<8xf32>
    %133 = vector.multi_reduction <add>, %132, %cst_44 [1] : vector<8x8xf32> to vector<8xf32>
    %134 = vector.shape_cast %133 : vector<8xf32> to vector<8x1xf32>
    %135 = vector.broadcast %134 : vector<8x1xf32> to vector<8x8xf32>
    %136 = arith.divf %132, %135 : vector<8x8xf32>
    %137 = vector.extract_strided_slice %121 {offsets = [0, 0], sizes = [8, 8], strides = [1, 1]} : vector<8x32xf32> to vector<8x8xf32>
    %cst_45 = arith.constant dense<0.000000e+00> : vector<8x8xf32>
    %138 = tpu.matmul %136, %137, %cst_45 {dimension_numbers = #tpu.dot_dimension_numbers<[1], [0], [0], [1], [0, 0, 1, 1], [], []>} : vector<8x8xf32>, vector<8x8xf32>, vector<8x8xf32> -> vector<8x8xf32>
    %139 = vector.extract_strided_slice %119 {offsets = [0, 8], sizes = [8, 8], strides = [1, 1]} : vector<8x32xf32> to vector<8x8xf32>
    %140 = vector.extract_strided_slice %120 {offsets = [0, 8], sizes = [8, 8], strides = [1, 1]} : vector<8x32xf32> to vector<8x8xf32>
    %cst_46 = arith.constant dense<0.000000e+00> : vector<8x8xf32>
    %141 = tpu.matmul %139, %140, %cst_46 {dimension_numbers = #tpu.dot_dimension_numbers<[1], [1], [0], [0], [0, 0, 1, 0], [], []>} : vector<8x8xf32>, vector<8x8xf32>, vector<8x8xf32> -> vector<8x8xf32>
    %cst_47 = arith.constant 0.353553385 : f32
    %142 = vector.broadcast %cst_47 : f32 to vector<8x8xf32>
    %143 = arith.mulf %141, %142 : vector<8x8xf32>
    %144 = arith.addf %143, %36 : vector<8x8xf32>
    %cst_48 = arith.constant dense<0xFF800000> : vector<8xf32>
    %145 = vector.multi_reduction <maximumf>, %144, %cst_48 [1] : vector<8x8xf32> to vector<8xf32>
    %146 = vector.shape_cast %145 : vector<8xf32> to vector<8x1xf32>
    %147 = vector.broadcast %146 : vector<8x1xf32> to vector<8x8xf32>
    %148 = arith.subf %144, %147 : vector<8x8xf32>
    %149 = math.exp %148 : vector<8x8xf32>
    %cst_49 = arith.constant dense<0.000000e+00> : vector<8xf32>
    %150 = vector.multi_reduction <add>, %149, %cst_49 [1] : vector<8x8xf32> to vector<8xf32>
    %151 = vector.shape_cast %150 : vector<8xf32> to vector<8x1xf32>
    %152 = vector.broadcast %151 : vector<8x1xf32> to vector<8x8xf32>
    %153 = arith.divf %149, %152 : vector<8x8xf32>
    %154 = vector.extract_strided_slice %121 {offsets = [0, 8], sizes = [8, 8], strides = [1, 1]} : vector<8x32xf32> to vector<8x8xf32>
    %cst_50 = arith.constant dense<0.000000e+00> : vector<8x8xf32>
    %155 = tpu.matmul %153, %154, %cst_50 {dimension_numbers = #tpu.dot_dimension_numbers<[1], [0], [0], [1], [0, 0, 1, 1], [], []>} : vector<8x8xf32>, vector<8x8xf32>, vector<8x8xf32> -> vector<8x8xf32>
    %156 = vector.extract_strided_slice %119 {offsets = [0, 16], sizes = [8, 8], strides = [1, 1]} : vector<8x32xf32> to vector<8x8xf32>
    %157 = vector.extract_strided_slice %120 {offsets = [0, 16], sizes = [8, 8], strides = [1, 1]} : vector<8x32xf32> to vector<8x8xf32>
    %cst_51 = arith.constant dense<0.000000e+00> : vector<8x8xf32>
    %158 = tpu.matmul %156, %157, %cst_51 {dimension_numbers = #tpu.dot_dimension_numbers<[1], [1], [0], [0], [0, 0, 1, 0], [], []>} : vector<8x8xf32>, vector<8x8xf32>, vector<8x8xf32> -> vector<8x8xf32>
    %cst_52 = arith.constant 0.353553385 : f32
    %159 = vector.broadcast %cst_52 : f32 to vector<8x8xf32>
    %160 = arith.mulf %158, %159 : vector<8x8xf32>
    %161 = arith.addf %160, %36 : vector<8x8xf32>
    %cst_53 = arith.constant dense<0xFF800000> : vector<8xf32>
    %162 = vector.multi_reduction <maximumf>, %161, %cst_53 [1] : vector<8x8xf32> to vector<8xf32>
    %163 = vector.shape_cast %162 : vector<8xf32> to vector<8x1xf32>
    %164 = vector.broadcast %163 : vector<8x1xf32> to vector<8x8xf32>
    %165 = arith.subf %161, %164 : vector<8x8xf32>
    %166 = math.exp %165 : vector<8x8xf32>
    %cst_54 = arith.constant dense<0.000000e+00> : vector<8xf32>
    %167 = vector.multi_reduction <add>, %166, %cst_54 [1] : vector<8x8xf32> to vector<8xf32>
    %168 = vector.shape_cast %167 : vector<8xf32> to vector<8x1xf32>
    %169 = vector.broadcast %168 : vector<8x1xf32> to vector<8x8xf32>
    %170 = arith.divf %166, %169 : vector<8x8xf32>
    %171 = vector.extract_strided_slice %121 {offsets = [0, 16], sizes = [8, 8], strides = [1, 1]} : vector<8x32xf32> to vector<8x8xf32>
    %cst_55 = arith.constant dense<0.000000e+00> : vector<8x8xf32>
    %172 = tpu.matmul %170, %171, %cst_55 {dimension_numbers = #tpu.dot_dimension_numbers<[1], [0], [0], [1], [0, 0, 1, 1], [], []>} : vector<8x8xf32>, vector<8x8xf32>, vector<8x8xf32> -> vector<8x8xf32>
    %173 = vector.extract_strided_slice %119 {offsets = [0, 24], sizes = [8, 8], strides = [1, 1]} : vector<8x32xf32> to vector<8x8xf32>
    %174 = vector.extract_strided_slice %120 {offsets = [0, 24], sizes = [8, 8], strides = [1, 1]} : vector<8x32xf32> to vector<8x8xf32>
    %cst_56 = arith.constant dense<0.000000e+00> : vector<8x8xf32>
    %175 = tpu.matmul %173, %174, %cst_56 {dimension_numbers = #tpu.dot_dimension_numbers<[1], [1], [0], [0], [0, 0, 1, 0], [], []>} : vector<8x8xf32>, vector<8x8xf32>, vector<8x8xf32> -> vector<8x8xf32>
    %cst_57 = arith.constant 0.353553385 : f32
    %176 = vector.broadcast %cst_57 : f32 to vector<8x8xf32>
    %177 = arith.mulf %175, %176 : vector<8x8xf32>
    %178 = arith.addf %177, %36 : vector<8x8xf32>
    %cst_58 = arith.constant dense<0xFF800000> : vector<8xf32>
    %179 = vector.multi_reduction <maximumf>, %178, %cst_58 [1] : vector<8x8xf32> to vector<8xf32>
    %180 = vector.shape_cast %179 : vector<8xf32> to vector<8x1xf32>
    %181 = vector.broadcast %180 : vector<8x1xf32> to vector<8x8xf32>
    %182 = arith.subf %178, %181 : vector<8x8xf32>
    %183 = math.exp %182 : vector<8x8xf32>
    %cst_59 = arith.constant dense<0.000000e+00> : vector<8xf32>
    %184 = vector.multi_reduction <add>, %183, %cst_59 [1] : vector<8x8xf32> to vector<8xf32>
    %185 = vector.shape_cast %184 : vector<8xf32> to vector<8x1xf32>
    %186 = vector.broadcast %185 : vector<8x1xf32> to vector<8x8xf32>
    %187 = arith.divf %183, %186 : vector<8x8xf32>
    %188 = vector.extract_strided_slice %121 {offsets = [0, 24], sizes = [8, 8], strides = [1, 1]} : vector<8x32xf32> to vector<8x8xf32>
    %cst_60 = arith.constant dense<0.000000e+00> : vector<8x8xf32>
    %189 = tpu.matmul %187, %188, %cst_60 {dimension_numbers = #tpu.dot_dimension_numbers<[1], [0], [0], [1], [0, 0, 1, 1], [], []>} : vector<8x8xf32>, vector<8x8xf32>, vector<8x8xf32> -> vector<8x8xf32>
    %190 = tpu.concatenate %138, %155, %172, %189 in 1 : vector<8x8xf32>, vector<8x8xf32>, vector<8x8xf32>, vector<8x8xf32> -> vector<8x32xf32>
    %191 = tpu.concatenate %118, %190 in 0 : vector<8x32xf32>, vector<8x32xf32> -> vector<16x32xf32>
    %c0_61 = arith.constant 0 : index
    %c0_62 = arith.constant 0 : index
    %c0_63 = arith.constant 0 : index
    %192 = vector.load %arg8[%c0_61, %c0_62, %c0_63] : memref<2x32x32xf32, #tpu.memory_space<vmem>>, vector<1x32x32xf32>
    %193 = vector.shape_cast %192 : vector<1x32x32xf32> to vector<32x32xf32>
    %cst_64 = arith.constant dense<0.000000e+00> : vector<16x32xf32>
    %194 = tpu.matmul %191, %193, %cst_64 {dimension_numbers = #tpu.dot_dimension_numbers<[1], [0], [0], [1], [0, 0, 1, 1], [], []>} : vector<16x32xf32>, vector<32x32xf32>, vector<16x32xf32> -> vector<16x32xf32>
    %c0_65 = arith.constant 0 : index
    %c0_66 = arith.constant 0 : index
    %c0_67 = arith.constant 0 : index
    %195 = vector.load %arg9[%c0_65, %c0_66, %c0_67] : memref<2x1x32xf32, #tpu.memory_space<vmem>>, vector<1x1x32xf32>
    %196 = vector.shape_cast %195 : vector<1x1x32xf32> to vector<1x32xf32>
    %197 = vector.broadcast %196 : vector<1x32xf32> to vector<16x32xf32>
    %198 = arith.addf %194, %197 : vector<16x32xf32>
    %199 = arith.addf %198, %24 : vector<16x32xf32>
    %c0_68 = arith.constant 0 : index
    %c0_69 = arith.constant 0 : index
    %c0_70 = arith.constant 0 : index
    %200 = vector.load %arg10[%c0_68, %c0_69, %c0_70] : memref<2x1x32xf32, #tpu.memory_space<vmem>>, vector<1x1x32xf32>
    %201 = vector.shape_cast %200 : vector<1x1x32xf32> to vector<1x32xf32>
    %c0_71 = arith.constant 0 : index
    %c0_72 = arith.constant 0 : index
    %c0_73 = arith.constant 0 : index
    %202 = vector.load %arg11[%c0_71, %c0_72, %c0_73] : memref<2x1x32xf32, #tpu.memory_space<vmem>>, vector<1x1x32xf32>
    %203 = vector.shape_cast %202 : vector<1x1x32xf32> to vector<1x32xf32>
    %cst_74 = arith.constant dense<0.000000e+00> : vector<16xf32>
    %204 = vector.multi_reduction <add>, %199, %cst_74 [1] : vector<16x32xf32> to vector<16xf32>
    %205 = vector.shape_cast %204 : vector<16xf32> to vector<16x1xf32>
    %cst_75 = arith.constant 3.200000e+01 : f32
    %206 = vector.broadcast %cst_75 : f32 to vector<16x1xf32>
    %207 = arith.divf %205, %206 : vector<16x1xf32>
    %208 = vector.broadcast %207 : vector<16x1xf32> to vector<16x32xf32>
    %209 = arith.subf %199, %208 : vector<16x32xf32>
    %210 = arith.mulf %209, %209 : vector<16x32xf32>
    %cst_76 = arith.constant dense<0.000000e+00> : vector<16xf32>
    %211 = vector.multi_reduction <add>, %210, %cst_76 [1] : vector<16x32xf32> to vector<16xf32>
    %212 = vector.shape_cast %211 : vector<16xf32> to vector<16x1xf32>
    %cst_77 = arith.constant 3.200000e+01 : f32
    %213 = vector.broadcast %cst_77 : f32 to vector<16x1xf32>
    %214 = arith.divf %212, %213 : vector<16x1xf32>
    %215 = vector.broadcast %207 : vector<16x1xf32> to vector<16x32xf32>
    %216 = arith.subf %199, %215 : vector<16x32xf32>
    %cst_78 = arith.constant 9.99999997E-7 : f32
    %217 = vector.broadcast %cst_78 : f32 to vector<16x1xf32>
    %218 = arith.addf %214, %217 : vector<16x1xf32>
    %219 = math.rsqrt %218 : vector<16x1xf32>
    %220 = vector.broadcast %219 : vector<16x1xf32> to vector<16x32xf32>
    %221 = arith.mulf %216, %220 : vector<16x32xf32>
    %222 = vector.broadcast %201 : vector<1x32xf32> to vector<16x32xf32>
    %223 = arith.mulf %221, %222 : vector<16x32xf32>
    %224 = vector.broadcast %203 : vector<1x32xf32> to vector<16x32xf32>
    %225 = arith.addf %223, %224 : vector<16x32xf32>
    %c0_79 = arith.constant 0 : index
    %c0_80 = arith.constant 0 : index
    %c0_81 = arith.constant 0 : index
    %226 = vector.load %arg12[%c0_79, %c0_80, %c0_81] : memref<2x32x64xf32, #tpu.memory_space<vmem>>, vector<1x32x64xf32>
    %227 = vector.shape_cast %226 : vector<1x32x64xf32> to vector<32x64xf32>
    %cst_82 = arith.constant dense<0.000000e+00> : vector<16x64xf32>
    %228 = tpu.matmul %225, %227, %cst_82 {dimension_numbers = #tpu.dot_dimension_numbers<[1], [0], [0], [1], [0, 0, 1, 1], [], []>} : vector<16x32xf32>, vector<32x64xf32>, vector<16x64xf32> -> vector<16x64xf32>
    %c0_83 = arith.constant 0 : index
    %c0_84 = arith.constant 0 : index
    %c0_85 = arith.constant 0 : index
    %229 = vector.load %arg13[%c0_83, %c0_84, %c0_85] : memref<2x1x64xf32, #tpu.memory_space<vmem>>, vector<1x1x64xf32>
    %230 = vector.shape_cast %229 : vector<1x1x64xf32> to vector<1x64xf32>
    %231 = vector.broadcast %230 : vector<1x64xf32> to vector<16x64xf32>
    %232 = arith.addf %228, %231 : vector<16x64xf32>
    %cst_86 = arith.constant 5.000000e-01 : f32
    %233 = vector.broadcast %cst_86 : f32 to vector<16x64xf32>
    %234 = arith.mulf %233, %232 : vector<16x64xf32>
    %cst_87 = arith.constant 4.471500e-02 : f32
    %235 = vector.broadcast %cst_87 : f32 to vector<16x64xf32>
    %236 = arith.mulf %235, %232 : vector<16x64xf32>
    %237 = arith.mulf %236, %232 : vector<16x64xf32>
    %238 = arith.mulf %237, %232 : vector<16x64xf32>
    %239 = arith.addf %232, %238 : vector<16x64xf32>
    %cst_88 = arith.constant 0.797884583 : f32
    %240 = vector.broadcast %cst_88 : f32 to vector<16x64xf32>
    %241 = arith.mulf %240, %239 : vector<16x64xf32>
    %242 = math.tanh %241 : vector<16x64xf32>
    %cst_89 = arith.constant 1.000000e+00 : f32
    %243 = vector.broadcast %cst_89 : f32 to vector<16x64xf32>
    %244 = arith.addf %243, %242 : vector<16x64xf32>
    %245 = arith.mulf %234, %244 : vector<16x64xf32>
    %c0_90 = arith.constant 0 : index
    %c0_91 = arith.constant 0 : index
    %c0_92 = arith.constant 0 : index
    %246 = vector.load %arg14[%c0_90, %c0_91, %c0_92] : memref<2x64x32xf32, #tpu.memory_space<vmem>>, vector<1x64x32xf32>
    %247 = vector.shape_cast %246 : vector<1x64x32xf32> to vector<64x32xf32>
    %cst_93 = arith.constant dense<0.000000e+00> : vector<16x32xf32>
    %248 = tpu.matmul %245, %247, %cst_93 {dimension_numbers = #tpu.dot_dimension_numbers<[1], [0], [0], [1], [0, 0, 1, 1], [], []>} : vector<16x64xf32>, vector<64x32xf32>, vector<16x32xf32> -> vector<16x32xf32>
    %c0_94 = arith.constant 0 : index
    %c0_95 = arith.constant 0 : index
    %c0_96 = arith.constant 0 : index
    %249 = vector.load %arg15[%c0_94, %c0_95, %c0_96] : memref<2x1x32xf32, #tpu.memory_space<vmem>>, vector<1x1x32xf32>
    %250 = vector.shape_cast %249 : vector<1x1x32xf32> to vector<1x32xf32>
    %251 = vector.broadcast %250 : vector<1x32xf32> to vector<16x32xf32>
    %252 = arith.addf %248, %251 : vector<16x32xf32>
    %253 = arith.addf %252, %225 : vector<16x32xf32>
    %c0_97 = arith.constant 0 : index
    %c0_98 = arith.constant 0 : index
    %c0_99 = arith.constant 0 : index
    %254 = vector.load %arg16[%c0_97, %c0_98, %c0_99] : memref<2x1x32xf32, #tpu.memory_space<vmem>>, vector<1x1x32xf32>
    %255 = vector.shape_cast %254 : vector<1x1x32xf32> to vector<1x32xf32>
    %c0_100 = arith.constant 0 : index
    %c0_101 = arith.constant 0 : index
    %c0_102 = arith.constant 0 : index
    %256 = vector.load %arg17[%c0_100, %c0_101, %c0_102] : memref<2x1x32xf32, #tpu.memory_space<vmem>>, vector<1x1x32xf32>
    %257 = vector.shape_cast %256 : vector<1x1x32xf32> to vector<1x32xf32>
    %cst_103 = arith.constant dense<0.000000e+00> : vector<16xf32>
    %258 = vector.multi_reduction <add>, %253, %cst_103 [1] : vector<16x32xf32> to vector<16xf32>
    %259 = vector.shape_cast %258 : vector<16xf32> to vector<16x1xf32>
    %cst_104 = arith.constant 3.200000e+01 : f32
    %260 = vector.broadcast %cst_104 : f32 to vector<16x1xf32>
    %261 = arith.divf %259, %260 : vector<16x1xf32>
    %262 = vector.broadcast %261 : vector<16x1xf32> to vector<16x32xf32>
    %263 = arith.subf %253, %262 : vector<16x32xf32>
    %264 = arith.mulf %263, %263 : vector<16x32xf32>
    %cst_105 = arith.constant dense<0.000000e+00> : vector<16xf32>
    %265 = vector.multi_reduction <add>, %264, %cst_105 [1] : vector<16x32xf32> to vector<16xf32>
    %266 = vector.shape_cast %265 : vector<16xf32> to vector<16x1xf32>
    %cst_106 = arith.constant 3.200000e+01 : f32
    %267 = vector.broadcast %cst_106 : f32 to vector<16x1xf32>
    %268 = arith.divf %266, %267 : vector<16x1xf32>
    %269 = vector.broadcast %261 : vector<16x1xf32> to vector<16x32xf32>
    %270 = arith.subf %253, %269 : vector<16x32xf32>
    %cst_107 = arith.constant 9.99999997E-7 : f32
    %271 = vector.broadcast %cst_107 : f32 to vector<16x1xf32>
    %272 = arith.addf %268, %271 : vector<16x1xf32>
    %273 = math.rsqrt %272 : vector<16x1xf32>
    %274 = vector.broadcast %273 : vector<16x1xf32> to vector<16x32xf32>
    %275 = arith.mulf %270, %274 : vector<16x32xf32>
    %276 = vector.broadcast %255 : vector<1x32xf32> to vector<16x32xf32>
    %277 = arith.mulf %275, %276 : vector<16x32xf32>
    %278 = vector.broadcast %257 : vector<1x32xf32> to vector<16x32xf32>
    %279 = arith.addf %277, %278 : vector<16x32xf32>
    %c1 = arith.constant 1 : index
    %c0_108 = arith.constant 0 : index
    %c0_109 = arith.constant 0 : index
    %280 = vector.load %arg6[%c1, %c0_108, %c0_109] : memref<2x32x96xf32, #tpu.memory_space<vmem>>, vector<1x32x96xf32>
    %281 = vector.shape_cast %280 : vector<1x32x96xf32> to vector<32x96xf32>
    %cst_110 = arith.constant dense<0.000000e+00> : vector<16x96xf32>
    %282 = tpu.matmul %279, %281, %cst_110 {dimension_numbers = #tpu.dot_dimension_numbers<[1], [0], [0], [1], [0, 0, 1, 1], [], []>} : vector<16x32xf32>, vector<32x96xf32>, vector<16x96xf32> -> vector<16x96xf32>
    %c1_111 = arith.constant 1 : index
    %c0_112 = arith.constant 0 : index
    %c0_113 = arith.constant 0 : index
    %283 = vector.load %arg7[%c1_111, %c0_112, %c0_113] : memref<2x1x96xf32, #tpu.memory_space<vmem>>, vector<1x1x96xf32>
    %284 = vector.shape_cast %283 : vector<1x1x96xf32> to vector<1x96xf32>
    %285 = vector.broadcast %284 : vector<1x96xf32> to vector<16x96xf32>
    %286 = arith.addf %282, %285 : vector<16x96xf32>
    %287 = vector.extract_strided_slice %286 {offsets = [0, 0], sizes = [16, 32], strides = [1, 1]} : vector<16x96xf32> to vector<16x32xf32>
    %288 = vector.extract_strided_slice %286 {offsets = [0, 32], sizes = [16, 32], strides = [1, 1]} : vector<16x96xf32> to vector<16x32xf32>
    %289 = vector.extract_strided_slice %286 {offsets = [0, 64], sizes = [16, 32], strides = [1, 1]} : vector<16x96xf32> to vector<16x32xf32>
    %290 = vector.extract_strided_slice %287 {offsets = [0, 0], sizes = [8, 32], strides = [1, 1]} : vector<16x32xf32> to vector<8x32xf32>
    %291 = vector.extract_strided_slice %288 {offsets = [0, 0], sizes = [8, 32], strides = [1, 1]} : vector<16x32xf32> to vector<8x32xf32>
    %292 = vector.extract_strided_slice %289 {offsets = [0, 0], sizes = [8, 32], strides = [1, 1]} : vector<16x32xf32> to vector<8x32xf32>
    %293 = vector.extract_strided_slice %290 {offsets = [0, 0], sizes = [8, 8], strides = [1, 1]} : vector<8x32xf32> to vector<8x8xf32>
    %294 = vector.extract_strided_slice %291 {offsets = [0, 0], sizes = [8, 8], strides = [1, 1]} : vector<8x32xf32> to vector<8x8xf32>
    %cst_114 = arith.constant dense<0.000000e+00> : vector<8x8xf32>
    %295 = tpu.matmul %293, %294, %cst_114 {dimension_numbers = #tpu.dot_dimension_numbers<[1], [1], [0], [0], [0, 0, 1, 0], [], []>} : vector<8x8xf32>, vector<8x8xf32>, vector<8x8xf32> -> vector<8x8xf32>
    %cst_115 = arith.constant 0.353553385 : f32
    %296 = vector.broadcast %cst_115 : f32 to vector<8x8xf32>
    %297 = arith.mulf %295, %296 : vector<8x8xf32>
    %298 = arith.addf %297, %33 : vector<8x8xf32>
    %cst_116 = arith.constant dense<0xFF800000> : vector<8xf32>
    %299 = vector.multi_reduction <maximumf>, %298, %cst_116 [1] : vector<8x8xf32> to vector<8xf32>
    %300 = vector.shape_cast %299 : vector<8xf32> to vector<8x1xf32>
    %301 = vector.broadcast %300 : vector<8x1xf32> to vector<8x8xf32>
    %302 = arith.subf %298, %301 : vector<8x8xf32>
    %303 = math.exp %302 : vector<8x8xf32>
    %cst_117 = arith.constant dense<0.000000e+00> : vector<8xf32>
    %304 = vector.multi_reduction <add>, %303, %cst_117 [1] : vector<8x8xf32> to vector<8xf32>
    %305 = vector.shape_cast %304 : vector<8xf32> to vector<8x1xf32>
    %306 = vector.broadcast %305 : vector<8x1xf32> to vector<8x8xf32>
    %307 = arith.divf %303, %306 : vector<8x8xf32>
    %308 = vector.extract_strided_slice %292 {offsets = [0, 0], sizes = [8, 8], strides = [1, 1]} : vector<8x32xf32> to vector<8x8xf32>
    %cst_118 = arith.constant dense<0.000000e+00> : vector<8x8xf32>
    %309 = tpu.matmul %307, %308, %cst_118 {dimension_numbers = #tpu.dot_dimension_numbers<[1], [0], [0], [1], [0, 0, 1, 1], [], []>} : vector<8x8xf32>, vector<8x8xf32>, vector<8x8xf32> -> vector<8x8xf32>
    %310 = vector.extract_strided_slice %290 {offsets = [0, 8], sizes = [8, 8], strides = [1, 1]} : vector<8x32xf32> to vector<8x8xf32>
    %311 = vector.extract_strided_slice %291 {offsets = [0, 8], sizes = [8, 8], strides = [1, 1]} : vector<8x32xf32> to vector<8x8xf32>
    %cst_119 = arith.constant dense<0.000000e+00> : vector<8x8xf32>
    %312 = tpu.matmul %310, %311, %cst_119 {dimension_numbers = #tpu.dot_dimension_numbers<[1], [1], [0], [0], [0, 0, 1, 0], [], []>} : vector<8x8xf32>, vector<8x8xf32>, vector<8x8xf32> -> vector<8x8xf32>
    %cst_120 = arith.constant 0.353553385 : f32
    %313 = vector.broadcast %cst_120 : f32 to vector<8x8xf32>
    %314 = arith.mulf %312, %313 : vector<8x8xf32>
    %315 = arith.addf %314, %33 : vector<8x8xf32>
    %cst_121 = arith.constant dense<0xFF800000> : vector<8xf32>
    %316 = vector.multi_reduction <maximumf>, %315, %cst_121 [1] : vector<8x8xf32> to vector<8xf32>
    %317 = vector.shape_cast %316 : vector<8xf32> to vector<8x1xf32>
    %318 = vector.broadcast %317 : vector<8x1xf32> to vector<8x8xf32>
    %319 = arith.subf %315, %318 : vector<8x8xf32>
    %320 = math.exp %319 : vector<8x8xf32>
    %cst_122 = arith.constant dense<0.000000e+00> : vector<8xf32>
    %321 = vector.multi_reduction <add>, %320, %cst_122 [1] : vector<8x8xf32> to vector<8xf32>
    %322 = vector.shape_cast %321 : vector<8xf32> to vector<8x1xf32>
    %323 = vector.broadcast %322 : vector<8x1xf32> to vector<8x8xf32>
    %324 = arith.divf %320, %323 : vector<8x8xf32>
    %325 = vector.extract_strided_slice %292 {offsets = [0, 8], sizes = [8, 8], strides = [1, 1]} : vector<8x32xf32> to vector<8x8xf32>
    %cst_123 = arith.constant dense<0.000000e+00> : vector<8x8xf32>
    %326 = tpu.matmul %324, %325, %cst_123 {dimension_numbers = #tpu.dot_dimension_numbers<[1], [0], [0], [1], [0, 0, 1, 1], [], []>} : vector<8x8xf32>, vector<8x8xf32>, vector<8x8xf32> -> vector<8x8xf32>
    %327 = vector.extract_strided_slice %290 {offsets = [0, 16], sizes = [8, 8], strides = [1, 1]} : vector<8x32xf32> to vector<8x8xf32>
    %328 = vector.extract_strided_slice %291 {offsets = [0, 16], sizes = [8, 8], strides = [1, 1]} : vector<8x32xf32> to vector<8x8xf32>
    %cst_124 = arith.constant dense<0.000000e+00> : vector<8x8xf32>
    %329 = tpu.matmul %327, %328, %cst_124 {dimension_numbers = #tpu.dot_dimension_numbers<[1], [1], [0], [0], [0, 0, 1, 0], [], []>} : vector<8x8xf32>, vector<8x8xf32>, vector<8x8xf32> -> vector<8x8xf32>
    %cst_125 = arith.constant 0.353553385 : f32
    %330 = vector.broadcast %cst_125 : f32 to vector<8x8xf32>
    %331 = arith.mulf %329, %330 : vector<8x8xf32>
    %332 = arith.addf %331, %33 : vector<8x8xf32>
    %cst_126 = arith.constant dense<0xFF800000> : vector<8xf32>
    %333 = vector.multi_reduction <maximumf>, %332, %cst_126 [1] : vector<8x8xf32> to vector<8xf32>
    %334 = vector.shape_cast %333 : vector<8xf32> to vector<8x1xf32>
    %335 = vector.broadcast %334 : vector<8x1xf32> to vector<8x8xf32>
    %336 = arith.subf %332, %335 : vector<8x8xf32>
    %337 = math.exp %336 : vector<8x8xf32>
    %cst_127 = arith.constant dense<0.000000e+00> : vector<8xf32>
    %338 = vector.multi_reduction <add>, %337, %cst_127 [1] : vector<8x8xf32> to vector<8xf32>
    %339 = vector.shape_cast %338 : vector<8xf32> to vector<8x1xf32>
    %340 = vector.broadcast %339 : vector<8x1xf32> to vector<8x8xf32>
    %341 = arith.divf %337, %340 : vector<8x8xf32>
    %342 = vector.extract_strided_slice %292 {offsets = [0, 16], sizes = [8, 8], strides = [1, 1]} : vector<8x32xf32> to vector<8x8xf32>
    %cst_128 = arith.constant dense<0.000000e+00> : vector<8x8xf32>
    %343 = tpu.matmul %341, %342, %cst_128 {dimension_numbers = #tpu.dot_dimension_numbers<[1], [0], [0], [1], [0, 0, 1, 1], [], []>} : vector<8x8xf32>, vector<8x8xf32>, vector<8x8xf32> -> vector<8x8xf32>
    %344 = vector.extract_strided_slice %290 {offsets = [0, 24], sizes = [8, 8], strides = [1, 1]} : vector<8x32xf32> to vector<8x8xf32>
    %345 = vector.extract_strided_slice %291 {offsets = [0, 24], sizes = [8, 8], strides = [1, 1]} : vector<8x32xf32> to vector<8x8xf32>
    %cst_129 = arith.constant dense<0.000000e+00> : vector<8x8xf32>
    %346 = tpu.matmul %344, %345, %cst_129 {dimension_numbers = #tpu.dot_dimension_numbers<[1], [1], [0], [0], [0, 0, 1, 0], [], []>} : vector<8x8xf32>, vector<8x8xf32>, vector<8x8xf32> -> vector<8x8xf32>
    %cst_130 = arith.constant 0.353553385 : f32
    %347 = vector.broadcast %cst_130 : f32 to vector<8x8xf32>
    %348 = arith.mulf %346, %347 : vector<8x8xf32>
    %349 = arith.addf %348, %33 : vector<8x8xf32>
    %cst_131 = arith.constant dense<0xFF800000> : vector<8xf32>
    %350 = vector.multi_reduction <maximumf>, %349, %cst_131 [1] : vector<8x8xf32> to vector<8xf32>
    %351 = vector.shape_cast %350 : vector<8xf32> to vector<8x1xf32>
    %352 = vector.broadcast %351 : vector<8x1xf32> to vector<8x8xf32>
    %353 = arith.subf %349, %352 : vector<8x8xf32>
    %354 = math.exp %353 : vector<8x8xf32>
    %cst_132 = arith.constant dense<0.000000e+00> : vector<8xf32>
    %355 = vector.multi_reduction <add>, %354, %cst_132 [1] : vector<8x8xf32> to vector<8xf32>
    %356 = vector.shape_cast %355 : vector<8xf32> to vector<8x1xf32>
    %357 = vector.broadcast %356 : vector<8x1xf32> to vector<8x8xf32>
    %358 = arith.divf %354, %357 : vector<8x8xf32>
    %359 = vector.extract_strided_slice %292 {offsets = [0, 24], sizes = [8, 8], strides = [1, 1]} : vector<8x32xf32> to vector<8x8xf32>
    %cst_133 = arith.constant dense<0.000000e+00> : vector<8x8xf32>
    %360 = tpu.matmul %358, %359, %cst_133 {dimension_numbers = #tpu.dot_dimension_numbers<[1], [0], [0], [1], [0, 0, 1, 1], [], []>} : vector<8x8xf32>, vector<8x8xf32>, vector<8x8xf32> -> vector<8x8xf32>
    %361 = tpu.concatenate %309, %326, %343, %360 in 1 : vector<8x8xf32>, vector<8x8xf32>, vector<8x8xf32>, vector<8x8xf32> -> vector<8x32xf32>
    %362 = vector.extract_strided_slice %287 {offsets = [8, 0], sizes = [8, 32], strides = [1, 1]} : vector<16x32xf32> to vector<8x32xf32>
    %363 = vector.extract_strided_slice %288 {offsets = [8, 0], sizes = [8, 32], strides = [1, 1]} : vector<16x32xf32> to vector<8x32xf32>
    %364 = vector.extract_strided_slice %289 {offsets = [8, 0], sizes = [8, 32], strides = [1, 1]} : vector<16x32xf32> to vector<8x32xf32>
    %365 = vector.extract_strided_slice %362 {offsets = [0, 0], sizes = [8, 8], strides = [1, 1]} : vector<8x32xf32> to vector<8x8xf32>
    %366 = vector.extract_strided_slice %363 {offsets = [0, 0], sizes = [8, 8], strides = [1, 1]} : vector<8x32xf32> to vector<8x8xf32>
    %cst_134 = arith.constant dense<0.000000e+00> : vector<8x8xf32>
    %367 = tpu.matmul %365, %366, %cst_134 {dimension_numbers = #tpu.dot_dimension_numbers<[1], [1], [0], [0], [0, 0, 1, 0], [], []>} : vector<8x8xf32>, vector<8x8xf32>, vector<8x8xf32> -> vector<8x8xf32>
    %cst_135 = arith.constant 0.353553385 : f32
    %368 = vector.broadcast %cst_135 : f32 to vector<8x8xf32>
    %369 = arith.mulf %367, %368 : vector<8x8xf32>
    %370 = arith.addf %369, %36 : vector<8x8xf32>
    %cst_136 = arith.constant dense<0xFF800000> : vector<8xf32>
    %371 = vector.multi_reduction <maximumf>, %370, %cst_136 [1] : vector<8x8xf32> to vector<8xf32>
    %372 = vector.shape_cast %371 : vector<8xf32> to vector<8x1xf32>
    %373 = vector.broadcast %372 : vector<8x1xf32> to vector<8x8xf32>
    %374 = arith.subf %370, %373 : vector<8x8xf32>
    %375 = math.exp %374 : vector<8x8xf32>
    %cst_137 = arith.constant dense<0.000000e+00> : vector<8xf32>
    %376 = vector.multi_reduction <add>, %375, %cst_137 [1] : vector<8x8xf32> to vector<8xf32>
    %377 = vector.shape_cast %376 : vector<8xf32> to vector<8x1xf32>
    %378 = vector.broadcast %377 : vector<8x1xf32> to vector<8x8xf32>
    %379 = arith.divf %375, %378 : vector<8x8xf32>
    %380 = vector.extract_strided_slice %364 {offsets = [0, 0], sizes = [8, 8], strides = [1, 1]} : vector<8x32xf32> to vector<8x8xf32>
    %cst_138 = arith.constant dense<0.000000e+00> : vector<8x8xf32>
    %381 = tpu.matmul %379, %380, %cst_138 {dimension_numbers = #tpu.dot_dimension_numbers<[1], [0], [0], [1], [0, 0, 1, 1], [], []>} : vector<8x8xf32>, vector<8x8xf32>, vector<8x8xf32> -> vector<8x8xf32>
    %382 = vector.extract_strided_slice %362 {offsets = [0, 8], sizes = [8, 8], strides = [1, 1]} : vector<8x32xf32> to vector<8x8xf32>
    %383 = vector.extract_strided_slice %363 {offsets = [0, 8], sizes = [8, 8], strides = [1, 1]} : vector<8x32xf32> to vector<8x8xf32>
    %cst_139 = arith.constant dense<0.000000e+00> : vector<8x8xf32>
    %384 = tpu.matmul %382, %383, %cst_139 {dimension_numbers = #tpu.dot_dimension_numbers<[1], [1], [0], [0], [0, 0, 1, 0], [], []>} : vector<8x8xf32>, vector<8x8xf32>, vector<8x8xf32> -> vector<8x8xf32>
    %cst_140 = arith.constant 0.353553385 : f32
    %385 = vector.broadcast %cst_140 : f32 to vector<8x8xf32>
    %386 = arith.mulf %384, %385 : vector<8x8xf32>
    %387 = arith.addf %386, %36 : vector<8x8xf32>
    %cst_141 = arith.constant dense<0xFF800000> : vector<8xf32>
    %388 = vector.multi_reduction <maximumf>, %387, %cst_141 [1] : vector<8x8xf32> to vector<8xf32>
    %389 = vector.shape_cast %388 : vector<8xf32> to vector<8x1xf32>
    %390 = vector.broadcast %389 : vector<8x1xf32> to vector<8x8xf32>
    %391 = arith.subf %387, %390 : vector<8x8xf32>
    %392 = math.exp %391 : vector<8x8xf32>
    %cst_142 = arith.constant dense<0.000000e+00> : vector<8xf32>
    %393 = vector.multi_reduction <add>, %392, %cst_142 [1] : vector<8x8xf32> to vector<8xf32>
    %394 = vector.shape_cast %393 : vector<8xf32> to vector<8x1xf32>
    %395 = vector.broadcast %394 : vector<8x1xf32> to vector<8x8xf32>
    %396 = arith.divf %392, %395 : vector<8x8xf32>
    %397 = vector.extract_strided_slice %364 {offsets = [0, 8], sizes = [8, 8], strides = [1, 1]} : vector<8x32xf32> to vector<8x8xf32>
    %cst_143 = arith.constant dense<0.000000e+00> : vector<8x8xf32>
    %398 = tpu.matmul %396, %397, %cst_143 {dimension_numbers = #tpu.dot_dimension_numbers<[1], [0], [0], [1], [0, 0, 1, 1], [], []>} : vector<8x8xf32>, vector<8x8xf32>, vector<8x8xf32> -> vector<8x8xf32>
    %399 = vector.extract_strided_slice %362 {offsets = [0, 16], sizes = [8, 8], strides = [1, 1]} : vector<8x32xf32> to vector<8x8xf32>
    %400 = vector.extract_strided_slice %363 {offsets = [0, 16], sizes = [8, 8], strides = [1, 1]} : vector<8x32xf32> to vector<8x8xf32>
    %cst_144 = arith.constant dense<0.000000e+00> : vector<8x8xf32>
    %401 = tpu.matmul %399, %400, %cst_144 {dimension_numbers = #tpu.dot_dimension_numbers<[1], [1], [0], [0], [0, 0, 1, 0], [], []>} : vector<8x8xf32>, vector<8x8xf32>, vector<8x8xf32> -> vector<8x8xf32>
    %cst_145 = arith.constant 0.353553385 : f32
    %402 = vector.broadcast %cst_145 : f32 to vector<8x8xf32>
    %403 = arith.mulf %401, %402 : vector<8x8xf32>
    %404 = arith.addf %403, %36 : vector<8x8xf32>
    %cst_146 = arith.constant dense<0xFF800000> : vector<8xf32>
    %405 = vector.multi_reduction <maximumf>, %404, %cst_146 [1] : vector<8x8xf32> to vector<8xf32>
    %406 = vector.shape_cast %405 : vector<8xf32> to vector<8x1xf32>
    %407 = vector.broadcast %406 : vector<8x1xf32> to vector<8x8xf32>
    %408 = arith.subf %404, %407 : vector<8x8xf32>
    %409 = math.exp %408 : vector<8x8xf32>
    %cst_147 = arith.constant dense<0.000000e+00> : vector<8xf32>
    %410 = vector.multi_reduction <add>, %409, %cst_147 [1] : vector<8x8xf32> to vector<8xf32>
    %411 = vector.shape_cast %410 : vector<8xf32> to vector<8x1xf32>
    %412 = vector.broadcast %411 : vector<8x1xf32> to vector<8x8xf32>
    %413 = arith.divf %409, %412 : vector<8x8xf32>
    %414 = vector.extract_strided_slice %364 {offsets = [0, 16], sizes = [8, 8], strides = [1, 1]} : vector<8x32xf32> to vector<8x8xf32>
    %cst_148 = arith.constant dense<0.000000e+00> : vector<8x8xf32>
    %415 = tpu.matmul %413, %414, %cst_148 {dimension_numbers = #tpu.dot_dimension_numbers<[1], [0], [0], [1], [0, 0, 1, 1], [], []>} : vector<8x8xf32>, vector<8x8xf32>, vector<8x8xf32> -> vector<8x8xf32>
    %416 = vector.extract_strided_slice %362 {offsets = [0, 24], sizes = [8, 8], strides = [1, 1]} : vector<8x32xf32> to vector<8x8xf32>
    %417 = vector.extract_strided_slice %363 {offsets = [0, 24], sizes = [8, 8], strides = [1, 1]} : vector<8x32xf32> to vector<8x8xf32>
    %cst_149 = arith.constant dense<0.000000e+00> : vector<8x8xf32>
    %418 = tpu.matmul %416, %417, %cst_149 {dimension_numbers = #tpu.dot_dimension_numbers<[1], [1], [0], [0], [0, 0, 1, 0], [], []>} : vector<8x8xf32>, vector<8x8xf32>, vector<8x8xf32> -> vector<8x8xf32>
    %cst_150 = arith.constant 0.353553385 : f32
    %419 = vector.broadcast %cst_150 : f32 to vector<8x8xf32>
    %420 = arith.mulf %418, %419 : vector<8x8xf32>
    %421 = arith.addf %420, %36 : vector<8x8xf32>
    %cst_151 = arith.constant dense<0xFF800000> : vector<8xf32>
    %422 = vector.multi_reduction <maximumf>, %421, %cst_151 [1] : vector<8x8xf32> to vector<8xf32>
    %423 = vector.shape_cast %422 : vector<8xf32> to vector<8x1xf32>
    %424 = vector.broadcast %423 : vector<8x1xf32> to vector<8x8xf32>
    %425 = arith.subf %421, %424 : vector<8x8xf32>
    %426 = math.exp %425 : vector<8x8xf32>
    %cst_152 = arith.constant dense<0.000000e+00> : vector<8xf32>
    %427 = vector.multi_reduction <add>, %426, %cst_152 [1] : vector<8x8xf32> to vector<8xf32>
    %428 = vector.shape_cast %427 : vector<8xf32> to vector<8x1xf32>
    %429 = vector.broadcast %428 : vector<8x1xf32> to vector<8x8xf32>
    %430 = arith.divf %426, %429 : vector<8x8xf32>
    %431 = vector.extract_strided_slice %364 {offsets = [0, 24], sizes = [8, 8], strides = [1, 1]} : vector<8x32xf32> to vector<8x8xf32>
    %cst_153 = arith.constant dense<0.000000e+00> : vector<8x8xf32>
    %432 = tpu.matmul %430, %431, %cst_153 {dimension_numbers = #tpu.dot_dimension_numbers<[1], [0], [0], [1], [0, 0, 1, 1], [], []>} : vector<8x8xf32>, vector<8x8xf32>, vector<8x8xf32> -> vector<8x8xf32>
    %433 = tpu.concatenate %381, %398, %415, %432 in 1 : vector<8x8xf32>, vector<8x8xf32>, vector<8x8xf32>, vector<8x8xf32> -> vector<8x32xf32>
    %434 = tpu.concatenate %361, %433 in 0 : vector<8x32xf32>, vector<8x32xf32> -> vector<16x32xf32>
    %c1_154 = arith.constant 1 : index
    %c0_155 = arith.constant 0 : index
    %c0_156 = arith.constant 0 : index
    %435 = vector.load %arg8[%c1_154, %c0_155, %c0_156] : memref<2x32x32xf32, #tpu.memory_space<vmem>>, vector<1x32x32xf32>
    %436 = vector.shape_cast %435 : vector<1x32x32xf32> to vector<32x32xf32>
    %cst_157 = arith.constant dense<0.000000e+00> : vector<16x32xf32>
    %437 = tpu.matmul %434, %436, %cst_157 {dimension_numbers = #tpu.dot_dimension_numbers<[1], [0], [0], [1], [0, 0, 1, 1], [], []>} : vector<16x32xf32>, vector<32x32xf32>, vector<16x32xf32> -> vector<16x32xf32>
    %c1_158 = arith.constant 1 : index
    %c0_159 = arith.constant 0 : index
    %c0_160 = arith.constant 0 : index
    %438 = vector.load %arg9[%c1_158, %c0_159, %c0_160] : memref<2x1x32xf32, #tpu.memory_space<vmem>>, vector<1x1x32xf32>
    %439 = vector.shape_cast %438 : vector<1x1x32xf32> to vector<1x32xf32>
    %440 = vector.broadcast %439 : vector<1x32xf32> to vector<16x32xf32>
    %441 = arith.addf %437, %440 : vector<16x32xf32>
    %442 = arith.addf %441, %279 : vector<16x32xf32>
    %c1_161 = arith.constant 1 : index
    %c0_162 = arith.constant 0 : index
    %c0_163 = arith.constant 0 : index
    %443 = vector.load %arg10[%c1_161, %c0_162, %c0_163] : memref<2x1x32xf32, #tpu.memory_space<vmem>>, vector<1x1x32xf32>
    %444 = vector.shape_cast %443 : vector<1x1x32xf32> to vector<1x32xf32>
    %c1_164 = arith.constant 1 : index
    %c0_165 = arith.constant 0 : index
    %c0_166 = arith.constant 0 : index
    %445 = vector.load %arg11[%c1_164, %c0_165, %c0_166] : memref<2x1x32xf32, #tpu.memory_space<vmem>>, vector<1x1x32xf32>
    %446 = vector.shape_cast %445 : vector<1x1x32xf32> to vector<1x32xf32>
    %cst_167 = arith.constant dense<0.000000e+00> : vector<16xf32>
    %447 = vector.multi_reduction <add>, %442, %cst_167 [1] : vector<16x32xf32> to vector<16xf32>
    %448 = vector.shape_cast %447 : vector<16xf32> to vector<16x1xf32>
    %cst_168 = arith.constant 3.200000e+01 : f32
    %449 = vector.broadcast %cst_168 : f32 to vector<16x1xf32>
    %450 = arith.divf %448, %449 : vector<16x1xf32>
    %451 = vector.broadcast %450 : vector<16x1xf32> to vector<16x32xf32>
    %452 = arith.subf %442, %451 : vector<16x32xf32>
    %453 = arith.mulf %452, %452 : vector<16x32xf32>
    %cst_169 = arith.constant dense<0.000000e+00> : vector<16xf32>
    %454 = vector.multi_reduction <add>, %453, %cst_169 [1] : vector<16x32xf32> to vector<16xf32>
    %455 = vector.shape_cast %454 : vector<16xf32> to vector<16x1xf32>
    %cst_170 = arith.constant 3.200000e+01 : f32
    %456 = vector.broadcast %cst_170 : f32 to vector<16x1xf32>
    %457 = arith.divf %455, %456 : vector<16x1xf32>
    %458 = vector.broadcast %450 : vector<16x1xf32> to vector<16x32xf32>
    %459 = arith.subf %442, %458 : vector<16x32xf32>
    %cst_171 = arith.constant 9.99999997E-7 : f32
    %460 = vector.broadcast %cst_171 : f32 to vector<16x1xf32>
    %461 = arith.addf %457, %460 : vector<16x1xf32>
    %462 = math.rsqrt %461 : vector<16x1xf32>
    %463 = vector.broadcast %462 : vector<16x1xf32> to vector<16x32xf32>
    %464 = arith.mulf %459, %463 : vector<16x32xf32>
    %465 = vector.broadcast %444 : vector<1x32xf32> to vector<16x32xf32>
    %466 = arith.mulf %464, %465 : vector<16x32xf32>
    %467 = vector.broadcast %446 : vector<1x32xf32> to vector<16x32xf32>
    %468 = arith.addf %466, %467 : vector<16x32xf32>
    %c1_172 = arith.constant 1 : index
    %c0_173 = arith.constant 0 : index
    %c0_174 = arith.constant 0 : index
    %469 = vector.load %arg12[%c1_172, %c0_173, %c0_174] : memref<2x32x64xf32, #tpu.memory_space<vmem>>, vector<1x32x64xf32>
    %470 = vector.shape_cast %469 : vector<1x32x64xf32> to vector<32x64xf32>
    %cst_175 = arith.constant dense<0.000000e+00> : vector<16x64xf32>
    %471 = tpu.matmul %468, %470, %cst_175 {dimension_numbers = #tpu.dot_dimension_numbers<[1], [0], [0], [1], [0, 0, 1, 1], [], []>} : vector<16x32xf32>, vector<32x64xf32>, vector<16x64xf32> -> vector<16x64xf32>
    %c1_176 = arith.constant 1 : index
    %c0_177 = arith.constant 0 : index
    %c0_178 = arith.constant 0 : index
    %472 = vector.load %arg13[%c1_176, %c0_177, %c0_178] : memref<2x1x64xf32, #tpu.memory_space<vmem>>, vector<1x1x64xf32>
    %473 = vector.shape_cast %472 : vector<1x1x64xf32> to vector<1x64xf32>
    %474 = vector.broadcast %473 : vector<1x64xf32> to vector<16x64xf32>
    %475 = arith.addf %471, %474 : vector<16x64xf32>
    %cst_179 = arith.constant 5.000000e-01 : f32
    %476 = vector.broadcast %cst_179 : f32 to vector<16x64xf32>
    %477 = arith.mulf %476, %475 : vector<16x64xf32>
    %cst_180 = arith.constant 4.471500e-02 : f32
    %478 = vector.broadcast %cst_180 : f32 to vector<16x64xf32>
    %479 = arith.mulf %478, %475 : vector<16x64xf32>
    %480 = arith.mulf %479, %475 : vector<16x64xf32>
    %481 = arith.mulf %480, %475 : vector<16x64xf32>
    %482 = arith.addf %475, %481 : vector<16x64xf32>
    %cst_181 = arith.constant 0.797884583 : f32
    %483 = vector.broadcast %cst_181 : f32 to vector<16x64xf32>
    %484 = arith.mulf %483, %482 : vector<16x64xf32>
    %485 = math.tanh %484 : vector<16x64xf32>
    %cst_182 = arith.constant 1.000000e+00 : f32
    %486 = vector.broadcast %cst_182 : f32 to vector<16x64xf32>
    %487 = arith.addf %486, %485 : vector<16x64xf32>
    %488 = arith.mulf %477, %487 : vector<16x64xf32>
    %c1_183 = arith.constant 1 : index
    %c0_184 = arith.constant 0 : index
    %c0_185 = arith.constant 0 : index
    %489 = vector.load %arg14[%c1_183, %c0_184, %c0_185] : memref<2x64x32xf32, #tpu.memory_space<vmem>>, vector<1x64x32xf32>
    %490 = vector.shape_cast %489 : vector<1x64x32xf32> to vector<64x32xf32>
    %cst_186 = arith.constant dense<0.000000e+00> : vector<16x32xf32>
    %491 = tpu.matmul %488, %490, %cst_186 {dimension_numbers = #tpu.dot_dimension_numbers<[1], [0], [0], [1], [0, 0, 1, 1], [], []>} : vector<16x64xf32>, vector<64x32xf32>, vector<16x32xf32> -> vector<16x32xf32>
    %c1_187 = arith.constant 1 : index
    %c0_188 = arith.constant 0 : index
    %c0_189 = arith.constant 0 : index
    %492 = vector.load %arg15[%c1_187, %c0_188, %c0_189] : memref<2x1x32xf32, #tpu.memory_space<vmem>>, vector<1x1x32xf32>
    %493 = vector.shape_cast %492 : vector<1x1x32xf32> to vector<1x32xf32>
    %494 = vector.broadcast %493 : vector<1x32xf32> to vector<16x32xf32>
    %495 = arith.addf %491, %494 : vector<16x32xf32>
    %496 = arith.addf %495, %468 : vector<16x32xf32>
    %c1_190 = arith.constant 1 : index
    %c0_191 = arith.constant 0 : index
    %c0_192 = arith.constant 0 : index
    %497 = vector.load %arg16[%c1_190, %c0_191, %c0_192] : memref<2x1x32xf32, #tpu.memory_space<vmem>>, vector<1x1x32xf32>
    %498 = vector.shape_cast %497 : vector<1x1x32xf32> to vector<1x32xf32>
    %c1_193 = arith.constant 1 : index
    %c0_194 = arith.constant 0 : index
    %c0_195 = arith.constant 0 : index
    %499 = vector.load %arg17[%c1_193, %c0_194, %c0_195] : memref<2x1x32xf32, #tpu.memory_space<vmem>>, vector<1x1x32xf32>
    %500 = vector.shape_cast %499 : vector<1x1x32xf32> to vector<1x32xf32>
    %cst_196 = arith.constant dense<0.000000e+00> : vector<16xf32>
    %501 = vector.multi_reduction <add>, %496, %cst_196 [1] : vector<16x32xf32> to vector<16xf32>
    %502 = vector.shape_cast %501 : vector<16xf32> to vector<16x1xf32>
    %cst_197 = arith.constant 3.200000e+01 : f32
    %503 = vector.broadcast %cst_197 : f32 to vector<16x1xf32>
    %504 = arith.divf %502, %503 : vector<16x1xf32>
    %505 = vector.broadcast %504 : vector<16x1xf32> to vector<16x32xf32>
    %506 = arith.subf %496, %505 : vector<16x32xf32>
    %507 = arith.mulf %506, %506 : vector<16x32xf32>
    %cst_198 = arith.constant dense<0.000000e+00> : vector<16xf32>
    %508 = vector.multi_reduction <add>, %507, %cst_198 [1] : vector<16x32xf32> to vector<16xf32>
    %509 = vector.shape_cast %508 : vector<16xf32> to vector<16x1xf32>
    %cst_199 = arith.constant 3.200000e+01 : f32
    %510 = vector.broadcast %cst_199 : f32 to vector<16x1xf32>
    %511 = arith.divf %509, %510 : vector<16x1xf32>
    %512 = vector.broadcast %504 : vector<16x1xf32> to vector<16x32xf32>
    %513 = arith.subf %496, %512 : vector<16x32xf32>
    %cst_200 = arith.constant 9.99999997E-7 : f32
    %514 = vector.broadcast %cst_200 : f32 to vector<16x1xf32>
    %515 = arith.addf %511, %514 : vector<16x1xf32>
    %516 = math.rsqrt %515 : vector<16x1xf32>
    %517 = vector.broadcast %516 : vector<16x1xf32> to vector<16x32xf32>
    %518 = arith.mulf %513, %517 : vector<16x32xf32>
    %519 = vector.broadcast %498 : vector<1x32xf32> to vector<16x32xf32>
    %520 = arith.mulf %518, %519 : vector<16x32xf32>
    %521 = vector.broadcast %500 : vector<1x32xf32> to vector<16x32xf32>
    %522 = arith.addf %520, %521 : vector<16x32xf32>
    %523 = tpu.iota {dimensions = array<i32: 1>} : vector<2x16xi32>
    %524 = tpu.iota {dimensions = array<i32: 0>} : vector<2x16xi32>
    %c8_i32 = arith.constant 8 : i32
    %525 = vector.broadcast %c8_i32 : i32 to vector<2x16xi32>
    %526 = arith.muli %524, %525 : vector<2x16xi32>
    %527 = arith.cmpi eq, %523, %526 : vector<2x16xi32>
    %528 = arith.extui %527 : vector<2x16xi1> to vector<2x16xi32>
    %529 = arith.sitofp %528 : vector<2x16xi32> to vector<2x16xf32>
    %cst_201 = arith.constant dense<0.000000e+00> : vector<2x32xf32>
    %530 = tpu.matmul %529, %522, %cst_201 {dimension_numbers = #tpu.dot_dimension_numbers<[1], [0], [0], [1], [0, 0, 1, 1], [], []>} : vector<2x16xf32>, vector<16x32xf32>, vector<2x32xf32> -> vector<2x32xf32>
    %c0_202 = arith.constant 0 : index
    %c0_203 = arith.constant 0 : index
    %531 = vector.load %arg18[%c0_202, %c0_203] : memref<32x32xf32, #tpu.memory_space<vmem>>, vector<32x32xf32>
    %cst_204 = arith.constant dense<0.000000e+00> : vector<2x32xf32>
    %532 = tpu.matmul %530, %531, %cst_204 {dimension_numbers = #tpu.dot_dimension_numbers<[1], [0], [0], [1], [0, 0, 1, 1], [], []>} : vector<2x32xf32>, vector<32x32xf32>, vector<2x32xf32> -> vector<2x32xf32>
    %c0_205 = arith.constant 0 : index
    %c0_206 = arith.constant 0 : index
    %533 = vector.load %arg19[%c0_205, %c0_206] : memref<1x32xf32, #tpu.memory_space<vmem>>, vector<1x32xf32>
    %534 = vector.broadcast %533 : vector<1x32xf32> to vector<2x32xf32>
    %535 = arith.addf %532, %534 : vector<2x32xf32>
    %536 = math.tanh %535 : vector<2x32xf32>
    %c0_207 = arith.constant 0 : index
    %c0_208 = arith.constant 0 : index
    %537 = vector.load %arg20[%c0_207, %c0_208] : memref<32x3xf32, #tpu.memory_space<vmem>>, vector<32x3xf32>
    %cst_209 = arith.constant dense<0.000000e+00> : vector<2x3xf32>
    %538 = tpu.matmul %536, %537, %cst_209 {dimension_numbers = #tpu.dot_dimension_numbers<[1], [0], [0], [1], [0, 0, 1, 1], [], []>} : vector<2x32xf32>, vector<32x3xf32>, vector<2x3xf32> -> vector<2x3xf32>
    %c0_210 = arith.constant 0 : index
    %c0_211 = arith.constant 0 : index
    %539 = vector.load %arg21[%c0_210, %c0_211] : memref<1x3xf32, #tpu.memory_space<vmem>>, vector<1x3xf32>
    %540 = vector.broadcast %539 : vector<1x3xf32> to vector<2x3xf32>
    %541 = arith.addf %538, %540 : vector<2x3xf32>
    %cst_212 = arith.constant dense<0xFF800000> : vector<2xf32>
    %542 = vector.multi_reduction <maximumf>, %541, %cst_212 [1] : vector<2x3xf32> to vector<2xf32>
    %543 = vector.shape_cast %542 : vector<2xf32> to vector<2x1xf32>
    %544 = vector.broadcast %543 : vector<2x1xf32> to vector<2x3xf32>
    %545 = arith.subf %541, %544 : vector<2x3xf32>
    %546 = math.exp %545 : vector<2x3xf32>
    %cst_213 = arith.constant dense<0.000000e+00> : vector<2xf32>
    %547 = vector.multi_reduction <add>, %546, %cst_213 [1] : vector<2x3xf32> to vector<2xf32>
    %548 = vector.shape_cast %547 : vector<2xf32> to vector<2x1xf32>
    %549 = math.log %548 : vector<2x1xf32>
    %550 = vector.broadcast %549 : vector<2x1xf32> to vector<2x3xf32>
    %551 = arith.subf %545, %550 : vector<2x3xf32>
    %c0_214 = arith.constant 0 : index
    %c0_215 = arith.constant 0 : index
    %552 = vector.load %arg3[%c0_214, %c0_215] : memref<2x3xf32, #tpu.memory_space<vmem>>, vector<2x3xf32>
    %553 = arith.mulf %551, %552 : vector<2x3xf32>
    %cst_216 = arith.constant dense<0.000000e+00> : vector<2xf32>
    %554 = vector.multi_reduction <add>, %553, %cst_216 [1] : vector<2x3xf32> to vector<2xf32>
    %555 = vector.shape_cast %554 : vector<2xf32> to vector<2x1xf32>
    %cst_217 = arith.constant 0.000000e+00 : f32
    %556 = vector.broadcast %cst_217 : f32 to vector<2x1xf32>
    %557 = arith.subf %556, %555 : vector<2x1xf32>
    %558 = tpu.concatenate %541, %557 in 1 : vector<2x3xf32>, vector<2x1xf32> -> vector<2x4xf32>
    %c0_218 = arith.constant 0 : index
    %c0_219 = arith.constant 0 : index
    %559 = vector.load %arg22[%c0_218, %c0_219] : memref<2x4xf32, #tpu.memory_space<vmem>>, vector<2x4xf32>
    tpu.vector_store %arg22[%c0_218, %c0_219], %558 {strides = array<i32>} : memref<2x4xf32, #tpu.memory_space<vmem>>, vector<2x4xf32>,
    return
  }
  func.func @transform_0(%arg0: i32) -> (i32, i32) {
    %c0_i32 = arith.constant 0 : i32
    %c0_i32_0 = arith.constant 0 : i32
    %c0_i32_1 = arith.constant 0 : i32
    return %c0_i32, %c0_i32_0 : i32, i32
  }
  func.func @transform_1(%arg0: i32) -> (i32, i32) {
    %c0_i32 = arith.constant 0 : i32
    %c0_i32_0 = arith.constant 0 : i32
    %c0_i32_1 = arith.constant 0 : i32
    return %c0_i32, %c0_i32_0 : i32, i32
  }
  func.func @transform_2(%arg0: i32) -> (i32, i32) {
    %c0_i32 = arith.constant 0 : i32
    %c0_i32_0 = arith.constant 0 : i32
    %c0_i32_1 = arith.constant 0 : i32
    return %c0_i32, %c0_i32_0 : i32, i32
  }
  func.func @transform_3(%arg0: i32) -> (i32, i32) {
    %c0_i32 = arith.constant 0 : i32
    %c0_i32_0 = arith.constant 0 : i32
    %c0_i32_1 = arith.constant 0 : i32
    return %c0_i32, %c0_i32_0 : i32, i32
  }
  func.func @transform_4(%arg0: i32) -> (i32, i32) {
    %c0_i32 = arith.constant 0 : i32
    %c0_i32_0 = arith.constant 0 : i32
    %c0_i32_1 = arith.constant 0 : i32
    return %c0_i32, %c0_i32_0 : i32, i32
  }
  func.func @transform_5(%arg0: i32) -> (i32, i32, i32) {
    %c0_i32 = arith.constant 0 : i32
    %c0_i32_0 = arith.constant 0 : i32
    %c0_i32_1 = arith.constant 0 : i32
    %c0_i32_2 = arith.constant 0 : i32
    return %c0_i32, %c0_i32_0, %c0_i32_1 : i32, i32, i32
  }
  func.func @transform_6(%arg0: i32) -> (i32, i32, i32) {
    %c0_i32 = arith.constant 0 : i32
    %c0_i32_0 = arith.constant 0 : i32
    %c0_i32_1 = arith.constant 0 : i32
    %c0_i32_2 = arith.constant 0 : i32
    return %c0_i32, %c0_i32_0, %c0_i32_1 : i32, i32, i32
  }
  func.func @transform_7(%arg0: i32) -> (i32, i32, i32) {
    %c0_i32 = arith.constant 0 : i32
    %c0_i32_0 = arith.constant 0 : i32
    %c0_i32_1 = arith.constant 0 : i32
    %c0_i32_2 = arith.constant 0 : i32
    return %c0_i32, %c0_i32_0, %c0_i32_1 : i32, i32, i32
  }
  func.func @transform_8(%arg0: i32) -> (i32, i32, i32) {
    %c0_i32 = arith.constant 0 : i32
    %c0_i32_0 = arith.constant 0 : i32
    %c0_i32_1 = arith.constant 0 : i32
    %c0_i32_2 = arith.constant 0 : i32
    return %c0_i32, %c0_i32_0, %c0_i32_1 : i32, i32, i32
  }
  func.func @transform_9(%arg0: i32) -> (i32, i32, i32) {
    %c0_i32 = arith.constant 0 : i32
    %c0_i32_0 = arith.constant 0 : i32
    %c0_i32_1 = arith.constant 0 : i32
    %c0_i32_2 = arith.constant 0 : i32
    return %c0_i32, %c0_i32_0, %c0_i32_1 : i32, i32, i32
  }
  func.func @transform_10(%arg0: i32) -> (i32, i32, i32) {
    %c0_i32 = arith.constant 0 : i32
    %c0_i32_0 = arith.constant 0 : i32
    %c0_i32_1 = arith.constant 0 : i32
    %c0_i32_2 = arith.constant 0 : i32
    return %c0_i32, %c0_i32_0, %c0_i32_1 : i32, i32, i32
  }
  func.func @transform_11(%arg0: i32) -> (i32, i32, i32) {
    %c0_i32 = arith.constant 0 : i32
    %c0_i32_0 = arith.constant 0 : i32
    %c0_i32_1 = arith.constant 0 : i32
    %c0_i32_2 = arith.constant 0 : i32
    return %c0_i32, %c0_i32_0, %c0_i32_1 : i32, i32, i32
  }
  func.func @transform_12(%arg0: i32) -> (i32, i32, i32) {
    %c0_i32 = arith.constant 0 : i32
    %c0_i32_0 = arith.constant 0 : i32
    %c0_i32_1 = arith.constant 0 : i32
    %c0_i32_2 = arith.constant 0 : i32
    return %c0_i32, %c0_i32_0, %c0_i32_1 : i32, i32, i32
  }
  func.func @transform_13(%arg0: i32) -> (i32, i32, i32) {
    %c0_i32 = arith.constant 0 : i32
    %c0_i32_0 = arith.constant 0 : i32
    %c0_i32_1 = arith.constant 0 : i32
    %c0_i32_2 = arith.constant 0 : i32
    return %c0_i32, %c0_i32_0, %c0_i32_1 : i32, i32, i32
  }
  func.func @transform_14(%arg0: i32) -> (i32, i32, i32) {
    %c0_i32 = arith.constant 0 : i32
    %c0_i32_0 = arith.constant 0 : i32
    %c0_i32_1 = arith.constant 0 : i32
    %c0_i32_2 = arith.constant 0 : i32
    return %c0_i32, %c0_i32_0, %c0_i32_1 : i32, i32, i32
  }
  func.func @transform_15(%arg0: i32) -> (i32, i32, i32) {
    %c0_i32 = arith.constant 0 : i32
    %c0_i32_0 = arith.constant 0 : i32
    %c0_i32_1 = arith.constant 0 : i32
    %c0_i32_2 = arith.constant 0 : i32
    return %c0_i32, %c0_i32_0, %c0_i32_1 : i32, i32, i32
  }
  func.func @transform_16(%arg0: i32) -> (i32, i32, i32) {
    %c0_i32 = arith.constant 0 : i32
    %c0_i32_0 = arith.constant 0 : i32
    %c0_i32_1 = arith.constant 0 : i32
    %c0_i32_2 = arith.constant 0 : i32
    return %c0_i32, %c0_i32_0, %c0_i32_1 : i32, i32, i32
  }
  func.func @transform_17(%arg0: i32) -> (i32, i32) {
    %c0_i32 = arith.constant 0 : i32
    %c0_i32_0 = arith.constant 0 : i32
    %c0_i32_1 = arith.constant 0 : i32
    return %c0_i32, %c0_i32_0 : i32, i32
  }
  func.func @transform_18(%arg0: i32) -> (i32, i32) {
    %c0_i32 = arith.constant 0 : i32
    %c0_i32_0 = arith.constant 0 : i32
    %c0_i32_1 = arith.constant 0 : i32
    return %c0_i32, %c0_i32_0 : i32, i32
  }
  func.func @transform_19(%arg0: i32) -> (i32, i32) {
    %c0_i32 = arith.constant 0 : i32
    %c0_i32_0 = arith.constant 0 : i32
    %c0_i32_1 = arith.constant 0 : i32
    return %c0_i32, %c0_i32_0 : i32, i32
  }
  func.func @transform_20(%arg0: i32) -> (i32, i32) {
    %c0_i32 = arith.constant 0 : i32
    %c0_i32_0 = arith.constant 0 : i32
    %c0_i32_1 = arith.constant 0 : i32
    return %c0_i32, %c0_i32_0 : i32, i32
  }
  func.func @transform_21(%arg0: i32) -> (i32, i32) {
    %c0_i32 = arith.constant 0 : i32
    %c0_i32_0 = arith.constant 0 : i32
    %c0_i32_1 = arith.constant 0 : i32
    return %c0_i32, %c0_i32_0 : i32, i32
  }
}

</mosaic_0001>

<bundles_post_ra>
// kernel: classifier_forward.1
= control target key start
LH: loop header
LB: loop body
LE: loop exit
PB: predicated region body
PF: predicated region fallthrough
CT: control target
= control target key end

     0   :  { %vm72_vm0 = vcmask 261120   ;;  %v4769_v34 = vmov 0.0   ;;  %vm4770_vm1 = vmmov 0   ;;  %s4771_s30 = smov 88   ;;  %s4773_s22 = smov 120   ;;  %vm222_vm2 = vcmask 64512   ;;  %s5581_s0 = inlined_call_operand.vmem [shape: f32[16,32], index: 0, kind: input, shape index: {}]   ;;  %s5582_s5 = inlined_call_operand.vmem [shape: f32[2,32,96], index: 5, kind: input, shape index: {}]   ;;  %s5583_s3 = inlined_call_operand.vmem [shape: f32[1,32], index: 3, kind: input, shape index: {}]   ;;  %s5584_s4 = inlined_call_operand.vmem [shape: f32[1,32], index: 4, kind: input, shape index: {}]   ;;  %s5585_s6 = inlined_call_operand.vmem [shape: f32[2,1,96], index: 6, kind: input, shape index: {}]   ;;  %s5586_s1 = inlined_call_operand.vmem [shape: f32[2,8], index: 1, kind: input, shape index: {}]   ;;  %s5587_s7 = inlined_call_operand.vmem [shape: f32[2,32,32], index: 7, kind: input, shape index: {}]   ;;  %s5588_s8 = inlined_call_operand.vmem [shape: f32[2,1,32], index: 8, kind: input, shape index: {}]   ;;  %s5589_s11 = inlined_call_operand.vmem [shape: f32[2,32,64], index: 11, kind: input, shape index: {}]   ;;  %s5590_s9 = inlined_call_operand.vmem [shape: f32[2,1,32], index: 9, kind: input, shape index: {}]   ;;  %s5591_s10 = inlined_call_operand.vmem [shape: f32[2,1,32], index: 10, kind: input, shape index: {}]   ;;  %s5592_s13 = inlined_call_operand.vmem [shape: f32[2,64,32], index: 13, kind: input, shape index: {}]   ;;  %s5593_s12 = inlined_call_operand.vmem [shape: f32[2,1,64], index: 12, kind: input, shape index: {}]   ;;  %s5594_s14 = inlined_call_operand.vmem [shape: f32[2,1,32], index: 14, kind: input, shape index: {}]   ;;  %s5595_s15 = inlined_call_operand.vmem [shape: f32[2,1,32], index: 15, kind: input, shape index: {}]   ;;  %s5596_s16 = inlined_call_operand.vmem [shape: f32[2,1,32], index: 16, kind: input, shape index: {}]   ;;  %s5597_s17 = inlined_call_operand.vmem [shape: f32[32,32], index: 17, kind: input, shape index: {}]   ;;  %s5598_s19 = inlined_call_operand.vmem [shape: f32[32,3], index: 19, kind: input, shape index: {}]   ;;  %s5599_s18 = inlined_call_operand.vmem [shape: f32[1,32], index: 18, kind: input, shape index: {}]   ;;  %s5600_s20 = inlined_call_operand.vmem [shape: f32[1,3], index: 20, kind: input, shape index: {}]   ;;  %s5601_s2 = inlined_call_operand.vmem [shape: f32[2,3], index: 2, kind: input, shape index: {}]   ;;  %s5602_s21 = inlined_call_operand.vmem [shape: f32[2,4], index: 21, kind: output, shape index: {}]  }
   0x1   :  { %5624 = sst [smem:[#allocation2_spill]] %s5581_s0  ;;  %4372 = vmatprep.subr.mxu1 %v4769_v34  ;;  %4374 = vmatprep.mubr.msk.f32.mxu1 %vm4770_vm1, %v4769_v34  ;;  %s5620_s23 = smov 112   ;;  %v119_v54 = vlaneseq  ;;  %v4778_v58 = vmov -10000.0   ;;  %vm900_vm4 = vcmask 130048   ;;  %vm902_vm5 = vcmask 195584  }
   0x2   :  { %5625 = sst [smem:[#allocation3_spill]] %s5582_s5  ;;  %s5618_s5 = smov 80   ;;  %vm1849_vm6 = vcmask 523264   ;;  %vm4085_vm8 = vcmask 17408   ;;  %vm4104_vm9 = vcmask 23552   ;;  %vm4106_vm10 = vcmask 25600  }
   0x3   :  { %5626 = sst [smem:[#allocation4_spill]] %s5583_s3  ;;  %s5616_s24 = smov 104   ;;  %v5016_v56 = vshrl.u32 %v119_v54, 7 }
   0x4   :  { %5627 = sst [smem:[#allocation5_spill]] %s5584_s4  ;;  %s5614_s3 = smov 72  }
   0x5   :  { %5628 = sst [smem:[#allocation6_spill]] %s5585_s6  ;;  %v121_v57 = vsub.s32 0, %v5016_v56  ;;  %s5610_s28 = smov 48  }
   0x6   :  { %5629 = sst [smem:[#allocation7_spill]] %s5586_s1  ;;  %s4772_s1 = smov 96  }
   0x7   :  { %s5630_s26 = sld [smem:[#allocation2_spill]]  ;;  %s5608_s29 = smov 40  }
   0x8   :  { %s5631_s0 = sld [smem:[#allocation3_spill]] }
   0x9   :  { %s5632_s25 = sld [smem:[#allocation4_spill]] }
   0xa   :  { %s5633_s4 = sld [smem:[#allocation5_spill]] }
   0xb   :  { %s5634_s6 = sld [smem:[#allocation6_spill]] }
   0xc   :  { %s5635_s27 = sld [smem:[#allocation7_spill]] }
   0xd   :  { %v68_v0 = vld [vmem:[%s5630_s26] sm:$0xff]  ;;  %v69_v1 = vld [vmem:[%s5630_s26 + $0x8] sm:$0xff]  ;;  %s4783_s26 = smov 8  }
   0xe   :  { %v73_v2 = vsel %vm72_vm0, %v68_v0, 0.0  ;;  %v76_v3 = vsel %vm72_vm0, %v69_v1, 0.0  ;;  %v130_v14 = vld [vmem:[%s5631_s0 + $0x18] sm:$0xff]  ;;  %v129_v15 = vld [vmem:[%s5631_s0 + $0x10] sm:$0xff]  ;;  %v128_v16 = vld [vmem:[%s5631_s0 + $0x8] sm:$0xff] }
   0xf   :  { %74 = vadd.xlane.f32.xlu0 %v73_v2  ;;  %4361 = vmatprep.subr.mxu0 %v130_v14  ;;  %v127_v17 = vld [vmem:[%s5631_s0] sm:$0xff] }
  0x10   :  { %4362 = vmatpush3.msra.mxu0 %v130_v14  ;;  %v4112_v25 = vld [vmem:[%s5632_s25] ss:$0 sm:$0xff]  ;;  %s5606_s25 = smov 56  }
  0x11   :  { %4363 = vmatprep.subr.mxu0 %v129_v15  ;;  %v4113_v27 = vld [vmem:[%s5633_s4] ss:$0 sm:$0xff]  ;;  %s5612_s4 = smov 64  }
  0x12   :  { %4364 = vmatpush3.msra.mxu0 %v129_v15  ;;  %v4114_v36 = vld [vmem:[%s5634_s6] ss:$0 sm:$0xff] }
  0x13   :  { %77 = vadd.xlane.f32.xlu0 %v76_v3  ;;  %4365 = vmatprep.subr.mxu0 %v128_v16  ;;  %v116_v55 = vld [vmem:[%s5635_s27] sm:$0x3]  ;;  %s4784_s27 = smov 16  }
  0x14   :  { %4366 = vmatpush3.msra.mxu0 %v128_v16  ;;  %vm117_vm3 = vcmp.gt.f32.partialorder %v116_v55, 0.0 }
  0x15   :  { %4367 = vmatprep.subr.mxu0 %v127_v17  ;;  %v118_v59 = vsel %vm117_vm3, 0.0, %v4778_v58 }
  0x16   :  { %4368 = vmatpush3.msra.mxu0 %v127_v17  ;;  %v5019_v60 = vrot.slane %v118_v59, %v121_v57 }
  0x17   :  { %4382 = vmatprep.subr.mxu0 %v4769_v34 }
  0x98   :  { %v75_v4 = vpop.xlane.xlu0 %74 }
  0x99   :  { %v80_v5 = vmul.f32 0.03125, %v75_v4 }
  0x9b   :  { %v82_v6 = vsub.f32 %v68_v0, %v80_v5 }
  0x9c   :  { %v78_v7 = vpop.xlane.xlu0 %77 }
  0x9d   :  { %v81_v8 = vmul.f32 0.03125, %v78_v7  ;;  %v84_v9 = vmul.f32 %v82_v6, %v82_v6 }
  0x9f   :  { %v83_v10 = vsub.f32 %v69_v1, %v81_v8  ;;  %v86_v11 = vsel %vm72_vm0, %v84_v9, 0.0 }
  0xa0   :  { %87 = vadd.xlane.f32.xlu1 %v86_v11  ;;  %v125_v11 = vsub.s32 1, %v5016_v56 }
  0xa1   :  { %v85_v12 = vmul.f32 %v83_v10, %v83_v10 }
  0xa2   :  { %v5032_v17 = vrot.slane %v118_v59, %v125_v11 }
  0xa3   :  { %v89_v13 = vsel %vm72_vm0, %v85_v12, 0.0 }
  0xa4   :  { %90 = vadd.xlane.f32.xlu1 %v89_v13 }
 0x129   :  { %v88_v18 = vpop.xlane.xlu1 %87 }
 0x12a   :  { %v92_v19 = vmul.f32 0.03125, %v88_v18 }
 0x12c   :  { %v94_v20 = vadd.f32 1e-06, %v92_v19 }
 0x12d   :  { %v91_v21 = vpop.xlane.xlu1 %90 }
 0x12e   :  { %4671 = vrsqrt.f32 %v94_v20  ;;  %v93_v22 = vmul.f32 0.03125, %v91_v21 }
 0x130   :  { %v95_v23 = vadd.f32 1e-06, %v93_v22 }
 0x132   :  { %4673 = vrsqrt.f32 %v95_v23 }
 0x13b   :  { %v4672_v24 = vpop.eup %4671 }
 0x13c   :  { %v98_v26 = vmul.f32 %v4672_v24, %v82_v6 }
 0x13e   :  { %v106_v28 = vmul.f32 %v4112_v25, %v98_v26 }
 0x13f   :  { %v4674_v29 = vpop.eup %4673 }
 0x140   :  { %v99_v30 = vmul.f32 %v4674_v29, %v83_v10  ;;  %v4924_v31 = vadd.f32 %v4113_v27, %v106_v28 }
 0x142   :  { %v107_v32 = vmul.f32 %v4112_v25, %v99_v30  ;;  %4369 = vmatprep.mubr.msk.f32.mxu0 %vm72_vm0, %v4924_v31 }
 0x144   :  { %v4928_v33 = vadd.f32 %v4113_v27, %v107_v32 }
 0x146   :  { %4370 = vmatmul.mubr.msk.f32.vlgmr.msra.gmra.mxu0 %vm72_vm0, %v4928_v33 }
 0x147   :  { %4384 = vmatprep.mubr.msk.f32.mxu0 %vm4770_vm1, %v4769_v34 }
 0x206   :  { %v4371_v35 = vpop.f32.mrf.mxu0 }
 0x207   :  { %v4955_v39 = vadd.f32 %v4371_v35, %v4114_v36 }
 0x208   :  { %v210_v37 = vpop.f32.mrf.mxu0 }
 0x209   :  { %v4941_v38 = vadd.f32 %v4114_v36, %v210_v37 }
 0x20b   :  { %388 = vrot.lane.b32.xlu1 %v4941_v38, %s4771_s30  ;;  %220 = vrot.lane.b32.xlu0 %v4941_v38, %s4772_s1 }
 0x20f   :  { %386 = vrot.lane.b32.xlu1 %v4941_v38, %s4773_s22  ;;  %553 = vrot.lane.b32.xlu0 %v4941_v38, %s5620_s23 }
 0x213   :  { %555 = vrot.lane.b32.xlu1 %v4941_v38, %s5618_s5  ;;  %720 = vrot.lane.b32.xlu0 %v4941_v38, %s5616_s24 }
 0x217   :  { %722 = vrot.lane.b32.xlu1 %v4941_v38, %s5614_s3  ;;  %1072 = vrot.lane.b32.xlu0 %v4955_v39, %s4771_s30 }
 0x21b   :  { %905 = vrot.lane.b32.xlu1 %v4955_v39, %s4772_s1  ;;  %1239 = vrot.lane.b32.xlu0 %v4955_v39, %s5618_s5  ;;  %s5622_s5 = smov 24  }
 0x21f   :  { %1070 = vrot.lane.b32.xlu1 %v4955_v39, %s4773_s22  ;;  %1406 = vrot.lane.b32.xlu0 %v4955_v39, %s5614_s3  ;;  %s5643_s3 = smov 56  }
 0x223   :  { %1237 = vrot.lane.b32.xlu1 %v4955_v39, %s5620_s23  ;;  %s5637_s23 = smov 80  }
 0x227   :  { %1404 = vrot.lane.b32.xlu1 %v4955_v39, %s5616_s24  ;;  %s5638_s24 = smov 104  }
 0x27d   :  { %v389_v40 = vpop.permute.xlu1 %388  ;;  %v221_v41 = vpop.permute.xlu0 %220 }
 0x27e   :  { %4373 = vmatpush3.xpose.msk.msra.mxu1 %vm222_vm2, %v221_v41  ;;  %4383 = vmatpush3.xpose.msk.msra.mxu0 %vm222_vm2, %v389_v40 }
 0x27f   :  { %4392 = vmatprep.subr.mxu0 %v4769_v34  ;;  %4377 = vmatprep.subr.mxu1 %v4769_v34 }
 0x281   :  { %v387_v42 = vpop.permute.xlu1 %386  ;;  %4375 = vmatmul.mubr.msk.f32.vlgmr.msra.gmra.mxu1 %vm222_vm2, %v4941_v38  ;;  %v554_v43 = vpop.permute.xlu0 %553 }
 0x282   :  { %4385 = vmatmul.mubr.msk.f32.vlgmr.msra.gmra.mxu0 %vm222_vm2, %v387_v42  ;;  %4379 = vmatprep.mubr.msk.f32.mxu1 %vm4770_vm1, %v4769_v34 }
 0x283   :  { %4394 = vmatprep.mubr.msk.f32.mxu0 %vm4770_vm1, %v4769_v34 }
 0x285   :  { %v556_v44 = vpop.permute.xlu1 %555  ;;  %v721_v45 = vpop.permute.xlu0 %720 }
 0x286   :  { %4393 = vmatpush3.xpose.msk.msra.mxu0 %vm222_vm2, %v556_v44 }
 0x287   :  { %4402 = vmatprep.subr.mxu0 %v4769_v34 }
 0x289   :  { %v723_v46 = vpop.permute.xlu1 %722  ;;  %4395 = vmatmul.mubr.msk.f32.vlgmr.msra.gmra.mxu0 %vm222_vm2, %v554_v43  ;;  %v1073_v47 = vpop.permute.xlu0 %1072 }
 0x28a   :  { %4403 = vmatpush3.xpose.msk.msra.mxu0 %vm222_vm2, %v723_v46  ;;  %4404 = vmatprep.mubr.msk.f32.mxu0 %vm4770_vm1, %v4769_v34 }
 0x28b   :  { %4412 = vmatprep.subr.mxu0 %v4769_v34 }
 0x28d   :  { %v906_v48 = vpop.permute.xlu1 %905  ;;  %4405 = vmatmul.mubr.msk.f32.vlgmr.msra.gmra.mxu0 %vm222_vm2, %v721_v45  ;;  %v1240_v50 = vpop.permute.xlu0 %1239 }
 0x28e   :  { %4413 = vmatpush3.xpose.msk.msra.mxu0 %vm222_vm2, %v906_v48  ;;  %4414 = vmatprep.mubr.msk.f32.mxu0 %vm4770_vm1, %v4769_v34 }
 0x28f   :  { %4422 = vmatprep.subr.mxu0 %v4769_v34 }
 0x291   :  { %v1071_v49 = vpop.permute.xlu1 %1070  ;;  %4415 = vmatmul.mubr.msk.f32.vlgmr.msra.gmra.mxu0 %vm222_vm2, %v4955_v39  ;;  %v1407_v52 = vpop.permute.xlu0 %1406 }
 0x292   :  { %4423 = vmatpush3.xpose.msk.msra.mxu0 %vm222_vm2, %v1073_v47  ;;  %4424 = vmatprep.mubr.msk.f32.mxu0 %vm4770_vm1, %v4769_v34 }
 0x293   :  { %4432 = vmatprep.subr.mxu0 %v4769_v34 }
 0x295   :  { %4425 = vmatmul.mubr.msk.f32.vlgmr.msra.gmra.mxu0 %vm222_vm2, %v1071_v49  ;;  %v1238_v51 = vpop.permute.xlu1 %1237 }
 0x296   :  { %4433 = vmatpush3.xpose.msk.msra.mxu0 %vm222_vm2, %v1240_v50  ;;  %4434 = vmatprep.mubr.msk.f32.mxu0 %vm4770_vm1, %v4769_v34 }
 0x297   :  { %4442 = vmatprep.subr.mxu0 %v4769_v34 }
 0x299   :  { %4435 = vmatmul.mubr.msk.f32.vlgmr.msra.gmra.mxu0 %vm222_vm2, %v1238_v51  ;;  %v1405_v53 = vpop.permute.xlu1 %1404 }
 0x29a   :  { %4443 = vmatpush3.xpose.msk.msra.mxu0 %vm222_vm2, %v1407_v52  ;;  %4444 = vmatprep.mubr.msk.f32.mxu0 %vm4770_vm1, %v4769_v34 }
 0x29d   :  { %4445 = vmatmul.mubr.msk.f32.vlgmr.msra.gmra.mxu0 %vm222_vm2, %v1405_v53 }
 0x341   :  { %v293_v61 = vpop.f32.mrf.mxu1 }
 0x342   :  { %v297_v62 = vmul.f32 0.35355338, %v293_v61  ;;  %v460_v63 = vpop.f32.mrf.mxu0 }
 0x343   :  { %v464_v0 = vmul.f32 0.35355338, %v460_v63  ;;  %v4376_v1 = vpop.f32.mrf.mxu1 }
 0x344   :  { %v4386_v2 = vpop.f32.mrf.mxu0  ;;  %v298_v3 = vadd.f32 %v297_v62, %v5019_v60 }
 0x345   :  { %v465_v4 = vadd.f32 %v464_v0, %v5019_v60 }
 0x346   :  { %v299_v5 = vsel %vm222_vm2, %v298_v3, -inf }
 0x347   :  { %300 = vmax.xlane.f32.xlu0 %v299_v5  ;;  %v466_v6 = vsel %vm222_vm2, %v465_v4, -inf }
 0x348   :  { %467 = vmax.xlane.f32.xlu1 %v466_v6 }
 0x349   :  { %v627_v7 = vpop.f32.mrf.mxu0 }
 0x34a   :  { %v631_v8 = vmul.f32 0.35355338, %v627_v7 }
 0x34b   :  { %v4396_v9 = vpop.f32.mrf.mxu0 }
 0x34c   :  { %v5026_v10 = vadd.f32 %v631_v8, %v5019_v60 }
 0x34d   :  { %v794_v12 = vpop.f32.mrf.mxu0 }
 0x34e   :  { %v798_v13 = vmul.f32 0.35355338, %v794_v12  ;;  %v633_v14 = vsel %vm222_vm2, %v5026_v10, -inf }
 0x34f   :  { %634 = vmax.xlane.f32.xlu0 %v633_v14  ;;  %v4406_v15 = vpop.f32.mrf.mxu0 }
 0x350   :  { %v799_v16 = vadd.f32 %v798_v13, %v5019_v60 }
 0x351   :  { %v977_v18 = vpop.f32.mrf.mxu0 }
 0x352   :  { %v981_v19 = vmul.f32 0.35355338, %v977_v18  ;;  %v800_v20 = vsel %vm222_vm2, %v799_v16, -inf }
 0x353   :  { %801 = vmax.xlane.f32.xlu0 %v800_v20  ;;  %v4416_v21 = vpop.f32.mrf.mxu0 }
 0x354   :  { %v5036_v22 = vadd.f32 %v981_v19, %v5032_v17 }
 0x355   :  { %v1144_v23 = vpop.f32.mrf.mxu0 }
 0x356   :  { %v1148_v24 = vmul.f32 0.35355338, %v1144_v23  ;;  %v983_v25 = vsel %vm222_vm2, %v5036_v22, -inf }
 0x357   :  { %984 = vmax.xlane.f32.xlu0 %v983_v25  ;;  %v4426_v26 = vpop.f32.mrf.mxu0 }
 0x358   :  { %v1149_v27 = vadd.f32 %v1148_v24, %v5032_v17 }
 0x359   :  { %v1311_v28 = vpop.f32.mrf.mxu0 }
 0x35a   :  { %v1315_v29 = vmul.f32 0.35355338, %v1311_v28  ;;  %v1150_v30 = vsel %vm222_vm2, %v1149_v27, -inf }
 0x35b   :  { %1151 = vmax.xlane.f32.xlu1 %v1150_v30  ;;  %v4436_v32 = vpop.f32.mrf.mxu0 }
 0x35c   :  { %v1316_v35 = vadd.f32 %v1315_v29, %v5032_v17 }
 0x35d   :  { %v1478_v36 = vpop.f32.mrf.mxu0 }
 0x35e   :  { %v1317_v37 = vsel %vm222_vm2, %v1316_v35, -inf  ;;  %v1482_v41 = vmul.f32 0.35355338, %v1478_v36 }
 0x35f   :  { %1318 = vmax.xlane.f32.xlu0 %v1317_v37  ;;  %v4446_v40 = vpop.f32.mrf.mxu0 }
 0x360   :  { %v1483_v42 = vadd.f32 %v1482_v41, %v5032_v17 }
 0x362   :  { %v1484_v43 = vsel %vm222_vm2, %v1483_v42, -inf }
 0x36c   :  { %310 = vrot.lane.b32.xlu1 %v4941_v38, %s5612_s4 }
 0x390   :  { %1485 = vmax.xlane.f32.xlu1 %v1484_v43 }
 0x3a1   :  { %644 = vrot.lane.b32.xlu1 %v4941_v38, %s5610_s28 }
 0x3a5   :  { %811 = vrot.lane.b32.xlu1 %v4941_v38, %s5608_s29 }
 0x3a9   :  { %994 = vrot.lane.b32.xlu1 %v4955_v39, %s5612_s4 }
 0x3d0   :  { %v301_v44 = vpop.xlane.xlu0 %300 }
 0x3d1   :  { %v302_v45 = vsub.f32 %v298_v3, %v301_v44  ;;  %v468_v46 = vpop.xlane.xlu1 %467 }
 0x3d2   :  { %v469_v47 = vsub.f32 %v465_v4, %v468_v46 }
 0x3d3   :  { %v303_v48 = vmul.f32 1.442695, %v302_v45 }
 0x3d4   :  { %v470_v49 = vmul.f32 1.442695, %v469_v47 }
 0x3d5   :  { %4675 = vpow2.f32 %v303_v48 }
 0x3d6   :  { %4677 = vpow2.f32 %v470_v49 }
 0x3d8   :  { %v635_v50 = vpop.xlane.xlu0 %634 }
 0x3d9   :  { %v636_v1 = vsub.f32 %v5026_v10, %v635_v50 }
 0x3db   :  { %v637_v3 = vmul.f32 1.442695, %v636_v1 }
 0x3dc   :  { %v802_v51 = vpop.xlane.xlu0 %801 }
 0x3dd   :  { %v803_v52 = vsub.f32 %v799_v16, %v802_v51 }
 0x3df   :  { %v804_v53 = vmul.f32 1.442695, %v803_v52 }
 0x3e0   :  { %v985_v2 = vpop.xlane.xlu0 %984 }
 0x3e1   :  { %4679 = vpow2.f32 %v804_v53  ;;  %v986_v4 = vsub.f32 %v5036_v22, %v985_v2 }
 0x3e2   :  { %v4676_v55 = vpop.eup %4675  ;;  %4681 = vpow2.f32 %v637_v3  ;;  %v1589_v3 = vld [vmem:[%s5587_s7 + $0x18] sm:$0xff] }
 0x3e3   :  { %v5054_v57 = vpop.eup %4677  ;;  %v305_v58 = vsel %vm222_vm2, %v4676_v55, 0.0  ;;  %v987_v6 = vmul.f32 1.442695, %v986_v4  ;;  %v1588_v4 = vld [vmem:[%s5587_s7 + $0x10] sm:$0xff]  ;;  %4452 = vmatprep.subr.mxu0 %v1589_v3 }
 0x3e4   :  { %v1152_v59 = vpop.xlane.xlu1 %1151  ;;  %306 = vadd.xlane.f32.xlu0 %v305_v58  ;;  %v472_v61 = vsel %vm222_vm2, %v5054_v57, 0.0  ;;  %4453 = vmatpush3.msra.mxu0 %v1589_v3  ;;  %v4145_v3 = vld [vmem:[%s5591_s10] ss:$0 sm:$0xff] }
 0x3e5   :  { %473 = vadd.xlane.f32.xlu1 %v472_v61  ;;  %4683 = vpow2.f32 %v987_v6  ;;  %v1153_v8 = vsub.f32 %v1149_v27, %v1152_v59  ;;  %4454 = vmatprep.subr.mxu0 %v1588_v4 }
 0x3e6   :  { %4455 = vmatpush3.msra.mxu0 %v1588_v4 }
 0x3e7   :  { %v1154_v11 = vmul.f32 1.442695, %v1153_v8  ;;  %v1586_v8 = vld [vmem:[%s5587_s7] sm:$0xff] }
 0x3e8   :  { %v311_v62 = vpop.permute.xlu1 %310  ;;  %v1319_v5 = vpop.xlane.xlu0 %1318 }
 0x3e9   :  { %4378 = vmatpush3.msra.mxu1 %v311_v62  ;;  %v1320_v7 = vsub.f32 %v1316_v35, %v1319_v5 }
 0x3ea   :  { %4387 = vmatprep.subr.mxu1 %v4769_v34 }
 0x3eb   :  { %v1321_v9 = vmul.f32 1.442695, %v1320_v7  ;;  %v1587_v7 = vld [vmem:[%s5587_s7 + $0x8] sm:$0xff] }
 0x3ec   :  { %4456 = vmatprep.subr.mxu0 %v1587_v7 }
 0x3ed   :  { %4685 = vpow2.f32 %v1321_v9  ;;  %4457 = vmatpush3.msra.mxu0 %v1587_v7 }
 0x3ee   :  { %v5060_v63 = vpop.eup %4679  ;;  %4687 = vpow2.f32 %v1154_v11  ;;  %4458 = vmatprep.subr.mxu0 %v1586_v8 }
 0x3ef   :  { %v806_v0 = vsel %vm222_vm2, %v5060_v63, 0.0  ;;  %4459 = vmatpush3.msra.mxu0 %v1586_v8 }
 0x3f0   :  { %807 = vadd.xlane.f32.xlu1 %v806_v0 }
 0x3fa   :  { %477 = vrot.lane.b32.xlu0 %v4941_v38, %s5606_s25  ;;  %v4682_v38 = vpop.eup %4681 }
 0x3fb   :  { %v639_v10 = vsel %vm222_vm2, %v4682_v38, 0.0  ;;  %v5071_v12 = vpop.eup %4683 }
 0x3fc   :  { %v989_v16 = vsel %vm222_vm2, %v5071_v12, 0.0  ;;  %v5075_v18 = vpop.eup %4685 }
 0x3fd   :  { %v1323_v19 = vsel %vm222_vm2, %v5075_v18, 0.0  ;;  %v4688_v20 = vpop.eup %4687 }
 0x3fe   :  { %v1156_v21 = vsel %vm222_vm2, %v4688_v20, 0.0 }
 0x401   :  { %1161 = vrot.lane.b32.xlu1 %v4955_v39, %s5606_s25 }
 0x419   :  { %v1486_v13 = vpop.xlane.xlu1 %1485  ;;  %640 = vadd.xlane.f32.xlu0 %v639_v10 }
 0x41a   :  { %v1487_v14 = vsub.f32 %v1483_v42, %v1486_v13 }
 0x41c   :  { %v1488_v15 = vmul.f32 1.442695, %v1487_v14 }
 0x41d   :  { %990 = vadd.xlane.f32.xlu0 %v989_v16  ;;  %v645_v24 = vpop.permute.xlu1 %644 }
 0x41e   :  { %4689 = vpow2.f32 %v1488_v15 }
 0x421   :  { %1324 = vadd.xlane.f32.xlu0 %v1323_v19  ;;  %v812_v25 = vpop.permute.xlu1 %811 }
 0x425   :  { %1157 = vadd.xlane.f32.xlu1 %v1156_v21  ;;  %v995_v26 = vpop.permute.xlu1 %994 }
 0x42b   :  { %v5080_v22 = vpop.eup %4689 }
 0x42c   :  { %v1490_v23 = vsel %vm222_vm2, %v5080_v22, 0.0 }
 0x42d   :  { %1491 = vadd.xlane.f32.xlu0 %v1490_v23 }
 0x436   :  { %1495 = vrot.lane.b32.xlu1 %v4955_v39, %s5608_s29  ;;  %s5636_s29 = smov 112  }
 0x443   :  { %1328 = vrot.lane.b32.xlu0 %v4955_v39, %s5610_s28 }
 0x46d   :  { %v307_v27 = vpop.xlane.xlu0 %306 }
 0x46e   :  { %4691 = vrcp.f32 %v307_v27  ;;  %v474_v28 = vpop.xlane.xlu1 %473 }
 0x46f   :  { %4693 = vrcp.f32 %v474_v28 }
 0x471   :  { %v478_v35 = vpop.permute.xlu0 %477 }
 0x479   :  { %v808_v36 = vpop.xlane.xlu1 %807 }
 0x47b   :  { %v4692_v29 = vpop.eup %4691 }
 0x47c   :  { %v309_v30 = vmul.f32 %v4692_v29, %v4676_v55  ;;  %v4694_v32 = vpop.eup %4693 }
 0x47d   :  { %v476_v39 = vmul.f32 %v4694_v32, %v5054_v57  ;;  %v1162_v41 = vpop.permute.xlu1 %1161 }
 0x47e   :  { %4380 = vmatmul.mubr.msk.f32.vlgmr.msra.gmra.mxu1 %vm222_vm2, %v309_v30  ;;  %v4141_v30 = vld [vmem:[%s5588_s8] ss:$0 sm:$0xff] }
 0x47f   :  { %4388 = vmatpush3.msra.mxu1 %v478_v35  ;;  %4389 = vmatprep.mubr.msk.f32.mxu1 %vm4770_vm1, %v4769_v34 }
 0x480   :  { %4397 = vmatprep.subr.mxu1 %v4769_v34 }
 0x482   :  { %4390 = vmatmul.mubr.msk.f32.vlgmr.msra.gmra.mxu1 %vm222_vm2, %v476_v39 }
 0x483   :  { %4398 = vmatpush3.msra.mxu1 %v645_v24  ;;  %4399 = vmatprep.mubr.msk.f32.mxu1 %vm4770_vm1, %v4769_v34 }
 0x484   :  { %4407 = vmatprep.subr.mxu1 %v4769_v34 }
 0x4a2   :  { %v641_v37 = vpop.xlane.xlu0 %640 }
 0x4a3   :  { %4695 = vrcp.f32 %v641_v37 }
 0x4a4   :  { %4697 = vrcp.f32 %v808_v36 }
 0x4a6   :  { %v991_v40 = vpop.xlane.xlu0 %990 }
 0x4a7   :  { %4699 = vrcp.f32 %v991_v40 }
 0x4aa   :  { %v1325_v42 = vpop.xlane.xlu0 %1324 }
 0x4ae   :  { %v1158_v43 = vpop.xlane.xlu1 %1157 }
 0x4af   :  { %4701 = vrcp.f32 %v1158_v43 }
 0x4b0   :  { %v4696_v44 = vpop.eup %4695  ;;  %4703 = vrcp.f32 %v1325_v42 }
 0x4b1   :  { %v643_v45 = vmul.f32 %v4696_v44, %v4682_v38  ;;  %v4698_v46 = vpop.eup %4697 }
 0x4b2   :  { %v810_v47 = vmul.f32 %v4698_v46, %v5060_v63  ;;  %v1496_v58 = vpop.permute.xlu1 %1495 }
 0x4b3   :  { %4400 = vmatmul.mubr.msk.f32.vlgmr.msra.gmra.mxu1 %vm222_vm2, %v643_v45 }
 0x4b4   :  { %4408 = vmatpush3.msra.mxu1 %v812_v25  ;;  %4409 = vmatprep.mubr.msk.f32.mxu1 %vm4770_vm1, %v4769_v34  ;;  %v4700_v48 = vpop.eup %4699 }
 0x4b5   :  { %4417 = vmatprep.subr.mxu1 %v4769_v34  ;;  %v993_v50 = vmul.f32 %v4700_v48, %v5071_v12 }
 0x4b6   :  { %v1492_v49 = vpop.xlane.xlu0 %1491 }
 0x4b7   :  { %4705 = vrcp.f32 %v1492_v49  ;;  %4410 = vmatmul.mubr.msk.f32.vlgmr.msra.gmra.mxu1 %vm222_vm2, %v810_v47 }
 0x4b8   :  { %4418 = vmatpush3.msra.mxu1 %v995_v26  ;;  %4419 = vmatprep.mubr.msk.f32.mxu1 %vm4770_vm1, %v4769_v34 }
 0x4b9   :  { %4427 = vmatprep.subr.mxu1 %v4769_v34 }
 0x4ba   :  { %v1329_v55 = vpop.permute.xlu0 %1328 }
 0x4bb   :  { %4420 = vmatmul.mubr.msk.f32.vlgmr.msra.gmra.mxu1 %vm222_vm2, %v993_v50 }
 0x4bc   :  { %v4702_v51 = vpop.eup %4701  ;;  %4428 = vmatpush3.msra.mxu1 %v1162_v41  ;;  %4429 = vmatprep.mubr.msk.f32.mxu1 %vm4770_vm1, %v4769_v34 }
 0x4bd   :  { %4437 = vmatprep.subr.mxu1 %v4769_v34  ;;  %v1160_v52 = vmul.f32 %v4702_v51, %v4688_v20  ;;  %v4704_v53 = vpop.eup %4703 }
 0x4be   :  { %v1327_v57 = vmul.f32 %v4704_v53, %v5075_v18  ;;  %v1725_v53 = vld [vmem:[%s5589_s11 + $0x8] sm:$0xff] }
 0x4bf   :  { %4430 = vmatmul.mubr.msk.f32.vlgmr.msra.gmra.mxu1 %vm222_vm2, %v1160_v52  ;;  %v1726_v52 = vld [vmem:[%s5589_s11 + $0x10] sm:$0xff] }
 0x4c0   :  { %4438 = vmatpush3.msra.mxu1 %v1329_v55  ;;  %4439 = vmatprep.mubr.msk.f32.mxu1 %vm4770_vm1, %v4769_v34  ;;  %v1724_v55 = vld [vmem:[%s5589_s11] sm:$0xff] }
 0x4c1   :  { %4447 = vmatprep.subr.mxu1 %v4769_v34 }
 0x4c3   :  { %4440 = vmatmul.mubr.msk.f32.vlgmr.msra.gmra.mxu1 %vm222_vm2, %v1327_v57 }
 0x4c4   :  { %v4706_v59 = vpop.eup %4705  ;;  %4448 = vmatpush3.msra.mxu1 %v1496_v58  ;;  %4449 = vmatprep.mubr.msk.f32.mxu1 %vm4770_vm1, %v4769_v34 }
 0x4c5   :  { %v1494_v61 = vmul.f32 %v4706_v59, %v5080_v22 }
 0x4c7   :  { %4450 = vmatmul.mubr.msk.f32.vlgmr.msra.gmra.mxu1 %vm222_vm2, %v1494_v61 }
 0x53e   :  { %v382_v62 = vpop.f32.mrf.mxu1 }
 0x540   :  { %v4381_v63 = vpop.f32.mrf.mxu1 }
 0x542   :  { %v549_v0 = vpop.f32.mrf.mxu1 }
 0x543   :  { %888 = vrot.lane.b32.xlu0 %v549_v0, %s4783_s26 }
 0x544   :  { %v4391_v1 = vpop.f32.mrf.mxu1 }
 0x545   :  { %v4144_v1 = vld [vmem:[%s5590_s9] ss:$0 sm:$0xff] }
 0x573   :  { %v716_v2 = vpop.f32.mrf.mxu1 }
 0x574   :  { %892 = vrot.lane.b32.xlu1 %v716_v2, %s4784_s27 }
 0x575   :  { %v4401_v5 = vpop.f32.mrf.mxu1 }
 0x577   :  { %v883_v6 = vpop.f32.mrf.mxu1 }
 0x578   :  { %896 = vrot.lane.b32.xlu1 %v883_v6, %s5622_s5 }
 0x579   :  { %v4411_v9 = vpop.f32.mrf.mxu1 }
 0x57b   :  { %v1066_v11 = vpop.f32.mrf.mxu1 }
 0x57d   :  { %v4421_v38 = vpop.f32.mrf.mxu1 }
 0x57e   :  { %v1840_v38 = vld [vmem:[%s5592_s13 + $0x30] sm:$0xff] }
 0x57f   :  { %v1233_v10 = vpop.f32.mrf.mxu1 }
 0x580   :  { %1572 = vrot.lane.b32.xlu0 %v1233_v10, %s4783_s26  ;;  %v1839_v10 = vld [vmem:[%s5592_s13 + $0x28] sm:$0xff] }
 0x581   :  { %v4431_v12 = vpop.f32.mrf.mxu1 }
 0x582   :  { %v1838_v12 = vld [vmem:[%s5592_s13 + $0x20] sm:$0xff] }
 0x583   :  { %v1400_v13 = vpop.f32.mrf.mxu1 }
 0x584   :  { %1576 = vrot.lane.b32.xlu0 %v1400_v13, %s4784_s27  ;;  %v1837_v13 = vld [vmem:[%s5592_s13 + $0x18] sm:$0xff] }
 0x585   :  { %v4441_v14 = vpop.f32.mrf.mxu1 }
 0x586   :  { %v1836_v14 = vld [vmem:[%s5592_s13 + $0x10] sm:$0xff] }
 0x587   :  { %v1567_v15 = vpop.f32.mrf.mxu1 }
 0x588   :  { %1580 = vrot.lane.b32.xlu1 %v1567_v15, %s5622_s5  ;;  %v1835_v15 = vld [vmem:[%s5592_s13 + $0x8] sm:$0xff] }
 0x589   :  { %v4451_v16 = vpop.f32.mrf.mxu1 }
 0x58a   :  { %v1834_v16 = vld [vmem:[%s5592_s13] sm:$0xff] }
 0x5b5   :  { %v889_v18 = vpop.permute.xlu0 %888 }
 0x5b6   :  { %v899_v20 = vsel %vm222_vm2, %v382_v62, %v889_v18  ;;  %v4146_v18 = vld [vmem:[%s5593_s12] ss:$0 sm:$0xff] }
 0x5e6   :  { %v893_v19 = vpop.permute.xlu1 %892 }
 0x5e7   :  { %v901_v21 = vsel %vm900_vm4, %v899_v20, %v893_v19 }
 0x5ea   :  { %v897_v22 = vpop.permute.xlu1 %896 }
 0x5eb   :  { %v903_v23 = vsel %vm902_vm5, %v901_v21, %v897_v22 }
 0x5ec   :  { %4460 = vmatprep.mubr.msk.f32.mxu0 %vm72_vm0, %v903_v23 }
 0x5f2   :  { %v1573_v24 = vpop.permute.xlu0 %1572 }
 0x5f3   :  { %v1583_v26 = vsel %vm222_vm2, %v1066_v11, %v1573_v24  ;;  %v1841_v11 = vld [vmem:[%s5592_s13 + $0x38] sm:$0xff] }
 0x5f4   :  { %4474 = vmatprep.subr.mxu0 %v1841_v11 }
 0x5f6   :  { %v1577_v25 = vpop.permute.xlu0 %1576 }
 0x5f7   :  { %v1584_v27 = vsel %vm900_vm4, %v1583_v26, %v1577_v25 }
 0x5fa   :  { %v1581_v28 = vpop.permute.xlu1 %1580 }
 0x5fb   :  { %v1585_v29 = vsel %vm902_vm5, %v1584_v27, %v1581_v28 }
 0x5fc   :  { %4461 = vmatmul.mubr.msk.f32.vlgmr.msra.gmra.mxu0 %vm72_vm0, %v1585_v29 }
 0x5fd   :  { %4475 = vmatpush3.msra.mxu0 %v1841_v11 }
 0x5fe   :  { %4476 = vmatprep.subr.mxu0 %v1840_v38 }
 0x5ff   :  { %4477 = vmatpush3.msra.mxu0 %v1840_v38 }
 0x600   :  { %4478 = vmatprep.subr.mxu0 %v1839_v10 }
 0x601   :  { %4479 = vmatpush3.msra.mxu0 %v1839_v10  ;;  %v4152_v10 = vld [vmem:[%s5595_s15] ss:$0 sm:$0xff] }
 0x602   :  { %4480 = vmatprep.subr.mxu0 %v1838_v12 }
 0x603   :  { %4481 = vmatpush3.msra.mxu0 %v1838_v12 }
 0x604   :  { %4482 = vmatprep.subr.mxu0 %v1837_v13 }
 0x605   :  { %4483 = vmatpush3.msra.mxu0 %v1837_v13 }
 0x606   :  { %4484 = vmatprep.subr.mxu0 %v1836_v14 }
 0x607   :  { %4485 = vmatpush3.msra.mxu0 %v1836_v14 }
 0x608   :  { %4486 = vmatprep.subr.mxu0 %v1835_v15 }
 0x609   :  { %4487 = vmatpush3.msra.mxu0 %v1835_v15 }
 0x60a   :  { %4488 = vmatprep.subr.mxu0 %v1834_v16 }
 0x60b   :  { %4489 = vmatpush3.msra.mxu0 %v1834_v16  ;;  %v4153_v16 = vld [vmem:[%s5596_s16] ss:$0 sm:$0xff] }
 0x60c   :  { %4514 = vmatprep.subr.mxu0 %v4769_v34 }
 0x6bc   :  { %v4462_v32 = vpop.f32.mrf.mxu0 }
 0x6bd   :  { %v1675_v35 = vadd.f32 %v4462_v32, %v4141_v30 }
 0x6be   :  { %v1669_v39 = vpop.f32.mrf.mxu0 }
 0x6bf   :  { %v1670_v36 = vadd.f32 %v4141_v30, %v1669_v39  ;;  %v1679_v37 = vadd.f32 %v1675_v35, %v4928_v33 }
 0x6c1   :  { %v1685_v40 = vsel %vm72_vm0, %v1679_v37, 0.0  ;;  %v1678_v41 = vadd.f32 %v1670_v36, %v4924_v31  ;;  %v1727_v31 = vld [vmem:[%s5589_s11 + $0x18] sm:$0xff] }
 0x6c2   :  { %1686 = vadd.xlane.f32.xlu1 %v1685_v40  ;;  %4463 = vmatprep.subr.mxu1 %v1727_v31 }
 0x6c3   :  { %v1682_v42 = vsel %vm72_vm0, %v1678_v41, 0.0  ;;  %4464 = vmatpush3.msra.mxu1 %v1727_v31 }
 0x6c4   :  { %1683 = vadd.xlane.f32.xlu0 %v1682_v42  ;;  %4465 = vmatprep.subr.mxu1 %v1726_v52 }
 0x6c5   :  { %4466 = vmatpush3.msra.mxu1 %v1726_v52 }
 0x6c6   :  { %4467 = vmatprep.subr.mxu1 %v1725_v53 }
 0x6c7   :  { %4468 = vmatpush3.msra.mxu1 %v1725_v53 }
 0x6c8   :  { %4469 = vmatprep.subr.mxu1 %v1724_v55 }
 0x6c9   :  { %4470 = vmatpush3.msra.mxu1 %v1724_v55 }
 0x74b   :  { %v1687_v43 = vpop.xlane.xlu1 %1686 }
 0x74c   :  { %v1689_v44 = vmul.f32 0.03125, %v1687_v43 }
 0x74d   :  { %v1684_v45 = vpop.xlane.xlu0 %1683 }
 0x74e   :  { %v1688_v46 = vmul.f32 0.03125, %v1684_v45  ;;  %v1691_v47 = vsub.f32 %v1679_v37, %v1689_v44  ;;  %v4149_v45 = vld [vmem:[%s5594_s14] ss:$0 sm:$0xff] }
 0x750   :  { %v1690_v48 = vsub.f32 %v1678_v41, %v1688_v46  ;;  %v1693_v51 = vmul.f32 %v1691_v47, %v1691_v47 }
 0x752   :  { %v1692_v49 = vmul.f32 %v1690_v48, %v1690_v48  ;;  %v1697_v33 = vsel %vm72_vm0, %v1693_v51, 0.0 }
 0x754   :  { %v1694_v50 = vsel %vm72_vm0, %v1692_v49, 0.0 }
 0x755   :  { %1695 = vadd.xlane.f32.xlu0 %v1694_v50 }
 0x759   :  { %1698 = vadd.xlane.f32.xlu0 %v1697_v33 }
 0x7de   :  { %v1696_v57 = vpop.xlane.xlu0 %1695 }
 0x7df   :  { %v1700_v58 = vmul.f32 0.03125, %v1696_v57 }
 0x7e1   :  { %v1702_v59 = vadd.f32 1e-06, %v1700_v58 }
 0x7e2   :  { %v1699_v61 = vpop.xlane.xlu0 %1698 }
 0x7e3   :  { %4707 = vrsqrt.f32 %v1702_v59  ;;  %v1701_v62 = vmul.f32 0.03125, %v1699_v61 }
 0x7e5   :  { %v1703_v63 = vadd.f32 1e-06, %v1701_v62 }
 0x7e7   :  { %4709 = vrsqrt.f32 %v1703_v63 }
 0x7f0   :  { %v4708_v0 = vpop.eup %4707 }
 0x7f1   :  { %v1706_v2 = vmul.f32 %v4708_v0, %v1690_v48 }
 0x7f3   :  { %v1714_v4 = vmul.f32 %v4144_v1, %v1706_v2  ;;  %v4156_v2 = vld [vmem:[%s5631_s0 + $0x30] sm:$0xff] }
 0x7f4   :  { %v4710_v5 = vpop.eup %4709 }
 0x7f5   :  { %v1707_v6 = vmul.f32 %v4710_v5, %v1691_v47  ;;  %v5174_v7 = vadd.f32 %v4145_v3, %v1714_v4  ;;  %v4154_v4 = vld [vmem:[%s5631_s0 + $0x20] sm:$0xff] }
 0x7f7   :  { %v1715_v8 = vmul.f32 %v4144_v1, %v1707_v6  ;;  %4471 = vmatprep.mubr.msk.f32.mxu1 %vm72_vm0, %v5174_v7  ;;  %v4157_v1 = vld [vmem:[%s5631_s0 + $0x38] sm:$0xff] }
 0x7f8   :  { %4493 = vmatprep.subr.mxu1 %v4157_v1 }
 0x7f9   :  { %v5178_v9 = vadd.f32 %v4145_v3, %v1715_v8  ;;  %v4155_v3 = vld [vmem:[%s5631_s0 + $0x28] sm:$0xff] }
 0x7fb   :  { %4472 = vmatmul.mubr.msk.f32.vlgmr.msra.gmra.mxu1 %vm72_vm0, %v5178_v9 }
 0x7fc   :  { %4494 = vmatpush3.msra.mxu1 %v4157_v1 }
 0x7fd   :  { %4495 = vmatprep.subr.mxu1 %v4156_v2 }
 0x7fe   :  { %4496 = vmatpush3.msra.mxu1 %v4156_v2 }
 0x7ff   :  { %4497 = vmatprep.subr.mxu1 %v4155_v3 }
 0x800   :  { %4498 = vmatpush3.msra.mxu1 %v4155_v3 }
 0x801   :  { %4499 = vmatprep.subr.mxu1 %v4154_v4 }
 0x802   :  { %4500 = vmatpush3.msra.mxu1 %v4154_v4 }
 0x803   :  { %4504 = vmatprep.subr.mxu1 %v4769_v34 }
 0x8bb   :  { %v4473_v19 = vpop.f32.mrf.mxu1 }
 0x8bc   :  { %v1813_v20 = vadd.f32 %v4473_v19, %v4146_v18 }
 0x8bd   :  { %v1807_v21 = vpop.f32.mrf.mxu1 }
 0x8be   :  { %v1819_v22 = vmul.f32 0.044715, %v1813_v20  ;;  %v1808_v23 = vadd.f32 %v4146_v18, %v1807_v21  ;;  %v1817_v42 = vmul.f32 0.5, %v1813_v20 }
 0x8c0   :  { %v1821_v24 = vmul.f32 %v1819_v22, %v1813_v20  ;;  %v1818_v25 = vmul.f32 0.044715, %v1808_v23  ;;  %v1816_v40 = vmul.f32 0.5, %v1808_v23  ;;  %v4159_v22 = vld [vmem:[%s5634_s6 + $0x1] ss:$0 sm:$0xff]  ;;  %s5639_s6 = smov 72  }
 0x8c2   :  { %v1823_v26 = vmul.f32 %v1821_v24, %v1813_v20  ;;  %v1820_v27 = vmul.f32 %v1818_v25, %v1808_v23 }
 0x8c4   :  { %v1825_v28 = vadd.f32 %v1823_v26, %v1813_v20  ;;  %v1822_v29 = vmul.f32 %v1820_v27, %v1808_v23 }
 0x8c6   :  { %v1827_v30 = vmul.f32 0.7978846, %v1825_v28  ;;  %v1824_v32 = vadd.f32 %v1822_v29, %v1808_v23 }
 0x8c8   :  { %4711 = vtanh.f32 %v1827_v30  ;;  %v1826_v35 = vmul.f32 0.7978846, %v1824_v32 }
 0x8ca   :  { %4713 = vtanh.f32 %v1826_v35 }
 0x8d5   :  { %v4712_v39 = vpop.eup %4711 }
 0x8d6   :  { %v1831_v37 = vadd.f32 1.0, %v4712_v39 }
 0x8d7   :  { %v4714_v36 = vpop.eup %4713 }
 0x8d8   :  { %v1830_v41 = vadd.f32 1.0, %v4714_v36  ;;  %v1833_v44 = vmul.f32 %v1831_v37, %v1817_v42 }
 0x8da   :  { %v1832_v43 = vmul.f32 %v1830_v41, %v1816_v40 }
 0x8dc   :  { %4490 = vmatprep.mubr.msk.f32.mxu0 %vm1849_vm6, %v1832_v43 }
 0x8dd   :  { %4491 = vmatmul.mubr.msk.f32.vlgmr.msra.gmra.mxu0 %vm1849_vm6, %v1833_v44 }
 0x8de   :  { %4516 = vmatprep.mubr.msk.f32.mxu0 %vm4770_vm1, %v4769_v34 }
 0x99d   :  { %v4492_v46 = vpop.f32.mrf.mxu0 }
 0x99e   :  { %v1928_v47 = vadd.f32 %v4492_v46, %v4149_v45 }
 0x99f   :  { %v1922_v48 = vpop.f32.mrf.mxu0 }
 0x9a0   :  { %v1923_v49 = vadd.f32 %v4149_v45, %v1922_v48  ;;  %v1932_v50 = vadd.f32 %v1928_v47, %v5178_v9 }
 0x9a2   :  { %v1938_v51 = vsel %vm72_vm0, %v1932_v50, 0.0  ;;  %v1931_v33 = vadd.f32 %v1923_v49, %v5174_v7 }
 0x9a3   :  { %1939 = vadd.xlane.f32.xlu1 %v1938_v51 }
 0x9a4   :  { %v1935_v31 = vsel %vm72_vm0, %v1931_v33, 0.0 }
 0x9a5   :  { %1936 = vadd.xlane.f32.xlu0 %v1935_v31 }
 0xa2c   :  { %v1940_v52 = vpop.xlane.xlu1 %1939 }
 0xa2d   :  { %v1942_v53 = vmul.f32 0.03125, %v1940_v52 }
 0xa2e   :  { %v1937_v55 = vpop.xlane.xlu0 %1936 }
 0xa2f   :  { %v1944_v57 = vsub.f32 %v1932_v50, %v1942_v53  ;;  %v1941_v58 = vmul.f32 0.03125, %v1937_v55 }
 0xa31   :  { %v1943_v59 = vsub.f32 %v1931_v33, %v1941_v58  ;;  %v1946_v61 = vmul.f32 %v1944_v57, %v1944_v57 }
 0xa33   :  { %v1950_v62 = vsel %vm72_vm0, %v1946_v61, 0.0  ;;  %v1945_v63 = vmul.f32 %v1943_v59, %v1943_v59 }
 0xa34   :  { %1951 = vadd.xlane.f32.xlu1 %v1950_v62 }
 0xa35   :  { %v1947_v0 = vsel %vm72_vm0, %v1945_v63, 0.0 }
 0xa36   :  { %1948 = vadd.xlane.f32.xlu0 %v1947_v0 }
 0xabd   :  { %v1952_v5 = vpop.xlane.xlu1 %1951 }
 0xabe   :  { %v1954_v6 = vmul.f32 0.03125, %v1952_v5 }
 0xabf   :  { %v1949_v7 = vpop.xlane.xlu0 %1948 }
 0xac0   :  { %v1956_v8 = vadd.f32 1e-06, %v1954_v6  ;;  %v1953_v9 = vmul.f32 0.03125, %v1949_v7 }
 0xac2   :  { %4715 = vrsqrt.f32 %v1956_v8  ;;  %v1955_v11 = vadd.f32 1e-06, %v1953_v9 }
 0xac4   :  { %4717 = vrsqrt.f32 %v1955_v11 }
 0xacf   :  { %v4716_v38 = vpop.eup %4715 }
 0xad0   :  { %v1960_v12 = vmul.f32 %v4716_v38, %v1944_v57 }
 0xad1   :  { %v4718_v13 = vpop.eup %4717 }
 0xad2   :  { %v1959_v14 = vmul.f32 %v4718_v13, %v1943_v59  ;;  %v1968_v15 = vmul.f32 %v4152_v10, %v1960_v12 }
 0xad4   :  { %v1967_v18 = vmul.f32 %v4152_v10, %v1959_v14  ;;  %v5244_v20 = vadd.f32 %v4153_v16, %v1968_v15 }
 0xad6   :  { %v5242_v19 = vadd.f32 %v4153_v16, %v1967_v18 }
 0xad8   :  { %4501 = vmatprep.mubr.msk.f32.mxu1 %vm72_vm0, %v5242_v19 }
 0xad9   :  { %4502 = vmatmul.mubr.msk.f32.vlgmr.msra.gmra.mxu1 %vm72_vm0, %v5244_v20 }
 0xada   :  { %4506 = vmatprep.mubr.msk.f32.mxu1 %vm4770_vm1, %v4769_v34 }
 0xb99   :  { %v4503_v21 = vpop.f32.mrf.mxu1 }
 0xb9a   :  { %v5269_v25 = vadd.f32 %v4503_v21, %v4159_v22 }
 0xb9b   :  { %v2062_v23 = vpop.f32.mrf.mxu1 }
 0xb9c   :  { %v5255_v24 = vadd.f32 %v4159_v22, %v2062_v23 }
 0xb9e   :  { %2239 = vrot.lane.b32.xlu1 %v5255_v24, %s4771_s30  ;;  %2072 = vrot.lane.b32.xlu0 %v5255_v24, %s4772_s1 }
 0xba2   :  { %2237 = vrot.lane.b32.xlu1 %v5255_v24, %s4773_s22  ;;  %2404 = vrot.lane.b32.xlu0 %v5255_v24, %s5636_s29 }
 0xba6   :  { %2406 = vrot.lane.b32.xlu1 %v5255_v24, %s5637_s23  ;;  %2571 = vrot.lane.b32.xlu0 %v5255_v24, %s5638_s24 }
 0xbaa   :  { %2573 = vrot.lane.b32.xlu1 %v5255_v24, %s5639_s6  ;;  %2921 = vrot.lane.b32.xlu0 %v5269_v25, %s4771_s30  ;;  %s5640_s30 = smov 64  }
 0xbae   :  { %2754 = vrot.lane.b32.xlu1 %v5269_v25, %s4772_s1  ;;  %3088 = vrot.lane.b32.xlu0 %v5269_v25, %s5637_s23  ;;  %s5641_s1 = smov 48  }
 0xbb2   :  { %2919 = vrot.lane.b32.xlu1 %v5269_v25, %s4773_s22  ;;  %3255 = vrot.lane.b32.xlu0 %v5269_v25, %s5639_s6  ;;  %s5642_s22 = smov 40   ;;  %s5644_s6 = smov 24  }
 0xbb6   :  { %3086 = vrot.lane.b32.xlu1 %v5269_v25, %s5636_s29 }
 0xbba   :  { %3253 = vrot.lane.b32.xlu1 %v5269_v25, %s5638_s24 }
 0xc10   :  { %v2240_v26 = vpop.permute.xlu1 %2239  ;;  %v2073_v27 = vpop.permute.xlu0 %2072 }
 0xc11   :  { %4505 = vmatpush3.xpose.msk.msra.mxu1 %vm222_vm2, %v2073_v27  ;;  %4515 = vmatpush3.xpose.msk.msra.mxu0 %vm222_vm2, %v2240_v26 }
 0xc12   :  { %4524 = vmatprep.subr.mxu0 %v4769_v34  ;;  %4509 = vmatprep.subr.mxu1 %v4769_v34 }
 0xc14   :  { %v2238_v28 = vpop.permute.xlu1 %2237  ;;  %4507 = vmatmul.mubr.msk.f32.vlgmr.msra.gmra.mxu1 %vm222_vm2, %v5255_v24  ;;  %v2405_v29 = vpop.permute.xlu0 %2404 }
 0xc15   :  { %4517 = vmatmul.mubr.msk.f32.vlgmr.msra.gmra.mxu0 %vm222_vm2, %v2238_v28  ;;  %4511 = vmatprep.mubr.msk.f32.mxu1 %vm4770_vm1, %v4769_v34 }
 0xc16   :  { %4526 = vmatprep.mubr.msk.f32.mxu0 %vm4770_vm1, %v4769_v34 }
 0xc18   :  { %v2407_v30 = vpop.permute.xlu1 %2406  ;;  %v2572_v32 = vpop.permute.xlu0 %2571 }
 0xc19   :  { %4525 = vmatpush3.xpose.msk.msra.mxu0 %vm222_vm2, %v2407_v30 }
 0xc1a   :  { %4534 = vmatprep.subr.mxu0 %v4769_v34 }
 0xc1c   :  { %v2574_v35 = vpop.permute.xlu1 %2573  ;;  %4527 = vmatmul.mubr.msk.f32.vlgmr.msra.gmra.mxu0 %vm222_vm2, %v2405_v29  ;;  %v2922_v39 = vpop.permute.xlu0 %2921 }
 0xc1d   :  { %4535 = vmatpush3.xpose.msk.msra.mxu0 %vm222_vm2, %v2574_v35  ;;  %4536 = vmatprep.mubr.msk.f32.mxu0 %vm4770_vm1, %v4769_v34 }
 0xc1e   :  { %4544 = vmatprep.subr.mxu0 %v4769_v34 }
 0xc20   :  { %v2755_v36 = vpop.permute.xlu1 %2754  ;;  %4537 = vmatmul.mubr.msk.f32.vlgmr.msra.gmra.mxu0 %vm222_vm2, %v2572_v32  ;;  %v3089_v40 = vpop.permute.xlu0 %3088 }
 0xc21   :  { %4545 = vmatpush3.xpose.msk.msra.mxu0 %vm222_vm2, %v2755_v36  ;;  %4546 = vmatprep.mubr.msk.f32.mxu0 %vm4770_vm1, %v4769_v34 }
 0xc22   :  { %4554 = vmatprep.subr.mxu0 %v4769_v34 }
 0xc24   :  { %v2920_v37 = vpop.permute.xlu1 %2919  ;;  %4547 = vmatmul.mubr.msk.f32.vlgmr.msra.gmra.mxu0 %vm222_vm2, %v5269_v25  ;;  %v3256_v42 = vpop.permute.xlu0 %3255 }
 0xc25   :  { %4555 = vmatpush3.xpose.msk.msra.mxu0 %vm222_vm2, %v2922_v39  ;;  %4556 = vmatprep.mubr.msk.f32.mxu0 %vm4770_vm1, %v4769_v34 }
 0xc26   :  { %4564 = vmatprep.subr.mxu0 %v4769_v34 }
 0xc28   :  { %4557 = vmatmul.mubr.msk.f32.vlgmr.msra.gmra.mxu0 %vm222_vm2, %v2920_v37  ;;  %v3087_v41 = vpop.permute.xlu1 %3086 }
 0xc29   :  { %4565 = vmatpush3.xpose.msk.msra.mxu0 %vm222_vm2, %v3089_v40  ;;  %4566 = vmatprep.mubr.msk.f32.mxu0 %vm4770_vm1, %v4769_v34 }
 0xc2a   :  { %4574 = vmatprep.subr.mxu0 %v4769_v34 }
 0xc2c   :  { %4567 = vmatmul.mubr.msk.f32.vlgmr.msra.gmra.mxu0 %vm222_vm2, %v3087_v41  ;;  %v3254_v43 = vpop.permute.xlu1 %3253 }
 0xc2d   :  { %4575 = vmatpush3.xpose.msk.msra.mxu0 %vm222_vm2, %v3256_v42  ;;  %4576 = vmatprep.mubr.msk.f32.mxu0 %vm4770_vm1, %v4769_v34 }
 0xc30   :  { %4577 = vmatmul.mubr.msk.f32.vlgmr.msra.gmra.mxu0 %vm222_vm2, %v3254_v43 }
 0xcd4   :  { %v2144_v44 = vpop.f32.mrf.mxu1 }
 0xcd5   :  { %v2148_v45 = vmul.f32 0.35355338, %v2144_v44  ;;  %v2311_v46 = vpop.f32.mrf.mxu0 }
 0xcd6   :  { %v2315_v47 = vmul.f32 0.35355338, %v2311_v46  ;;  %v4508_v48 = vpop.f32.mrf.mxu1 }
 0xcd7   :  { %v4518_v49 = vpop.f32.mrf.mxu0  ;;  %v2149_v50 = vadd.f32 %v2148_v45, %v5019_v60 }
 0xcd8   :  { %v2316_v51 = vadd.f32 %v2315_v47, %v5019_v60 }
 0xcd9   :  { %v2150_v33 = vsel %vm222_vm2, %v2149_v50, -inf }
 0xcda   :  { %2151 = vmax.xlane.f32.xlu0 %v2150_v33  ;;  %v2317_v31 = vsel %vm222_vm2, %v2316_v51, -inf }
 0xcdb   :  { %2318 = vmax.xlane.f32.xlu1 %v2317_v31 }
 0xcdc   :  { %v2478_v52 = vpop.f32.mrf.mxu0 }
 0xcdd   :  { %v2482_v53 = vmul.f32 0.35355338, %v2478_v52 }
 0xcde   :  { %v4528_v55 = vpop.f32.mrf.mxu0 }
 0xcdf   :  { %v5331_v57 = vadd.f32 %v2482_v53, %v5019_v60 }
 0xce0   :  { %v2645_v58 = vpop.f32.mrf.mxu0 }
 0xce1   :  { %v2649_v59 = vmul.f32 0.35355338, %v2645_v58  ;;  %v2484_v61 = vsel %vm222_vm2, %v5331_v57, -inf }
 0xce2   :  { %2485 = vmax.xlane.f32.xlu0 %v2484_v61  ;;  %v4538_v62 = vpop.f32.mrf.mxu0 }
 0xce3   :  { %v2650_v63 = vadd.f32 %v2649_v59, %v5019_v60 }
 0xce4   :  { %v2826_v0 = vpop.f32.mrf.mxu0 }
 0xce5   :  { %v2830_v1 = vmul.f32 0.35355338, %v2826_v0  ;;  %v2651_v2 = vsel %vm222_vm2, %v2650_v63, -inf }
 0xce6   :  { %2652 = vmax.xlane.f32.xlu0 %v2651_v2  ;;  %v4548_v3 = vpop.f32.mrf.mxu0 }
 0xce7   :  { %v2831_v4 = vadd.f32 %v2830_v1, %v5032_v17 }
 0xce8   :  { %v2993_v5 = vpop.f32.mrf.mxu0 }
 0xce9   :  { %v2997_v6 = vmul.f32 0.35355338, %v2993_v5  ;;  %v2832_v7 = vsel %vm222_vm2, %v2831_v4, -inf }
 0xcea   :  { %2833 = vmax.xlane.f32.xlu0 %v2832_v7  ;;  %v4558_v8 = vpop.f32.mrf.mxu0 }
 0xceb   :  { %v2998_v9 = vadd.f32 %v2997_v6, %v5032_v17 }
 0xcec   :  { %v3160_v11 = vpop.f32.mrf.mxu0 }
 0xced   :  { %v3164_v38 = vmul.f32 0.35355338, %v3160_v11  ;;  %v2999_v60 = vsel %vm222_vm2, %v2998_v9, -inf }
 0xcee   :  { %3000 = vmax.xlane.f32.xlu1 %v2999_v60  ;;  %v4568_v10 = vpop.f32.mrf.mxu0 }
 0xcef   :  { %v3165_v12 = vadd.f32 %v3164_v38, %v5032_v17 }
 0xcf0   :  { %v3327_v13 = vpop.f32.mrf.mxu0 }
 0xcf1   :  { %v3166_v14 = vsel %vm222_vm2, %v3165_v12, -inf  ;;  %v3331_v16 = vmul.f32 0.35355338, %v3327_v13 }
 0xcf2   :  { %3167 = vmax.xlane.f32.xlu0 %v3166_v14  ;;  %v4578_v15 = vpop.f32.mrf.mxu0 }
 0xcf3   :  { %v3332_v18 = vadd.f32 %v3331_v16, %v5032_v17 }
 0xcf5   :  { %v3333_v21 = vsel %vm222_vm2, %v3332_v18, -inf }
 0xcff   :  { %2161 = vrot.lane.b32.xlu1 %v5255_v24, %s5640_s30 }
 0xd23   :  { %3334 = vmax.xlane.f32.xlu1 %v3333_v21 }
 0xd34   :  { %2495 = vrot.lane.b32.xlu1 %v5255_v24, %s5641_s1 }
 0xd38   :  { %2662 = vrot.lane.b32.xlu1 %v5255_v24, %s5642_s22 }
 0xd3c   :  { %2843 = vrot.lane.b32.xlu1 %v5269_v25, %s5640_s30 }
 0xd63   :  { %v2152_v22 = vpop.xlane.xlu0 %2151 }
 0xd64   :  { %v2153_v23 = vsub.f32 %v2149_v50, %v2152_v22  ;;  %v2319_v26 = vpop.xlane.xlu1 %2318 }
 0xd65   :  { %v2320_v27 = vsub.f32 %v2316_v51, %v2319_v26 }
 0xd66   :  { %v2154_v28 = vmul.f32 1.442695, %v2153_v23 }
 0xd67   :  { %v2321_v29 = vmul.f32 1.442695, %v2320_v27 }
 0xd68   :  { %4719 = vpow2.f32 %v2154_v28 }
 0xd69   :  { %4721 = vpow2.f32 %v2321_v29 }
 0xd6b   :  { %v2486_v17 = vpop.xlane.xlu0 %2485 }
 0xd6c   :  { %v2487_v45 = vsub.f32 %v5331_v57, %v2486_v17 }
 0xd6e   :  { %v2488_v47 = vmul.f32 1.442695, %v2487_v45  ;;  %v4189_v45 = vld [vmem:[%s5587_s7 + $0x38] sm:$0xff] }
 0xd6f   :  { %v2653_v30 = vpop.xlane.xlu0 %2652  ;;  %4584 = vmatprep.subr.mxu0 %v4189_v45 }
 0xd70   :  { %v2654_v32 = vsub.f32 %v2650_v63, %v2653_v30  ;;  %4585 = vmatpush3.msra.mxu0 %v4189_v45 }
 0xd72   :  { %v2655_v35 = vmul.f32 1.442695, %v2654_v32 }
 0xd73   :  { %v2834_v46 = vpop.xlane.xlu0 %2833 }
 0xd74   :  { %4723 = vpow2.f32 %v2655_v35  ;;  %v2835_v48 = vsub.f32 %v2831_v4, %v2834_v46  ;;  %v4188_v46 = vld [vmem:[%s5587_s7 + $0x30] sm:$0xff] }
 0xd75   :  { %v4720_v39 = vpop.eup %4719  ;;  %4725 = vpow2.f32 %v2488_v47  ;;  %4586 = vmatprep.subr.mxu0 %v4188_v46 }
 0xd76   :  { %v5353_v36 = vpop.eup %4721  ;;  %v2156_v37 = vsel %vm222_vm2, %v4720_v39, 0.0  ;;  %v2836_v50 = vmul.f32 1.442695, %v2835_v48  ;;  %4587 = vmatpush3.msra.mxu0 %v4188_v46 }
 0xd77   :  { %v3001_v40 = vpop.xlane.xlu1 %3000  ;;  %2157 = vadd.xlane.f32.xlu0 %v2156_v37  ;;  %v2323_v41 = vsel %vm222_vm2, %v5353_v36, 0.0 }
 0xd78   :  { %2324 = vadd.xlane.f32.xlu1 %v2323_v41  ;;  %4727 = vpow2.f32 %v2836_v50  ;;  %v3002_v33 = vsub.f32 %v2998_v9, %v3001_v40  ;;  %v4186_v50 = vld [vmem:[%s5587_s7 + $0x20] sm:$0xff] }
 0xd7a   :  { %v3003_v52 = vmul.f32 1.442695, %v3002_v33 }
 0xd7b   :  { %v2162_v42 = vpop.permute.xlu1 %2161  ;;  %v3168_v49 = vpop.xlane.xlu0 %3167 }
 0xd7c   :  { %4510 = vmatpush3.msra.mxu1 %v2162_v42  ;;  %v3169_v51 = vsub.f32 %v3165_v12, %v3168_v49  ;;  %v4187_v49 = vld [vmem:[%s5587_s7 + $0x28] sm:$0xff] }
 0xd7d   :  { %4519 = vmatprep.subr.mxu1 %v4769_v34  ;;  %4588 = vmatprep.subr.mxu0 %v4187_v49 }
 0xd7e   :  { %v3170_v31 = vmul.f32 1.442695, %v3169_v51  ;;  %4589 = vmatpush3.msra.mxu0 %v4187_v49 }
 0xd7f   :  { %4590 = vmatprep.subr.mxu0 %v4186_v50 }
 0xd80   :  { %4729 = vpow2.f32 %v3170_v31  ;;  %4591 = vmatpush3.msra.mxu0 %v4186_v50  ;;  %v4213_v50 = vld [vmem:[%s5592_s13 + $0x78] sm:$0xff] }
 0xd81   :  { %v5359_v43 = vpop.eup %4723  ;;  %4731 = vpow2.f32 %v3003_v52  ;;  %4606 = vmatprep.subr.mxu0 %v4213_v50 }
 0xd82   :  { %v2657_v44 = vsel %vm222_vm2, %v5359_v43, 0.0  ;;  %v4726_v53 = vpop.eup %4725 }
 0xd83   :  { %2658 = vadd.xlane.f32.xlu1 %v2657_v44 }
 0xd85   :  { %v5369_v55 = vpop.eup %4727 }
 0xd86   :  { %v2838_v61 = vsel %vm222_vm2, %v5369_v55, 0.0 }
 0xd8d   :  { %2328 = vrot.lane.b32.xlu0 %v5255_v24, %s5643_s3  ;;  %v2490_v24 = vsel %vm222_vm2, %v4726_v53, 0.0  ;;  %v5373_v62 = vpop.eup %4729 }
 0xd8e   :  { %v3172_v63 = vsel %vm222_vm2, %v5373_v62, 0.0  ;;  %v4732_v0 = vpop.eup %4731 }
 0xd8f   :  { %v3005_v1 = vsel %vm222_vm2, %v4732_v0, 0.0 }
 0xd94   :  { %3010 = vrot.lane.b32.xlu1 %v5269_v25, %s5643_s3 }
 0xdac   :  { %v3335_v57 = vpop.xlane.xlu1 %3334  ;;  %2491 = vadd.xlane.f32.xlu0 %v2490_v24 }
 0xdad   :  { %v3336_v58 = vsub.f32 %v3332_v18, %v3335_v57 }
 0xdaf   :  { %v3337_v59 = vmul.f32 1.442695, %v3336_v58 }
 0xdb0   :  { %2839 = vadd.xlane.f32.xlu0 %v2838_v61  ;;  %v2496_v4 = vpop.permute.xlu1 %2495 }
 0xdb1   :  { %4733 = vpow2.f32 %v3337_v59 }
 0xdb4   :  { %3173 = vadd.xlane.f32.xlu0 %v3172_v63  ;;  %v2663_v5 = vpop.permute.xlu1 %2662 }
 0xdb8   :  { %3006 = vadd.xlane.f32.xlu1 %v3005_v1  ;;  %v2844_v6 = vpop.permute.xlu1 %2843 }
 0xdbe   :  { %v5378_v2 = vpop.eup %4733 }
 0xdbf   :  { %v3339_v3 = vsel %vm222_vm2, %v5378_v2, 0.0 }
 0xdc0   :  { %3340 = vadd.xlane.f32.xlu0 %v3339_v3 }
 0xdc9   :  { %3344 = vrot.lane.b32.xlu1 %v5269_v25, %s5642_s22 }
 0xdd6   :  { %3177 = vrot.lane.b32.xlu0 %v5269_v25, %s5641_s1 }
 0xe00   :  { %v2158_v7 = vpop.xlane.xlu0 %2157 }
 0xe01   :  { %4735 = vrcp.f32 %v2158_v7  ;;  %v2325_v8 = vpop.xlane.xlu1 %2324 }
 0xe02   :  { %4737 = vrcp.f32 %v2325_v8  ;;  %v4191_v8 = vld [vmem:[%s5588_s8 + $0x1] ss:$0 sm:$0xff] }
 0xe04   :  { %v2329_v60 = vpop.permute.xlu0 %2328 }
 0xe0c   :  { %v2659_v10 = vpop.xlane.xlu1 %2658 }
 0xe0e   :  { %v4736_v9 = vpop.eup %4735 }
 0xe0f   :  { %v2160_v11 = vmul.f32 %v4736_v9, %v4720_v39  ;;  %v4738_v38 = vpop.eup %4737 }
 0xe10   :  { %v2327_v25 = vmul.f32 %v4738_v38, %v5353_v36  ;;  %v3011_v14 = vpop.permute.xlu1 %3010 }
 0xe11   :  { %4512 = vmatmul.mubr.msk.f32.vlgmr.msra.gmra.mxu1 %vm222_vm2, %v2160_v11 }
 0xe12   :  { %4520 = vmatpush3.msra.mxu1 %v2329_v60  ;;  %4521 = vmatprep.mubr.msk.f32.mxu1 %vm4770_vm1, %v4769_v34 }
 0xe13   :  { %4529 = vmatprep.subr.mxu1 %v4769_v34 }
 0xe15   :  { %4522 = vmatmul.mubr.msk.f32.vlgmr.msra.gmra.mxu1 %vm222_vm2, %v2327_v25 }
 0xe16   :  { %4530 = vmatpush3.msra.mxu1 %v2496_v4  ;;  %4531 = vmatprep.mubr.msk.f32.mxu1 %vm4770_vm1, %v4769_v34 }
 0xe17   :  { %4539 = vmatprep.subr.mxu1 %v4769_v34 }
 0xe35   :  { %v2492_v12 = vpop.xlane.xlu0 %2491 }
 0xe36   :  { %4739 = vrcp.f32 %v2492_v12 }
 0xe37   :  { %4741 = vrcp.f32 %v2659_v10 }
 0xe39   :  { %v2840_v13 = vpop.xlane.xlu0 %2839 }
 0xe3a   :  { %4743 = vrcp.f32 %v2840_v13 }
 0xe3d   :  { %v3174_v15 = vpop.xlane.xlu0 %3173 }
 0xe41   :  { %v3007_v16 = vpop.xlane.xlu1 %3006 }
 0xe42   :  { %4745 = vrcp.f32 %v3007_v16 }
 0xe43   :  { %v4740_v18 = vpop.eup %4739  ;;  %4747 = vrcp.f32 %v3174_v15 }
 0xe44   :  { %v2494_v21 = vmul.f32 %v4740_v18, %v4726_v53  ;;  %v4742_v22 = vpop.eup %4741 }
 0xe45   :  { %v2661_v23 = vmul.f32 %v4742_v22, %v5359_v43  ;;  %v3345_v39 = vpop.permute.xlu1 %3344 }
 0xe46   :  { %4532 = vmatmul.mubr.msk.f32.vlgmr.msra.gmra.mxu1 %vm222_vm2, %v2494_v21 }
 0xe47   :  { %4540 = vmatpush3.msra.mxu1 %v2663_v5  ;;  %4541 = vmatprep.mubr.msk.f32.mxu1 %vm4770_vm1, %v4769_v34  ;;  %v4744_v26 = vpop.eup %4743 }
 0xe48   :  { %4549 = vmatprep.subr.mxu1 %v4769_v34  ;;  %v2842_v28 = vmul.f32 %v4744_v26, %v5369_v55 }
 0xe49   :  { %v3341_v27 = vpop.xlane.xlu0 %3340 }
 0xe4a   :  { %4749 = vrcp.f32 %v3341_v27  ;;  %4542 = vmatmul.mubr.msk.f32.vlgmr.msra.gmra.mxu1 %vm222_vm2, %v2661_v23 }
 0xe4b   :  { %4550 = vmatpush3.msra.mxu1 %v2844_v6  ;;  %4551 = vmatprep.mubr.msk.f32.mxu1 %vm4770_vm1, %v4769_v34 }
 0xe4c   :  { %4559 = vmatprep.subr.mxu1 %v4769_v34 }
 0xe4d   :  { %v3178_v32 = vpop.permute.xlu0 %3177 }
 0xe4e   :  { %4552 = vmatmul.mubr.msk.f32.vlgmr.msra.gmra.mxu1 %vm222_vm2, %v2842_v28  ;;  %v4200_v28 = vld [vmem:[%s5589_s11 + $0x30] sm:$0xff] }
 0xe4f   :  { %v4746_v29 = vpop.eup %4745  ;;  %4560 = vmatpush3.msra.mxu1 %v3011_v14  ;;  %4561 = vmatprep.mubr.msk.f32.mxu1 %vm4770_vm1, %v4769_v34 }
 0xe50   :  { %4569 = vmatprep.subr.mxu1 %v4769_v34  ;;  %v3009_v17 = vmul.f32 %v4746_v29, %v4732_v0  ;;  %v4748_v30 = vpop.eup %4747  ;;  %v4199_v29 = vld [vmem:[%s5589_s11 + $0x28] sm:$0xff] }
 0xe51   :  { %v3176_v35 = vmul.f32 %v4748_v30, %v5373_v62 }
 0xe52   :  { %4562 = vmatmul.mubr.msk.f32.vlgmr.msra.gmra.mxu1 %vm222_vm2, %v3009_v17  ;;  %v4198_v17 = vld [vmem:[%s5589_s11 + $0x20] sm:$0xff] }
 0xe53   :  { %4570 = vmatpush3.msra.mxu1 %v3178_v32  ;;  %4571 = vmatprep.mubr.msk.f32.mxu1 %vm4770_vm1, %v4769_v34 }
 0xe54   :  { %4579 = vmatprep.subr.mxu1 %v4769_v34 }
 0xe56   :  { %4572 = vmatmul.mubr.msk.f32.vlgmr.msra.gmra.mxu1 %vm222_vm2, %v3176_v35 }
 0xe57   :  { %v4750_v36 = vpop.eup %4749  ;;  %4580 = vmatpush3.msra.mxu1 %v3345_v39  ;;  %4581 = vmatprep.mubr.msk.f32.mxu1 %vm4770_vm1, %v4769_v34 }
 0xe58   :  { %v3343_v37 = vmul.f32 %v4750_v36, %v5378_v2 }
 0xe5a   :  { %4582 = vmatmul.mubr.msk.f32.vlgmr.msra.gmra.mxu1 %vm222_vm2, %v3343_v37 }
 0xed1   :  { %v2233_v40 = vpop.f32.mrf.mxu1 }
 0xed3   :  { %v4513_v41 = vpop.f32.mrf.mxu1 }
 0xed4   :  { %v4196_v41 = vld [vmem:[%s5590_s9 + $0x1] ss:$0 sm:$0xff] }
 0xed5   :  { %v2400_v42 = vpop.f32.mrf.mxu1 }
 0xed6   :  { %2739 = vrot.lane.b32.xlu0 %v2400_v42, %s4783_s26 }
 0xed7   :  { %v4523_v43 = vpop.f32.mrf.mxu1 }
 0xed8   :  { %v4197_v43 = vld [vmem:[%s5591_s10 + $0x1] ss:$0 sm:$0xff] }
 0xf06   :  { %v2567_v44 = vpop.f32.mrf.mxu1 }
 0xf07   :  { %2743 = vrot.lane.b32.xlu1 %v2567_v44, %s4784_s27 }
 0xf08   :  { %v4533_v47 = vpop.f32.mrf.mxu1 }
 0xf0a   :  { %v2734_v48 = vpop.f32.mrf.mxu1 }
 0xf0b   :  { %2747 = vrot.lane.b32.xlu1 %v2734_v48, %s5644_s6 }
 0xf0c   :  { %v4543_v51 = vpop.f32.mrf.mxu1 }
 0xf0d   :  { %v4212_v51 = vld [vmem:[%s5592_s13 + $0x70] sm:$0xff] }
 0xf0e   :  { %v2915_v33 = vpop.f32.mrf.mxu1 }
 0xf10   :  { %v4553_v31 = vpop.f32.mrf.mxu1 }
 0xf11   :  { %v4210_v31 = vld [vmem:[%s5592_s13 + $0x60] sm:$0xff] }
 0xf12   :  { %v3082_v52 = vpop.f32.mrf.mxu1 }
 0xf13   :  { %3421 = vrot.lane.b32.xlu0 %v3082_v52, %s4783_s26  ;;  %v4209_v52 = vld [vmem:[%s5592_s13 + $0x58] sm:$0xff] }
 0xf14   :  { %v4563_v53 = vpop.f32.mrf.mxu1 }
 0xf15   :  { %v4208_v53 = vld [vmem:[%s5592_s13 + $0x50] sm:$0xff] }
 0xf16   :  { %v3249_v24 = vpop.f32.mrf.mxu1 }
 0xf17   :  { %3425 = vrot.lane.b32.xlu0 %v3249_v24, %s4784_s27  ;;  %v4207_v24 = vld [vmem:[%s5592_s13 + $0x48] sm:$0xff] }
 0xf18   :  { %v4573_v55 = vpop.f32.mrf.mxu1 }
 0xf19   :  { %v4206_v55 = vld [vmem:[%s5592_s13 + $0x40] sm:$0xff] }
 0xf1a   :  { %v3416_v57 = vpop.f32.mrf.mxu1 }
 0xf1b   :  { %3429 = vrot.lane.b32.xlu1 %v3416_v57, %s5644_s6  ;;  %v4203_v57 = vld [vmem:[%s5593_s12 + $0x1] ss:$0 sm:$0xff] }
 0xf1c   :  { %v4583_v58 = vpop.f32.mrf.mxu1 }
 0xf48   :  { %v2740_v59 = vpop.permute.xlu0 %2739 }
 0xf49   :  { %v2750_v62 = vsel %vm222_vm2, %v2233_v40, %v2740_v59 }
 0xf79   :  { %v2744_v61 = vpop.permute.xlu1 %2743 }
 0xf7a   :  { %v2751_v63 = vsel %vm900_vm4, %v2750_v62, %v2744_v61 }
 0xf7d   :  { %v2748_v0 = vpop.permute.xlu1 %2747 }
 0xf7e   :  { %v2752_v1 = vsel %vm902_vm5, %v2751_v63, %v2748_v0 }
 0xf7f   :  { %4592 = vmatprep.mubr.msk.f32.mxu0 %vm72_vm0, %v2752_v1 }
 0xf85   :  { %v3422_v2 = vpop.permute.xlu0 %3421 }
 0xf86   :  { %v3432_v4 = vsel %vm222_vm2, %v2915_v33, %v3422_v2  ;;  %v4211_v33 = vld [vmem:[%s5592_s13 + $0x68] sm:$0xff] }
 0xf89   :  { %v3426_v3 = vpop.permute.xlu0 %3425 }
 0xf8a   :  { %v3433_v5 = vsel %vm900_vm4, %v3432_v4, %v3426_v3 }
 0xf8d   :  { %v3430_v6 = vpop.permute.xlu1 %3429 }
 0xf8e   :  { %v3434_v7 = vsel %vm902_vm5, %v3433_v5, %v3430_v6 }
 0xf8f   :  { %4593 = vmatmul.mubr.msk.f32.vlgmr.msra.gmra.mxu0 %vm72_vm0, %v3434_v7 }
 0xf90   :  { %4607 = vmatpush3.msra.mxu0 %v4213_v50 }
 0xf91   :  { %4608 = vmatprep.subr.mxu0 %v4212_v51 }
 0xf92   :  { %4609 = vmatpush3.msra.mxu0 %v4212_v51  ;;  %v4221_v51 = vld [vmem:[%s5596_s16 + $0x1] ss:$0 sm:$0xff] }
 0xf93   :  { %4610 = vmatprep.subr.mxu0 %v4211_v33 }
 0xf94   :  { %4611 = vmatpush3.msra.mxu0 %v4211_v33 }
 0xf95   :  { %4612 = vmatprep.subr.mxu0 %v4210_v31 }
 0xf96   :  { %4613 = vmatpush3.msra.mxu0 %v4210_v31 }
 0xf97   :  { %4614 = vmatprep.subr.mxu0 %v4209_v52 }
 0xf98   :  { %4615 = vmatpush3.msra.mxu0 %v4209_v52 }
 0xf99   :  { %4616 = vmatprep.subr.mxu0 %v4208_v53 }
 0xf9a   :  { %4617 = vmatpush3.msra.mxu0 %v4208_v53 }
 0xf9b   :  { %4618 = vmatprep.subr.mxu0 %v4207_v24 }
 0xf9c   :  { %4619 = vmatpush3.msra.mxu0 %v4207_v24 }
 0xf9d   :  { %4620 = vmatprep.subr.mxu0 %v4206_v55 }
 0xf9e   :  { %4621 = vmatpush3.msra.mxu0 %v4206_v55 }
0x104f   :  { %v4594_v9 = vpop.f32.mrf.mxu0 }
0x1050   :  { %v3526_v11 = vadd.f32 %v4594_v9, %v4191_v8 }
0x1051   :  { %v3520_v38 = vpop.f32.mrf.mxu0 }
0x1052   :  { %v3530_v60 = vadd.f32 %v3526_v11, %v5244_v20  ;;  %v3521_v25 = vadd.f32 %v4191_v8, %v3520_v38 }
0x1054   :  { %v3529_v10 = vadd.f32 %v3521_v25, %v5242_v19  ;;  %v3538_v12 = vsel %vm72_vm0, %v3530_v60, 0.0  ;;  %v4201_v19 = vld [vmem:[%s5589_s11 + $0x38] sm:$0xff] }
0x1055   :  { %3539 = vadd.xlane.f32.xlu1 %v3538_v12  ;;  %4595 = vmatprep.subr.mxu1 %v4201_v19 }
0x1056   :  { %v3535_v13 = vsel %vm72_vm0, %v3529_v10, 0.0  ;;  %4596 = vmatpush3.msra.mxu1 %v4201_v19 }
0x1057   :  { %3536 = vadd.xlane.f32.xlu0 %v3535_v13  ;;  %4597 = vmatprep.subr.mxu1 %v4200_v28 }
0x1058   :  { %4598 = vmatpush3.msra.mxu1 %v4200_v28 }
0x1059   :  { %4599 = vmatprep.subr.mxu1 %v4199_v29 }
0x105a   :  { %4600 = vmatpush3.msra.mxu1 %v4199_v29 }
0x105b   :  { %4601 = vmatprep.subr.mxu1 %v4198_v17 }
0x105c   :  { %4602 = vmatpush3.msra.mxu1 %v4198_v17 }
0x105d   :  { %4625 = vmatprep.subr.mxu1 %v4769_v34 }
0x10de   :  { %v3540_v14 = vpop.xlane.xlu1 %3539 }
0x10df   :  { %v3542_v15 = vmul.f32 0.03125, %v3540_v14  ;;  %v4215_v14 = vld [vmem:[%s5594_s14 + $0x1] ss:$0 sm:$0xff] }
0x10e0   :  { %v3537_v16 = vpop.xlane.xlu0 %3536 }
0x10e1   :  { %v3541_v18 = vmul.f32 0.03125, %v3537_v16  ;;  %v3544_v21 = vsub.f32 %v3530_v60, %v3542_v15 }
0x10e3   :  { %v3543_v22 = vsub.f32 %v3529_v10, %v3541_v18  ;;  %v3546_v27 = vmul.f32 %v3544_v21, %v3544_v21 }
0x10e5   :  { %v3545_v23 = vmul.f32 %v3543_v22, %v3543_v22  ;;  %v3550_v20 = vsel %vm72_vm0, %v3546_v27, 0.0 }
0x10e7   :  { %v3547_v26 = vsel %vm72_vm0, %v3545_v23, 0.0 }
0x10e8   :  { %3548 = vadd.xlane.f32.xlu0 %v3547_v26 }
0x10ec   :  { %3551 = vadd.xlane.f32.xlu0 %v3550_v20 }
0x1171   :  { %v3549_v30 = vpop.xlane.xlu0 %3548 }
0x1172   :  { %v3553_v32 = vmul.f32 0.03125, %v3549_v30 }
0x1174   :  { %v3555_v35 = vadd.f32 1e-06, %v3553_v32 }
0x1175   :  { %v3552_v39 = vpop.xlane.xlu0 %3551 }
0x1176   :  { %4751 = vrsqrt.f32 %v3555_v35  ;;  %v3554_v36 = vmul.f32 0.03125, %v3552_v39 }
0x1178   :  { %v3556_v37 = vadd.f32 1e-06, %v3554_v36 }
0x117a   :  { %4753 = vrsqrt.f32 %v3556_v37 }
0x1183   :  { %v4752_v40 = vpop.eup %4751 }
0x1184   :  { %v3559_v42 = vmul.f32 %v4752_v40, %v3543_v22 }
0x1186   :  { %v3567_v44 = vmul.f32 %v4196_v41, %v3559_v42 }
0x1187   :  { %v4754_v45 = vpop.eup %4753 }
0x1188   :  { %v3560_v46 = vmul.f32 %v4754_v45, %v3544_v21  ;;  %v5473_v47 = vadd.f32 %v4197_v43, %v3567_v44 }
0x118a   :  { %v3568_v48 = vmul.f32 %v4196_v41, %v3560_v46  ;;  %4603 = vmatprep.mubr.msk.f32.mxu1 %vm72_vm0, %v5473_v47  ;;  %v4220_v46 = vld [vmem:[%s5595_s15 + $0x1] ss:$0 sm:$0xff] }
0x118c   :  { %v3576_v49 = vadd.f32 %v4197_v43, %v3568_v48  ;;  %v3839_v48 = vmul.u32 8, %v5016_v56  ;;  %v3918_v56 = vld [vmem:[%s5597_s17 + $0x10] sm:$0xff] }
0x118e   :  { %4604 = vmatmul.mubr.msk.f32.vlgmr.msra.gmra.mxu1 %vm72_vm0, %v3576_v49 }
0x118f   :  { %4629 = vmatprep.mubr.msk.f32.mxu1 %vm4770_vm1, %v4769_v34 }
0x124e   :  { %v4605_v58 = vpop.f32.mrf.mxu1 }
0x124f   :  { %v3668_v59 = vadd.f32 %v4605_v58, %v4203_v57  ;;  %v3916_v58 = vld [vmem:[%s5597_s17] sm:$0xff] }
0x1250   :  { %v3662_v61 = vpop.f32.mrf.mxu1 }
0x1251   :  { %v3674_v62 = vmul.f32 0.044715, %v3668_v59  ;;  %v3663_v63 = vadd.f32 %v4203_v57, %v3662_v61  ;;  %v3672_v10 = vmul.f32 0.5, %v3668_v59  ;;  %v3917_v57 = vld [vmem:[%s5597_s17 + $0x8] sm:$0xff] }
0x1253   :  { %v3676_v0 = vmul.f32 %v3674_v62, %v3668_v59  ;;  %v3673_v1 = vmul.f32 0.044715, %v3663_v63  ;;  %v3671_v60 = vmul.f32 0.5, %v3663_v63  ;;  %v4004_v62 = vld [vmem:[%s5598_s19 + $0x18] sm:$0xff] }
0x1255   :  { %v3678_v2 = vmul.f32 %v3676_v0, %v3668_v59  ;;  %v3675_v3 = vmul.f32 %v3673_v1, %v3663_v63  ;;  %v4002_v0 = vld [vmem:[%s5598_s19 + $0x8] sm:$0xff]  ;;  %v4001_v1 = vld [vmem:[%s5598_s19] sm:$0xff] }
0x1257   :  { %v3680_v4 = vadd.f32 %v3678_v2, %v3668_v59  ;;  %v3677_v5 = vmul.f32 %v3675_v3, %v3663_v63  ;;  %v4224_v2 = vld [vmem:[%s5599_s18] ss:$0 sm:$0xff] }
0x1259   :  { %v3682_v6 = vmul.f32 0.7978846, %v3680_v4  ;;  %v3679_v7 = vadd.f32 %v3677_v5, %v3663_v63  ;;  %v4003_v63 = vld [vmem:[%s5598_s19 + $0x10] sm:$0xff] }
0x125b   :  { %4755 = vtanh.f32 %v3682_v6  ;;  %v3681_v8 = vmul.f32 0.7978846, %v3679_v7  ;;  %v4226_v7 = vld [vmem:[%s5600_s20] ss:$0 sm:$0xff] }
0x125d   :  { %4757 = vtanh.f32 %v3681_v8 }
0x1268   :  { %v4756_v9 = vpop.eup %4755 }
0x1269   :  { %v3686_v38 = vadd.f32 1.0, %v4756_v9 }
0x126a   :  { %v4758_v11 = vpop.eup %4757 }
0x126b   :  { %v3685_v25 = vadd.f32 1.0, %v4758_v11  ;;  %v3688_v13 = vmul.f32 %v3686_v38, %v3672_v10 }
0x126d   :  { %v3687_v12 = vmul.f32 %v3685_v25, %v3671_v60 }
0x126f   :  { %4622 = vmatprep.mubr.msk.f32.mxu0 %vm1849_vm6, %v3687_v12 }
0x1270   :  { %4623 = vmatmul.mubr.msk.f32.vlgmr.msra.gmra.mxu0 %vm1849_vm6, %v3688_v13 }
0x1330   :  { %v4624_v15 = vpop.f32.mrf.mxu0 }
0x1331   :  { %v3784_v16 = vadd.f32 %v4624_v15, %v4215_v14 }
0x1332   :  { %v3778_v18 = vpop.f32.mrf.mxu0 }
0x1333   :  { %v3788_v21 = vadd.f32 %v3784_v16, %v3576_v49  ;;  %v3779_v22 = vadd.f32 %v4215_v14, %v3778_v18  ;;  %v4098_v16 = vld [vmem:[%s5601_s2] sm:$0x3] }
0x1335   :  { %v3787_v23 = vadd.f32 %v3779_v22, %v5473_v47  ;;  %v3796_v26 = vsel %vm72_vm0, %v3788_v21, 0.0  ;;  %v3836_v47 = vand.u32 127, %v119_v54  ;;  %v3919_v54 = vld [vmem:[%s5597_s17 + $0x18] sm:$0xff] }
0x1336   :  { %3797 = vadd.xlane.f32.xlu0 %v3796_v26 }
0x1337   :  { %v3793_v27 = vsel %vm72_vm0, %v3787_v23, 0.0  ;;  %vm3840_vm7 = vcmp.eq.s32.totalorder %v3836_v47, %v3839_v48 }
0x1338   :  { %3794 = vadd.xlane.f32.xlu1 %v3793_v27  ;;  %v4222_v55 = vsel %vm3840_vm7, 1.0, %v4769_v34 }
0x13bf   :  { %v3798_v20 = vpop.xlane.xlu0 %3797 }
0x13c0   :  { %v3800_v19 = vmul.f32 0.03125, %v3798_v20 }
0x13c1   :  { %v3795_v28 = vpop.xlane.xlu1 %3794 }
0x13c2   :  { %v3802_v29 = vsub.f32 %v3788_v21, %v3800_v19  ;;  %v3799_v17 = vmul.f32 0.03125, %v3795_v28 }
0x13c4   :  { %v3801_v30 = vsub.f32 %v3787_v23, %v3799_v17  ;;  %v3804_v32 = vmul.f32 %v3802_v29, %v3802_v29 }
0x13c6   :  { %v3808_v35 = vsel %vm72_vm0, %v3804_v32, 0.0  ;;  %v3803_v39 = vmul.f32 %v3801_v30, %v3801_v30 }
0x13c7   :  { %3809 = vadd.xlane.f32.xlu0 %v3808_v35 }
0x13c8   :  { %v3805_v36 = vsel %vm72_vm0, %v3803_v39, 0.0 }
0x13c9   :  { %3806 = vadd.xlane.f32.xlu1 %v3805_v36 }
0x1450   :  { %v3810_v37 = vpop.xlane.xlu0 %3809 }
0x1451   :  { %v3812_v40 = vmul.f32 0.03125, %v3810_v37 }
0x1452   :  { %v3807_v41 = vpop.xlane.xlu1 %3806 }
0x1453   :  { %v3814_v42 = vadd.f32 1e-06, %v3812_v40  ;;  %v3811_v43 = vmul.f32 0.03125, %v3807_v41 }
0x1455   :  { %4759 = vrsqrt.f32 %v3814_v42  ;;  %v3813_v44 = vadd.f32 1e-06, %v3811_v43 }
0x1457   :  { %4761 = vrsqrt.f32 %v3813_v44 }
0x1462   :  { %v4760_v45 = vpop.eup %4759 }
0x1463   :  { %v3818_v49 = vmul.f32 %v4760_v45, %v3802_v29 }
0x1464   :  { %v4762_v50 = vpop.eup %4761 }
0x1465   :  { %v3826_v33 = vmul.f32 %v4220_v46, %v3818_v49  ;;  %v3817_v31 = vmul.f32 %v4762_v50, %v3801_v30 }
0x1467   :  { %v3834_v52 = vadd.f32 %v4221_v51, %v3826_v33  ;;  %v3825_v53 = vmul.f32 %v4220_v46, %v3817_v31 }
0x1469   :  { %4626 = vmatpush3.msra.mxu1 %v3834_v52  ;;  %v3833_v24 = vadd.f32 %v4221_v51, %v3825_v53 }
0x146a   :  { %4627 = vmatprep.subr.mxu1 %v4769_v34 }
0x146b   :  { %4628 = vmatpush3.msra.mxu1 %v3833_v24 }
0x146c   :  { %4630 = vmatmul.mubr.msk.f32.vlgmr.msra.gmra.mxu1 %vm900_vm4, %v4222_v55  ;;  %4632 = vmatprep.subr.mxu1 %v4769_v34 }
0x146d   :  { %4633 = vmatpush3.msra.mxu1 %v3919_v54  ;;  %4640 = vmatprep.mubr.msk.f32.mxu1 %vm4770_vm1, %v4769_v34 }
0x146e   :  { %4634 = vmatprep.subr.mxu1 %v4769_v34 }
0x146f   :  { %4635 = vmatpush3.msra.mxu1 %v3918_v56 }
0x1470   :  { %4636 = vmatprep.subr.mxu1 %v4769_v34 }
0x1471   :  { %4637 = vmatpush3.msra.mxu1 %v3917_v57 }
0x1472   :  { %4638 = vmatprep.subr.mxu1 %v4769_v34 }
0x1473   :  { %4639 = vmatpush3.msra.mxu1 %v3916_v58 }
0x1474   :  { %4643 = vmatprep.subr.mxu1 %v4769_v34 }
0x152c   :  { %v3912_v59 = vpop.f32.mrf.mxu1 }
0x152d   :  { %4641 = vmatmul.mubr.msk.f32.vlgmr.msra.gmra.mxu1 %vm72_vm0, %v3912_v59 }
0x152e   :  { %v4631_v61 = vpop.f32.mrf.mxu1  ;;  %4651 = vmatprep.mubr.msk.f32.mxu1 %vm4770_vm1, %v4769_v34  ;;  %4644 = vmatpush3.msra.mxu1 %v4004_v62 }
0x152f   :  { %4645 = vmatprep.subr.mxu1 %v4769_v34 }
0x1530   :  { %4646 = vmatpush3.msra.mxu1 %v4003_v63 }
0x1531   :  { %4647 = vmatprep.subr.mxu1 %v4769_v34 }
0x1532   :  { %4648 = vmatpush3.msra.mxu1 %v4002_v0 }
0x1533   :  { %4649 = vmatprep.subr.mxu1 %v4769_v34 }
0x1534   :  { %4650 = vmatpush3.msra.mxu1 %v4001_v1 }
0x15ed   :  { %v3996_v3 = vpop.f32.mrf.mxu1 }
0x15ee   :  { %v3997_v4 = vadd.f32 %v4224_v2, %v3996_v3 }
0x15ef   :  { %v4642_v5 = vpop.f32.mrf.mxu1 }
0x15f0   :  { %4763 = vtanh.f32 %v3997_v4 }
0x15fd   :  { %v4764_v6 = vpop.eup %4763 }
0x15fe   :  { %4652 = vmatmul.mubr.msk.f32.vlgmr.msra.gmra.mxu1 %vm72_vm0, %v4764_v6 }
0x16be   :  { %v4081_v8 = vpop.f32.mrf.mxu1 }
0x16bf   :  { %v4082_v9 = vadd.f32 %v4226_v7, %v4081_v8 }
0x16c0   :  { %v4653_v34 = vpop.f32.mrf.mxu1 }
0x16c1   :  { %v4086_v11 = vsel %vm4085_vm8, %v4082_v9, -inf }
0x16c2   :  { %4087 = vmax.xlane.f32.xlu0 %v4086_v11 }
0x174b   :  { %v4088_v38 = vpop.xlane.xlu0 %4087 }
0x174c   :  { %v4089_v60 = vsub.f32 %v4082_v9, %v4088_v38 }
0x174e   :  { %v4090_v25 = vmul.f32 1.442695, %v4089_v60 }
0x1750   :  { %4765 = vpow2.f32 %v4090_v25 }
0x175d   :  { %v4766_v10 = vpop.eup %4765 }
0x175e   :  { %v4092_v12 = vsel %vm4085_vm8, %v4766_v10, 0.0 }
0x175f   :  { %4093 = vadd.xlane.f32.xlu1 %v4092_v12 }
0x17e8   :  { %v4094_v13 = vpop.xlane.xlu1 %4093 }
0x17e9   :  { %4767 = vlog2.f32 %v4094_v13 }
0x17f6   :  { %v4768_v14 = vpop.eup %4767 }
0x17f7   :  { %v4096_v15 = vmul.f32 0.6931472, %v4768_v14 }
0x17f9   :  { %v4097_v18 = vsub.f32 %v4089_v60, %v4096_v15 }
0x17fb   :  { %v4099_v21 = vmul.f32 %v4098_v16, %v4097_v18 }
0x17fd   :  { %v4100_v22 = vsel %vm4085_vm8, %v4099_v21, 0.0 }
0x17fe   :  { %4101 = vadd.xlane.f32.xlu0 %v4100_v22 }
0x1887   :  { %v4102_v23 = vpop.xlane.xlu0 %4101 }
0x1888   :  { %v4103_v26 = vsub.f32 0.0, %v4102_v23 }
0x188a   :  { %v4105_v27 = vsel %vm4104_vm9, %v4082_v9, %v4103_v26 }
0x188b   :  { %4107 = vst.msk [vmem:[%s5602_s21] sm:$0x3] %vm4106_vm10, %v4105_v27 }

</bundles_post_ra>
